<compile_context>
chip_gen: v6e
topology: v6e:2x2x1
jax: 0.10.0
libtpu: 0.0.40
codegen_flags: <defaults>
</compile_context>

<pallas_src>
import functools
import math

import jax
import jax.numpy as jnp
from jax.experimental import pallas as pl
from jax.experimental.pallas import tpu as pltpu

# ---------------- model hyper-parameters ----------------
LOOKBACK = 16
PRED_LEN = 8           # "future"
D_MODEL = 32
N_HEADS = 4
DEPTH = 2
MLP_RATIO = 4
STRIDE = 8             # external_stride / sampling_step
EMB_INIT = 0.01
LN_EPS = 1e-5

B_IN, L_IN, C_IN = 2, 48, 4   # example input shape (B, L, C)

LAYER_PARAM_NAMES = ("wqkv", "bqkv", "wo", "bo", "g1", "be1",
                     "w1", "bb1", "w2", "bb2", "g2", "be2")


# ---------------- in-kernel helpers ----------------
def _ln(z, g, b):
    mu = jnp.mean(z, axis=-1, keepdims=True)
    var = jnp.mean((z - mu) ** 2, axis=-1, keepdims=True)
    return (z - mu) * jax.lax.rsqrt(var + LN_EPS) * g + b


# ---------------- fused ICTSP kernel (one batch element per grid step) ----------------
def _ictsp_fused_kernel(x_ref, oe_ref, posb_ref,
                        w_in_ref, b_in_ref, in_g_ref, in_b_ref,
                        *rest,
                        lookback, future, stride, n_heads, n_layers):
    n_lp = 12 * n_layers
    layer_refs = rest[:n_lp]
    w_out_ref, b_out_ref, o_ref, tok_sc, attn_sc = rest[n_lp:]

    x_cl = x_ref[0]                                   # (C, L)  channels x time
    C, L = x_cl.shape
    d_tok = lookback + future
    n_win = (L - d_tok) // stride + 1
    N = (n_win + 1) * C

    # ---- tokenizer: flip/unfold/flip/flip == tail-aligned sliding windows,
    # oldest window first, values in increasing time order; built in VMEM. ----
    for m in range(n_win):
        start = (L - d_tok) - (n_win - 1 - m) * stride
        tok_sc[m * C:(m + 1) * C, :] = x_cl[:, start:start + d_tok]

    # target token: last `lookback` observations ++ (output_embedding + last value)
    last = x_cl[:, L - 1:L]                                   # (C, 1)
    tok_sc[n_win * C:, :lookback] = x_cl[:, L - lookback:]
    tok_sc[n_win * C:, lookback:] = oe_ref[...] + last        # (1,f)+(C,1)->(C,f)

    x_tokens = tok_sc[...]                                    # (N, d_tok)
    token_mean = x_tokens[:, lookback - 1:lookback]           # value at -(future+1)
    x_tokens = x_tokens - token_mean
    # token_std is computed by the reference but never used -> skipped

    # ---- input projection + folded (cdm + icpe + icpe_after) bias + input_norm ----
    t = jnp.dot(x_tokens, w_in_ref[...],
                preferred_element_type=jnp.float32) + b_in_ref[...]
    t = t + posb_ref[...]
    t = _ln(t, in_g_ref[...], in_b_ref[...])

    dm = t.shape[-1]
    hd = dm // n_heads
    scale = 1.0 / math.sqrt(hd)

    # ---- post-norm nn.TransformerEncoderLayer x n_layers (ReLU FFN, no dropout) ----
    for li in range(n_layers):
        (wqkv, bqkv, wo, bo, g1, be1,
         w1, bb1, w2, bb2, g2, be2) = (r[...] for r in
                                       layer_refs[12 * li:12 * (li + 1)])

        qkv = jnp.dot(t, wqkv, preferred_element_type=jnp.float32) + bqkv
        q = qkv[:, 0 * dm:1 * dm]
        k = qkv[:, 1 * dm:2 * dm]
        v = qkv[:, 2 * dm:3 * dm]

        # per-head attention; head outputs land contiguously so one out-proj matmul
        for h in range(n_heads):
            qh = q[:, h * hd:(h + 1) * hd]
            kh = k[:, h * hd:(h + 1) * hd]
            vh = v[:, h * hd:(h + 1) * hd]
            s = jax.lax.dot_general(qh, kh, (((1,), (1,)), ((), ())),
                                    preferred_element_type=jnp.float32) * scale
            p = jax.nn.softmax(s, axis=-1)
            attn_sc[:, h * hd:(h + 1) * hd] = jnp.dot(
                p, vh, preferred_element_type=jnp.float32)

        attn = jnp.dot(attn_sc[...], wo,
                       preferred_element_type=jnp.float32) + bo
        y = _ln(t + attn, g1, be1)
        h1 = jnp.maximum(
            jnp.dot(y, w1, preferred_element_type=jnp.float32) + bb1, 0.0)
        ff = jnp.dot(h1, w2, preferred_element_type=jnp.float32) + bb2
        t = _ln(y + ff, g2, be2)

    # ---- output projection on the last C (target) tokens, add mean back ----
    t_tgt = t[N - C:, :]                                      # (C, dm)
    out = jnp.dot(t_tgt, w_out_ref[...],
                  preferred_element_type=jnp.float32) + b_out_ref[...]
    out = out + token_mean[N - C:, :]
    o_ref[0] = out.astype(o_ref.dtype)


# ---------------- parameter init (deterministic, synthetic) ----------------
def init_params(key):
    d_tok = LOOKBACK + PRED_LEN
    ffn = MLP_RATIO * D_MODEL
    keys = iter(jax.random.split(key, 64))

    def nrm(shape, std):
        return (std * jax.random.normal(next(keys), shape)).astype(jnp.float32)

    params = {
        "output_embedding": nrm((1, 1, 1200), EMB_INIT),
        "channel_discerning_mask": nrm((1, 1024, D_MODEL), EMB_INIT),
        "icpe": nrm((1, 8192, 1, D_MODEL), EMB_INIT),
        "icpe_after": nrm((1, 8192, D_MODEL), EMB_INIT),
        # input_projection[f"{lookback}_{future}"]: Linear(lookback+future, d_model)
        "w_in": nrm((d_tok, D_MODEL), 0.02),
        "b_in": jnp.zeros((1, D_MODEL), jnp.float32),
        # output_projection[str(future)]: Linear(d_model, future)
        "w_out": nrm((D_MODEL, PRED_LEN), 0.02),
        "b_out": jnp.zeros((1, PRED_LEN), jnp.float32),
        # input_norm LayerNorm(d_model)
        "in_g": jnp.ones((1, D_MODEL), jnp.float32),
        "in_b": jnp.zeros((1, D_MODEL), jnp.float32),
        "layers": [],
    }
    for _ in range(DEPTH):
        params["layers"].append({
            "wqkv": nrm((D_MODEL, 3 * D_MODEL), 0.02),
            "bqkv": jnp.zeros((1, 3 * D_MODEL), jnp.float32),
            "wo":   nrm((D_MODEL, D_MODEL), 0.02),
            "bo":   jnp.zeros((1, D_MODEL), jnp.float32),
            "g1":   jnp.ones((1, D_MODEL), jnp.float32),
            "be1":  jnp.zeros((1, D_MODEL), jnp.float32),
            "w1":   nrm((D_MODEL, ffn), 0.02),
            "bb1":  jnp.zeros((1, ffn), jnp.float32),
            "w2":   nrm((ffn, D_MODEL), 0.02),
            "bb2":  jnp.zeros((1, D_MODEL), jnp.float32),
            "g2":   jnp.ones((1, D_MODEL), jnp.float32),
            "be2":  jnp.zeros((1, D_MODEL), jnp.float32),
        })
    return params


# ---------------- ICTSP forward (eval path) ----------------
def ictsp_forward(x, params):
    B, L, C = x.shape
    future, lookback, s = PRED_LEN, LOOKBACK, STRIDE
    d_tok = lookback + future
    n_win = (L - d_tok) // s + 1
    n_grp = n_win + 1                    # tokens per channel (== N // C)
    N = n_grp * C
    dm = D_MODEL
    ffn = MLP_RATIO * dm

    # (B, C, L) layout for the kernel; tokenization happens inside the kernel.
    x_cl = jnp.transpose(x, (0, 2, 1))

    # slice of the learned future embedding actually used
    oe = params["output_embedding"][0, :, :future]            # (1, future)

    # pre-fold channel_discerning_mask + icpe + icpe_after -> one (N, dm) bias
    cdm = params["channel_discerning_mask"][0, -C:, :]        # (C, dm)
    cdm = jnp.tile(cdm, (n_grp, 1))                           # (N, dm)
    icpe = params["icpe"][0, -n_grp:, :, :]                   # (n_grp, 1, dm)
    icpe = jnp.broadcast_to(icpe, (n_grp, C, dm)).reshape(N, dm)
    icpe_after = params["icpe_after"][0, -N:, :]              # (N, dm)
    pos_bias = cdm + icpe + icpe_after
    # token_retriever_flag=False -> token merger skipped; token_limit >= N -> no-op
    # TODO(synk): TokenFusionLayerWithAdjustableRatio (data-dependent sort/gather/
    # while-loop), training-only shifting and the linear warm-up branch are not on
    # this eval path and are not implemented.

    def full(shape):
        nd = len(shape)
        return pl.BlockSpec(shape, lambda b, _nd=nd: (0,) * _nd)

    layer_args, layer_specs = [], []
    for lp in params["layers"]:
        for name in LAYER_PARAM_NAMES:
            layer_args.append(lp[name])
            layer_specs.append(full(lp[name].shape))

    kernel = functools.partial(_ictsp_fused_kernel,
                               lookback=lookback, future=future, stride=s,
                               n_heads=N_HEADS, n_layers=DEPTH)

    flops_per_b = (2 * N * d_tok * dm
                   + DEPTH * (2 * N * dm * 3 * dm
                              + N_HEADS * 4 * N * N * (dm // N_HEADS)
                              + 2 * N * dm * dm
                              + 4 * N * dm * ffn)
                   + 2 * C * dm * future)
    cost = pl.CostEstimate(
        flops=int(B * flops_per_b),
        transcendentals=int(B * DEPTH * N_HEADS * N * N),
        bytes_accessed=int(4 * (B * C * L + N * dm + d_tok * dm
                                + DEPTH * (3 * dm * dm + dm * dm + 2 * dm * ffn)
                                + B * C * future)))

    out = pl.pallas_call(
        kernel,
        out_shape=jax.ShapeDtypeStruct((B, C, future), x.dtype),
        grid=(B,),
        in_specs=([pl.BlockSpec((1, C, L), lambda b: (b, 0, 0)),
                   full((1, future)), full((N, dm)),
                   full((d_tok, dm)), full((1, dm)),
                   full((1, dm)), full((1, dm))]
                  + layer_specs
                  + [full((dm, future)), full((1, future))]),
        out_specs=pl.BlockSpec((1, C, future), lambda b: (b, 0, 0)),
        scratch_shapes=[pltpu.VMEM((N, d_tok), jnp.float32),   # token buffer
                        pltpu.VMEM((N, dm), jnp.float32)],     # concat'd heads
        compiler_params=pltpu.CompilerParams(
            dimension_semantics=("parallel",)),
        cost_estimate=cost,
    )(x_cl, oe, pos_bias,
      params["w_in"], params["b_in"], params["in_g"], params["in_b"],
      *layer_args,
      params["w_out"], params["b_out"])

    return jnp.transpose(out, (0, 2, 1))                      # (B, pred_len, C)


@jax.jit
def model_forward(x, params):
    # Model.forward, fix_embedding / eval path -> a single ICTSP call.
    return ictsp_forward(x, params)


if __name__ == "__main__":
    key = jax.random.PRNGKey(0)
    k_x, k_p = jax.random.split(key)
    x = jax.random.normal(k_x, (B_IN, L_IN, C_IN), dtype=jnp.float32)
    params = init_params(k_p)

    out = model_forward(x, params)
    out = jax.block_until_ready(out)
    assert out.shape == (B_IN, PRED_LEN, C_IN), out.shape
    assert jnp.all(jnp.isfinite(out))
    print("KERNEL_OK")
</pallas_src>

<mosaic_0001>
module attributes {stable_mosaic.version = 11 : i64} {
  func.func @_ictsp_fused_kernel(%arg0: i32, %arg1: memref<1x4x48xf32, #tpu.memory_space<vmem>>, %arg2: memref<1x8xf32, #tpu.memory_space<vmem>>, %arg3: memref<20x32xf32, #tpu.memory_space<vmem>>, %arg4: memref<24x32xf32, #tpu.memory_space<vmem>>, %arg5: memref<1x32xf32, #tpu.memory_space<vmem>>, %arg6: memref<1x32xf32, #tpu.memory_space<vmem>>, %arg7: memref<1x32xf32, #tpu.memory_space<vmem>>, %arg8: memref<32x96xf32, #tpu.memory_space<vmem>>, %arg9: memref<1x96xf32, #tpu.memory_space<vmem>>, %arg10: memref<32x32xf32, #tpu.memory_space<vmem>>, %arg11: memref<1x32xf32, #tpu.memory_space<vmem>>, %arg12: memref<1x32xf32, #tpu.memory_space<vmem>>, %arg13: memref<1x32xf32, #tpu.memory_space<vmem>>, %arg14: memref<32x128xf32, #tpu.memory_space<vmem>>, %arg15: memref<1x128xf32, #tpu.memory_space<vmem>>, %arg16: memref<128x32xf32, #tpu.memory_space<vmem>>, %arg17: memref<1x32xf32, #tpu.memory_space<vmem>>, %arg18: memref<1x32xf32, #tpu.memory_space<vmem>>, %arg19: memref<1x32xf32, #tpu.memory_space<vmem>>, %arg20: memref<32x96xf32, #tpu.memory_space<vmem>>, %arg21: memref<1x96xf32, #tpu.memory_space<vmem>>, %arg22: memref<32x32xf32, #tpu.memory_space<vmem>>, %arg23: memref<1x32xf32, #tpu.memory_space<vmem>>, %arg24: memref<1x32xf32, #tpu.memory_space<vmem>>, %arg25: memref<1x32xf32, #tpu.memory_space<vmem>>, %arg26: memref<32x128xf32, #tpu.memory_space<vmem>>, %arg27: memref<1x128xf32, #tpu.memory_space<vmem>>, %arg28: memref<128x32xf32, #tpu.memory_space<vmem>>, %arg29: memref<1x32xf32, #tpu.memory_space<vmem>>, %arg30: memref<1x32xf32, #tpu.memory_space<vmem>>, %arg31: memref<1x32xf32, #tpu.memory_space<vmem>>, %arg32: memref<32x8xf32, #tpu.memory_space<vmem>>, %arg33: memref<1x8xf32, #tpu.memory_space<vmem>>, %arg34: memref<1x4x8xf32, #tpu.memory_space<vmem>>, %arg35: memref<20x24xf32, #tpu.memory_space<vmem>>, %arg36: memref<20x32xf32, #tpu.memory_space<vmem>>) attributes {dimension_semantics = [#tpu.dimension_semantics<parallel>], iteration_bounds = array<i64: 2>, scalar_prefetch = 0 : i64, scratch_operands = 2 : i64, tpu.core_type = #tpu.core_type<tc>, window_params = [{transform_indices = @transform_0, window_bounds = array<i64: 1, 4, 48>}, {pipeline_mode = #tpu.pipeline_mode<synchronous>, transform_indices = @transform_1, window_bounds = array<i64: 1, 8>}, {pipeline_mode = #tpu.pipeline_mode<synchronous>, transform_indices = @transform_2, window_bounds = array<i64: 20, 32>}, {pipeline_mode = #tpu.pipeline_mode<synchronous>, transform_indices = @transform_3, window_bounds = array<i64: 24, 32>}, {pipeline_mode = #tpu.pipeline_mode<synchronous>, transform_indices = @transform_4, window_bounds = array<i64: 1, 32>}, {pipeline_mode = #tpu.pipeline_mode<synchronous>, transform_indices = @transform_5, window_bounds = array<i64: 1, 32>}, {pipeline_mode = #tpu.pipeline_mode<synchronous>, transform_indices = @transform_6, window_bounds = array<i64: 1, 32>}, {pipeline_mode = #tpu.pipeline_mode<synchronous>, transform_indices = @transform_7, window_bounds = array<i64: 32, 96>}, {pipeline_mode = #tpu.pipeline_mode<synchronous>, transform_indices = @transform_8, window_bounds = array<i64: 1, 96>}, {pipeline_mode = #tpu.pipeline_mode<synchronous>, transform_indices = @transform_9, window_bounds = array<i64: 32, 32>}, {pipeline_mode = #tpu.pipeline_mode<synchronous>, transform_indices = @transform_10, window_bounds = array<i64: 1, 32>}, {pipeline_mode = #tpu.pipeline_mode<synchronous>, transform_indices = @transform_11, window_bounds = array<i64: 1, 32>}, {pipeline_mode = #tpu.pipeline_mode<synchronous>, transform_indices = @transform_12, window_bounds = array<i64: 1, 32>}, {pipeline_mode = #tpu.pipeline_mode<synchronous>, transform_indices = @transform_13, window_bounds = array<i64: 32, 128>}, {pipeline_mode = #tpu.pipeline_mode<synchronous>, transform_indices = @transform_14, window_bounds = array<i64: 1, 128>}, {pipeline_mode = #tpu.pipeline_mode<synchronous>, transform_indices = @transform_15, window_bounds = array<i64: 128, 32>}, {pipeline_mode = #tpu.pipeline_mode<synchronous>, transform_indices = @transform_16, window_bounds = array<i64: 1, 32>}, {pipeline_mode = #tpu.pipeline_mode<synchronous>, transform_indices = @transform_17, window_bounds = array<i64: 1, 32>}, {pipeline_mode = #tpu.pipeline_mode<synchronous>, transform_indices = @transform_18, window_bounds = array<i64: 1, 32>}, {pipeline_mode = #tpu.pipeline_mode<synchronous>, transform_indices = @transform_19, window_bounds = array<i64: 32, 96>}, {pipeline_mode = #tpu.pipeline_mode<synchronous>, transform_indices = @transform_20, window_bounds = array<i64: 1, 96>}, {pipeline_mode = #tpu.pipeline_mode<synchronous>, transform_indices = @transform_21, window_bounds = array<i64: 32, 32>}, {pipeline_mode = #tpu.pipeline_mode<synchronous>, transform_indices = @transform_22, window_bounds = array<i64: 1, 32>}, {pipeline_mode = #tpu.pipeline_mode<synchronous>, transform_indices = @transform_23, window_bounds = array<i64: 1, 32>}, {pipeline_mode = #tpu.pipeline_mode<synchronous>, transform_indices = @transform_24, window_bounds = array<i64: 1, 32>}, {pipeline_mode = #tpu.pipeline_mode<synchronous>, transform_indices = @transform_25, window_bounds = array<i64: 32, 128>}, {pipeline_mode = #tpu.pipeline_mode<synchronous>, transform_indices = @transform_26, window_bounds = array<i64: 1, 128>}, {pipeline_mode = #tpu.pipeline_mode<synchronous>, transform_indices = @transform_27, window_bounds = array<i64: 128, 32>}, {pipeline_mode = #tpu.pipeline_mode<synchronous>, transform_indices = @transform_28, window_bounds = array<i64: 1, 32>}, {pipeline_mode = #tpu.pipeline_mode<synchronous>, transform_indices = @transform_29, window_bounds = array<i64: 1, 32>}, {pipeline_mode = #tpu.pipeline_mode<synchronous>, transform_indices = @transform_30, window_bounds = array<i64: 1, 32>}, {pipeline_mode = #tpu.pipeline_mode<synchronous>, transform_indices = @transform_31, window_bounds = array<i64: 32, 8>}, {pipeline_mode = #tpu.pipeline_mode<synchronous>, transform_indices = @transform_32, window_bounds = array<i64: 1, 8>}, {transform_indices = @transform_33, window_bounds = array<i64: 1, 4, 8>}]} {
    %c0 = arith.constant 0 : index
    %c0_0 = arith.constant 0 : index
    %c0_1 = arith.constant 0 : index
    %0 = vector.load %arg1[%c0, %c0_0, %c0_1] : memref<1x4x48xf32, #tpu.memory_space<vmem>>, vector<1x4x48xf32>
    %1 = vector.shape_cast %0 : vector<1x4x48xf32> to vector<4x48xf32>
    %2 = vector.extract_strided_slice %1 {offsets = [0, 0], sizes = [4, 24], strides = [1, 1]} : vector<4x48xf32> to vector<4x24xf32>
    %c0_2 = arith.constant 0 : index
    %c0_3 = arith.constant 0 : index
    %3 = vector.load %arg35[%c0_2, %c0_3] : memref<20x24xf32, #tpu.memory_space<vmem>>, vector<4x24xf32>
    tpu.vector_store %arg35[%c0_2, %c0_3], %2 {strides = array<i32>} : memref<20x24xf32, #tpu.memory_space<vmem>>, vector<4x24xf32>,
    %4 = vector.extract_strided_slice %1 {offsets = [0, 8], sizes = [4, 24], strides = [1, 1]} : vector<4x48xf32> to vector<4x24xf32>
    %c4 = arith.constant 4 : index
    %c0_4 = arith.constant 0 : index
    %5 = vector.load %arg35[%c4, %c0_4] : memref<20x24xf32, #tpu.memory_space<vmem>>, vector<4x24xf32>
    tpu.vector_store %arg35[%c4, %c0_4], %4 {strides = array<i32>} : memref<20x24xf32, #tpu.memory_space<vmem>>, vector<4x24xf32>,
    %6 = vector.extract_strided_slice %1 {offsets = [0, 16], sizes = [4, 24], strides = [1, 1]} : vector<4x48xf32> to vector<4x24xf32>
    %c8 = arith.constant 8 : index
    %c0_5 = arith.constant 0 : index
    %7 = vector.load %arg35[%c8, %c0_5] : memref<20x24xf32, #tpu.memory_space<vmem>>, vector<4x24xf32>
    tpu.vector_store %arg35[%c8, %c0_5], %6 {strides = array<i32>} : memref<20x24xf32, #tpu.memory_space<vmem>>, vector<4x24xf32>,
    %8 = vector.extract_strided_slice %1 {offsets = [0, 24], sizes = [4, 24], strides = [1, 1]} : vector<4x48xf32> to vector<4x24xf32>
    %c12 = arith.constant 12 : index
    %c0_6 = arith.constant 0 : index
    %9 = vector.load %arg35[%c12, %c0_6] : memref<20x24xf32, #tpu.memory_space<vmem>>, vector<4x24xf32>
    tpu.vector_store %arg35[%c12, %c0_6], %8 {strides = array<i32>} : memref<20x24xf32, #tpu.memory_space<vmem>>, vector<4x24xf32>,
    %10 = vector.extract_strided_slice %1 {offsets = [0, 47], sizes = [4, 1], strides = [1, 1]} : vector<4x48xf32> to vector<4x1xf32>
    %11 = vector.extract_strided_slice %1 {offsets = [0, 32], sizes = [4, 16], strides = [1, 1]} : vector<4x48xf32> to vector<4x16xf32>
    %c16 = arith.constant 16 : index
    %c0_7 = arith.constant 0 : index
    %12 = vector.load %arg35[%c16, %c0_7] : memref<20x24xf32, #tpu.memory_space<vmem>>, vector<4x16xf32>
    tpu.vector_store %arg35[%c16, %c0_7], %11 {strides = array<i32>} : memref<20x24xf32, #tpu.memory_space<vmem>>, vector<4x16xf32>,
    %c0_8 = arith.constant 0 : index
    %c0_9 = arith.constant 0 : index
    %13 = vector.load %arg2[%c0_8, %c0_9] : memref<1x8xf32, #tpu.memory_space<vmem>>, vector<1x8xf32>
    %14 = vector.broadcast %13 : vector<1x8xf32> to vector<4x8xf32>
    %15 = vector.broadcast %10 : vector<4x1xf32> to vector<4x8xf32>
    %16 = arith.addf %14, %15 : vector<4x8xf32>
    %c16_10 = arith.constant 16 : index
    %c16_11 = arith.constant 16 : index
    %17 = vector.load %arg35[%c16_10, %c16_11] : memref<20x24xf32, #tpu.memory_space<vmem>>, vector<4x8xf32>
    tpu.vector_store %arg35[%c16_10, %c16_11], %16 {strides = array<i32>} : memref<20x24xf32, #tpu.memory_space<vmem>>, vector<4x8xf32>,
    %c0_12 = arith.constant 0 : index
    %c0_13 = arith.constant 0 : index
    %18 = vector.load %arg35[%c0_12, %c0_13] : memref<20x24xf32, #tpu.memory_space<vmem>>, vector<20x24xf32>
    %19 = vector.extract_strided_slice %18 {offsets = [0, 15], sizes = [20, 1], strides = [1, 1]} : vector<20x24xf32> to vector<20x1xf32>
    %20 = vector.broadcast %19 : vector<20x1xf32> to vector<20x24xf32>
    %21 = arith.subf %18, %20 : vector<20x24xf32>
    %c0_14 = arith.constant 0 : index
    %c0_15 = arith.constant 0 : index
    %22 = vector.load %arg4[%c0_14, %c0_15] : memref<24x32xf32, #tpu.memory_space<vmem>>, vector<24x32xf32>
    %cst = arith.constant dense<0.000000e+00> : vector<20x32xf32>
    %23 = tpu.matmul %21, %22, %cst {dimension_numbers = #tpu.dot_dimension_numbers<[1], [0], [0], [1], [0, 0, 1, 1], [], []>} : vector<20x24xf32>, vector<24x32xf32>, vector<20x32xf32> -> vector<20x32xf32>
    %c0_16 = arith.constant 0 : index
    %c0_17 = arith.constant 0 : index
    %24 = vector.load %arg5[%c0_16, %c0_17] : memref<1x32xf32, #tpu.memory_space<vmem>>, vector<1x32xf32>
    %25 = vector.broadcast %24 : vector<1x32xf32> to vector<20x32xf32>
    %26 = arith.addf %23, %25 : vector<20x32xf32>
    %c0_18 = arith.constant 0 : index
    %c0_19 = arith.constant 0 : index
    %27 = vector.load %arg3[%c0_18, %c0_19] : memref<20x32xf32, #tpu.memory_space<vmem>>, vector<20x32xf32>
    %28 = arith.addf %26, %27 : vector<20x32xf32>
    %c0_20 = arith.constant 0 : index
    %c0_21 = arith.constant 0 : index
    %29 = vector.load %arg6[%c0_20, %c0_21] : memref<1x32xf32, #tpu.memory_space<vmem>>, vector<1x32xf32>
    %c0_22 = arith.constant 0 : index
    %c0_23 = arith.constant 0 : index
    %30 = vector.load %arg7[%c0_22, %c0_23] : memref<1x32xf32, #tpu.memory_space<vmem>>, vector<1x32xf32>
    %cst_24 = arith.constant dense<0.000000e+00> : vector<20xf32>
    %31 = vector.multi_reduction <add>, %28, %cst_24 [1] : vector<20x32xf32> to vector<20xf32>
    %32 = vector.shape_cast %31 : vector<20xf32> to vector<20x1xf32>
    %cst_25 = arith.constant 3.200000e+01 : f32
    %33 = vector.broadcast %cst_25 : f32 to vector<20x1xf32>
    %34 = arith.divf %32, %33 : vector<20x1xf32>
    %35 = vector.broadcast %34 : vector<20x1xf32> to vector<20x32xf32>
    %36 = arith.subf %28, %35 : vector<20x32xf32>
    %37 = arith.mulf %36, %36 : vector<20x32xf32>
    %cst_26 = arith.constant dense<0.000000e+00> : vector<20xf32>
    %38 = vector.multi_reduction <add>, %37, %cst_26 [1] : vector<20x32xf32> to vector<20xf32>
    %39 = vector.shape_cast %38 : vector<20xf32> to vector<20x1xf32>
    %cst_27 = arith.constant 3.200000e+01 : f32
    %40 = vector.broadcast %cst_27 : f32 to vector<20x1xf32>
    %41 = arith.divf %39, %40 : vector<20x1xf32>
    %42 = vector.broadcast %34 : vector<20x1xf32> to vector<20x32xf32>
    %43 = arith.subf %28, %42 : vector<20x32xf32>
    %cst_28 = arith.constant 9.99999974E-6 : f32
    %44 = vector.broadcast %cst_28 : f32 to vector<20x1xf32>
    %45 = arith.addf %41, %44 : vector<20x1xf32>
    %46 = math.rsqrt %45 : vector<20x1xf32>
    %47 = vector.broadcast %46 : vector<20x1xf32> to vector<20x32xf32>
    %48 = arith.mulf %43, %47 : vector<20x32xf32>
    %49 = vector.broadcast %29 : vector<1x32xf32> to vector<20x32xf32>
    %50 = arith.mulf %48, %49 : vector<20x32xf32>
    %51 = vector.broadcast %30 : vector<1x32xf32> to vector<20x32xf32>
    %52 = arith.addf %50, %51 : vector<20x32xf32>
    %c0_29 = arith.constant 0 : index
    %c0_30 = arith.constant 0 : index
    %53 = vector.load %arg8[%c0_29, %c0_30] : memref<32x96xf32, #tpu.memory_space<vmem>>, vector<32x96xf32>
    %c0_31 = arith.constant 0 : index
    %c0_32 = arith.constant 0 : index
    %54 = vector.load %arg9[%c0_31, %c0_32] : memref<1x96xf32, #tpu.memory_space<vmem>>, vector<1x96xf32>
    %c0_33 = arith.constant 0 : index
    %c0_34 = arith.constant 0 : index
    %55 = vector.load %arg10[%c0_33, %c0_34] : memref<32x32xf32, #tpu.memory_space<vmem>>, vector<32x32xf32>
    %c0_35 = arith.constant 0 : index
    %c0_36 = arith.constant 0 : index
    %56 = vector.load %arg11[%c0_35, %c0_36] : memref<1x32xf32, #tpu.memory_space<vmem>>, vector<1x32xf32>
    %c0_37 = arith.constant 0 : index
    %c0_38 = arith.constant 0 : index
    %57 = vector.load %arg12[%c0_37, %c0_38] : memref<1x32xf32, #tpu.memory_space<vmem>>, vector<1x32xf32>
    %c0_39 = arith.constant 0 : index
    %c0_40 = arith.constant 0 : index
    %58 = vector.load %arg13[%c0_39, %c0_40] : memref<1x32xf32, #tpu.memory_space<vmem>>, vector<1x32xf32>
    %c0_41 = arith.constant 0 : index
    %c0_42 = arith.constant 0 : index
    %59 = vector.load %arg14[%c0_41, %c0_42] : memref<32x128xf32, #tpu.memory_space<vmem>>, vector<32x128xf32>
    %c0_43 = arith.constant 0 : index
    %c0_44 = arith.constant 0 : index
    %60 = vector.load %arg15[%c0_43, %c0_44] : memref<1x128xf32, #tpu.memory_space<vmem>>, vector<1x128xf32>
    %c0_45 = arith.constant 0 : index
    %c0_46 = arith.constant 0 : index
    %61 = vector.load %arg16[%c0_45, %c0_46] : memref<128x32xf32, #tpu.memory_space<vmem>>, vector<128x32xf32>
    %c0_47 = arith.constant 0 : index
    %c0_48 = arith.constant 0 : index
    %62 = vector.load %arg17[%c0_47, %c0_48] : memref<1x32xf32, #tpu.memory_space<vmem>>, vector<1x32xf32>
    %c0_49 = arith.constant 0 : index
    %c0_50 = arith.constant 0 : index
    %63 = vector.load %arg18[%c0_49, %c0_50] : memref<1x32xf32, #tpu.memory_space<vmem>>, vector<1x32xf32>
    %c0_51 = arith.constant 0 : index
    %c0_52 = arith.constant 0 : index
    %64 = vector.load %arg19[%c0_51, %c0_52] : memref<1x32xf32, #tpu.memory_space<vmem>>, vector<1x32xf32>
    %cst_53 = arith.constant dense<0.000000e+00> : vector<20x96xf32>
    %65 = tpu.matmul %52, %53, %cst_53 {dimension_numbers = #tpu.dot_dimension_numbers<[1], [0], [0], [1], [0, 0, 1, 1], [], []>} : vector<20x32xf32>, vector<32x96xf32>, vector<20x96xf32> -> vector<20x96xf32>
    %66 = vector.broadcast %54 : vector<1x96xf32> to vector<20x96xf32>
    %67 = arith.addf %65, %66 : vector<20x96xf32>
    %68 = vector.extract_strided_slice %67 {offsets = [0, 0], sizes = [20, 32], strides = [1, 1]} : vector<20x96xf32> to vector<20x32xf32>
    %69 = vector.extract_strided_slice %67 {offsets = [0, 32], sizes = [20, 32], strides = [1, 1]} : vector<20x96xf32> to vector<20x32xf32>
    %70 = vector.extract_strided_slice %67 {offsets = [0, 64], sizes = [20, 32], strides = [1, 1]} : vector<20x96xf32> to vector<20x32xf32>
    %71 = vector.extract_strided_slice %68 {offsets = [0, 0], sizes = [20, 8], strides = [1, 1]} : vector<20x32xf32> to vector<20x8xf32>
    %72 = vector.extract_strided_slice %69 {offsets = [0, 0], sizes = [20, 8], strides = [1, 1]} : vector<20x32xf32> to vector<20x8xf32>
    %73 = vector.extract_strided_slice %70 {offsets = [0, 0], sizes = [20, 8], strides = [1, 1]} : vector<20x32xf32> to vector<20x8xf32>
    %cst_54 = arith.constant dense<0.000000e+00> : vector<20x20xf32>
    %74 = tpu.matmul %71, %72, %cst_54 {dimension_numbers = #tpu.dot_dimension_numbers<[1], [1], [0], [0], [0, 0, 1, 0], [], []>} : vector<20x8xf32>, vector<20x8xf32>, vector<20x20xf32> -> vector<20x20xf32>
    %cst_55 = arith.constant 0.353553385 : f32
    %75 = vector.broadcast %cst_55 : f32 to vector<20x20xf32>
    %76 = arith.mulf %74, %75 : vector<20x20xf32>
    %cst_56 = arith.constant dense<0xFF800000> : vector<20xf32>
    %77 = vector.multi_reduction <maximumf>, %76, %cst_56 [1] : vector<20x20xf32> to vector<20xf32>
    %cst_57 = arith.constant 0xFF800000 : f32
    %78 = vector.broadcast %cst_57 : f32 to vector<20xf32>
    %79 = arith.maximumf %78, %77 : vector<20xf32>
    %80 = vector.shape_cast %79 : vector<20xf32> to vector<20x1xf32>
    %81 = vector.broadcast %80 : vector<20x1xf32> to vector<20x20xf32>
    %82 = arith.subf %76, %81 : vector<20x20xf32>
    %83 = math.exp %82 : vector<20x20xf32>
    %cst_58 = arith.constant dense<0.000000e+00> : vector<20xf32>
    %84 = vector.multi_reduction <add>, %83, %cst_58 [1] : vector<20x20xf32> to vector<20xf32>
    %85 = vector.shape_cast %84 : vector<20xf32> to vector<20x1xf32>
    %86 = vector.broadcast %85 : vector<20x1xf32> to vector<20x20xf32>
    %87 = arith.divf %83, %86 : vector<20x20xf32>
    %cst_59 = arith.constant dense<0.000000e+00> : vector<20x8xf32>
    %88 = tpu.matmul %87, %73, %cst_59 {dimension_numbers = #tpu.dot_dimension_numbers<[1], [0], [0], [1], [0, 0, 1, 1], [], []>} : vector<20x20xf32>, vector<20x8xf32>, vector<20x8xf32> -> vector<20x8xf32>
    %c0_60 = arith.constant 0 : index
    %c0_61 = arith.constant 0 : index
    %89 = vector.load %arg36[%c0_60, %c0_61] : memref<20x32xf32, #tpu.memory_space<vmem>>, vector<20x8xf32>
    tpu.vector_store %arg36[%c0_60, %c0_61], %88 {strides = array<i32>} : memref<20x32xf32, #tpu.memory_space<vmem>>, vector<20x8xf32>,
    %90 = vector.extract_strided_slice %68 {offsets = [0, 8], sizes = [20, 8], strides = [1, 1]} : vector<20x32xf32> to vector<20x8xf32>
    %91 = vector.extract_strided_slice %69 {offsets = [0, 8], sizes = [20, 8], strides = [1, 1]} : vector<20x32xf32> to vector<20x8xf32>
    %92 = vector.extract_strided_slice %70 {offsets = [0, 8], sizes = [20, 8], strides = [1, 1]} : vector<20x32xf32> to vector<20x8xf32>
    %cst_62 = arith.constant dense<0.000000e+00> : vector<20x20xf32>
    %93 = tpu.matmul %90, %91, %cst_62 {dimension_numbers = #tpu.dot_dimension_numbers<[1], [1], [0], [0], [0, 0, 1, 0], [], []>} : vector<20x8xf32>, vector<20x8xf32>, vector<20x20xf32> -> vector<20x20xf32>
    %cst_63 = arith.constant 0.353553385 : f32
    %94 = vector.broadcast %cst_63 : f32 to vector<20x20xf32>
    %95 = arith.mulf %93, %94 : vector<20x20xf32>
    %cst_64 = arith.constant dense<0xFF800000> : vector<20xf32>
    %96 = vector.multi_reduction <maximumf>, %95, %cst_64 [1] : vector<20x20xf32> to vector<20xf32>
    %cst_65 = arith.constant 0xFF800000 : f32
    %97 = vector.broadcast %cst_65 : f32 to vector<20xf32>
    %98 = arith.maximumf %97, %96 : vector<20xf32>
    %99 = vector.shape_cast %98 : vector<20xf32> to vector<20x1xf32>
    %100 = vector.broadcast %99 : vector<20x1xf32> to vector<20x20xf32>
    %101 = arith.subf %95, %100 : vector<20x20xf32>
    %102 = math.exp %101 : vector<20x20xf32>
    %cst_66 = arith.constant dense<0.000000e+00> : vector<20xf32>
    %103 = vector.multi_reduction <add>, %102, %cst_66 [1] : vector<20x20xf32> to vector<20xf32>
    %104 = vector.shape_cast %103 : vector<20xf32> to vector<20x1xf32>
    %105 = vector.broadcast %104 : vector<20x1xf32> to vector<20x20xf32>
    %106 = arith.divf %102, %105 : vector<20x20xf32>
    %cst_67 = arith.constant dense<0.000000e+00> : vector<20x8xf32>
    %107 = tpu.matmul %106, %92, %cst_67 {dimension_numbers = #tpu.dot_dimension_numbers<[1], [0], [0], [1], [0, 0, 1, 1], [], []>} : vector<20x20xf32>, vector<20x8xf32>, vector<20x8xf32> -> vector<20x8xf32>
    %c0_68 = arith.constant 0 : index
    %c8_69 = arith.constant 8 : index
    %108 = vector.load %arg36[%c0_68, %c8_69] : memref<20x32xf32, #tpu.memory_space<vmem>>, vector<20x8xf32>
    tpu.vector_store %arg36[%c0_68, %c8_69], %107 {strides = array<i32>} : memref<20x32xf32, #tpu.memory_space<vmem>>, vector<20x8xf32>,
    %109 = vector.extract_strided_slice %68 {offsets = [0, 16], sizes = [20, 8], strides = [1, 1]} : vector<20x32xf32> to vector<20x8xf32>
    %110 = vector.extract_strided_slice %69 {offsets = [0, 16], sizes = [20, 8], strides = [1, 1]} : vector<20x32xf32> to vector<20x8xf32>
    %111 = vector.extract_strided_slice %70 {offsets = [0, 16], sizes = [20, 8], strides = [1, 1]} : vector<20x32xf32> to vector<20x8xf32>
    %cst_70 = arith.constant dense<0.000000e+00> : vector<20x20xf32>
    %112 = tpu.matmul %109, %110, %cst_70 {dimension_numbers = #tpu.dot_dimension_numbers<[1], [1], [0], [0], [0, 0, 1, 0], [], []>} : vector<20x8xf32>, vector<20x8xf32>, vector<20x20xf32> -> vector<20x20xf32>
    %cst_71 = arith.constant 0.353553385 : f32
    %113 = vector.broadcast %cst_71 : f32 to vector<20x20xf32>
    %114 = arith.mulf %112, %113 : vector<20x20xf32>
    %cst_72 = arith.constant dense<0xFF800000> : vector<20xf32>
    %115 = vector.multi_reduction <maximumf>, %114, %cst_72 [1] : vector<20x20xf32> to vector<20xf32>
    %cst_73 = arith.constant 0xFF800000 : f32
    %116 = vector.broadcast %cst_73 : f32 to vector<20xf32>
    %117 = arith.maximumf %116, %115 : vector<20xf32>
    %118 = vector.shape_cast %117 : vector<20xf32> to vector<20x1xf32>
    %119 = vector.broadcast %118 : vector<20x1xf32> to vector<20x20xf32>
    %120 = arith.subf %114, %119 : vector<20x20xf32>
    %121 = math.exp %120 : vector<20x20xf32>
    %cst_74 = arith.constant dense<0.000000e+00> : vector<20xf32>
    %122 = vector.multi_reduction <add>, %121, %cst_74 [1] : vector<20x20xf32> to vector<20xf32>
    %123 = vector.shape_cast %122 : vector<20xf32> to vector<20x1xf32>
    %124 = vector.broadcast %123 : vector<20x1xf32> to vector<20x20xf32>
    %125 = arith.divf %121, %124 : vector<20x20xf32>
    %cst_75 = arith.constant dense<0.000000e+00> : vector<20x8xf32>
    %126 = tpu.matmul %125, %111, %cst_75 {dimension_numbers = #tpu.dot_dimension_numbers<[1], [0], [0], [1], [0, 0, 1, 1], [], []>} : vector<20x20xf32>, vector<20x8xf32>, vector<20x8xf32> -> vector<20x8xf32>
    %c0_76 = arith.constant 0 : index
    %c16_77 = arith.constant 16 : index
    %127 = vector.load %arg36[%c0_76, %c16_77] : memref<20x32xf32, #tpu.memory_space<vmem>>, vector<20x8xf32>
    tpu.vector_store %arg36[%c0_76, %c16_77], %126 {strides = array<i32>} : memref<20x32xf32, #tpu.memory_space<vmem>>, vector<20x8xf32>,
    %128 = vector.extract_strided_slice %68 {offsets = [0, 24], sizes = [20, 8], strides = [1, 1]} : vector<20x32xf32> to vector<20x8xf32>
    %129 = vector.extract_strided_slice %69 {offsets = [0, 24], sizes = [20, 8], strides = [1, 1]} : vector<20x32xf32> to vector<20x8xf32>
    %130 = vector.extract_strided_slice %70 {offsets = [0, 24], sizes = [20, 8], strides = [1, 1]} : vector<20x32xf32> to vector<20x8xf32>
    %cst_78 = arith.constant dense<0.000000e+00> : vector<20x20xf32>
    %131 = tpu.matmul %128, %129, %cst_78 {dimension_numbers = #tpu.dot_dimension_numbers<[1], [1], [0], [0], [0, 0, 1, 0], [], []>} : vector<20x8xf32>, vector<20x8xf32>, vector<20x20xf32> -> vector<20x20xf32>
    %cst_79 = arith.constant 0.353553385 : f32
    %132 = vector.broadcast %cst_79 : f32 to vector<20x20xf32>
    %133 = arith.mulf %131, %132 : vector<20x20xf32>
    %cst_80 = arith.constant dense<0xFF800000> : vector<20xf32>
    %134 = vector.multi_reduction <maximumf>, %133, %cst_80 [1] : vector<20x20xf32> to vector<20xf32>
    %cst_81 = arith.constant 0xFF800000 : f32
    %135 = vector.broadcast %cst_81 : f32 to vector<20xf32>
    %136 = arith.maximumf %135, %134 : vector<20xf32>
    %137 = vector.shape_cast %136 : vector<20xf32> to vector<20x1xf32>
    %138 = vector.broadcast %137 : vector<20x1xf32> to vector<20x20xf32>
    %139 = arith.subf %133, %138 : vector<20x20xf32>
    %140 = math.exp %139 : vector<20x20xf32>
    %cst_82 = arith.constant dense<0.000000e+00> : vector<20xf32>
    %141 = vector.multi_reduction <add>, %140, %cst_82 [1] : vector<20x20xf32> to vector<20xf32>
    %142 = vector.shape_cast %141 : vector<20xf32> to vector<20x1xf32>
    %143 = vector.broadcast %142 : vector<20x1xf32> to vector<20x20xf32>
    %144 = arith.divf %140, %143 : vector<20x20xf32>
    %cst_83 = arith.constant dense<0.000000e+00> : vector<20x8xf32>
    %145 = tpu.matmul %144, %130, %cst_83 {dimension_numbers = #tpu.dot_dimension_numbers<[1], [0], [0], [1], [0, 0, 1, 1], [], []>} : vector<20x20xf32>, vector<20x8xf32>, vector<20x8xf32> -> vector<20x8xf32>
    %c0_84 = arith.constant 0 : index
    %c24 = arith.constant 24 : index
    %146 = vector.load %arg36[%c0_84, %c24] : memref<20x32xf32, #tpu.memory_space<vmem>>, vector<20x8xf32>
    tpu.vector_store %arg36[%c0_84, %c24], %145 {strides = array<i32>} : memref<20x32xf32, #tpu.memory_space<vmem>>, vector<20x8xf32>,
    %c0_85 = arith.constant 0 : index
    %c0_86 = arith.constant 0 : index
    %147 = vector.load %arg36[%c0_85, %c0_86] : memref<20x32xf32, #tpu.memory_space<vmem>>, vector<20x32xf32>
    %cst_87 = arith.constant dense<0.000000e+00> : vector<20x32xf32>
    %148 = tpu.matmul %147, %55, %cst_87 {dimension_numbers = #tpu.dot_dimension_numbers<[1], [0], [0], [1], [0, 0, 1, 1], [], []>} : vector<20x32xf32>, vector<32x32xf32>, vector<20x32xf32> -> vector<20x32xf32>
    %149 = vector.broadcast %56 : vector<1x32xf32> to vector<20x32xf32>
    %150 = arith.addf %148, %149 : vector<20x32xf32>
    %151 = arith.addf %52, %150 : vector<20x32xf32>
    %cst_88 = arith.constant dense<0.000000e+00> : vector<20xf32>
    %152 = vector.multi_reduction <add>, %151, %cst_88 [1] : vector<20x32xf32> to vector<20xf32>
    %153 = vector.shape_cast %152 : vector<20xf32> to vector<20x1xf32>
    %cst_89 = arith.constant 3.200000e+01 : f32
    %154 = vector.broadcast %cst_89 : f32 to vector<20x1xf32>
    %155 = arith.divf %153, %154 : vector<20x1xf32>
    %156 = vector.broadcast %155 : vector<20x1xf32> to vector<20x32xf32>
    %157 = arith.subf %151, %156 : vector<20x32xf32>
    %158 = arith.mulf %157, %157 : vector<20x32xf32>
    %cst_90 = arith.constant dense<0.000000e+00> : vector<20xf32>
    %159 = vector.multi_reduction <add>, %158, %cst_90 [1] : vector<20x32xf32> to vector<20xf32>
    %160 = vector.shape_cast %159 : vector<20xf32> to vector<20x1xf32>
    %cst_91 = arith.constant 3.200000e+01 : f32
    %161 = vector.broadcast %cst_91 : f32 to vector<20x1xf32>
    %162 = arith.divf %160, %161 : vector<20x1xf32>
    %163 = vector.broadcast %155 : vector<20x1xf32> to vector<20x32xf32>
    %164 = arith.subf %151, %163 : vector<20x32xf32>
    %cst_92 = arith.constant 9.99999974E-6 : f32
    %165 = vector.broadcast %cst_92 : f32 to vector<20x1xf32>
    %166 = arith.addf %162, %165 : vector<20x1xf32>
    %167 = math.rsqrt %166 : vector<20x1xf32>
    %168 = vector.broadcast %167 : vector<20x1xf32> to vector<20x32xf32>
    %169 = arith.mulf %164, %168 : vector<20x32xf32>
    %170 = vector.broadcast %57 : vector<1x32xf32> to vector<20x32xf32>
    %171 = arith.mulf %169, %170 : vector<20x32xf32>
    %172 = vector.broadcast %58 : vector<1x32xf32> to vector<20x32xf32>
    %173 = arith.addf %171, %172 : vector<20x32xf32>
    %cst_93 = arith.constant dense<0.000000e+00> : vector<20x128xf32>
    %174 = tpu.matmul %173, %59, %cst_93 {dimension_numbers = #tpu.dot_dimension_numbers<[1], [0], [0], [1], [0, 0, 1, 1], [], []>} : vector<20x32xf32>, vector<32x128xf32>, vector<20x128xf32> -> vector<20x128xf32>
    %175 = vector.broadcast %60 : vector<1x128xf32> to vector<20x128xf32>
    %176 = arith.addf %174, %175 : vector<20x128xf32>
    %cst_94 = arith.constant 0.000000e+00 : f32
    %177 = vector.broadcast %cst_94 : f32 to vector<20x128xf32>
    %178 = arith.maximumf %176, %177 : vector<20x128xf32>
    %cst_95 = arith.constant dense<0.000000e+00> : vector<20x32xf32>
    %179 = tpu.matmul %178, %61, %cst_95 {dimension_numbers = #tpu.dot_dimension_numbers<[1], [0], [0], [1], [0, 0, 1, 1], [], []>} : vector<20x128xf32>, vector<128x32xf32>, vector<20x32xf32> -> vector<20x32xf32>
    %180 = vector.broadcast %62 : vector<1x32xf32> to vector<20x32xf32>
    %181 = arith.addf %179, %180 : vector<20x32xf32>
    %182 = arith.addf %173, %181 : vector<20x32xf32>
    %cst_96 = arith.constant dense<0.000000e+00> : vector<20xf32>
    %183 = vector.multi_reduction <add>, %182, %cst_96 [1] : vector<20x32xf32> to vector<20xf32>
    %184 = vector.shape_cast %183 : vector<20xf32> to vector<20x1xf32>
    %cst_97 = arith.constant 3.200000e+01 : f32
    %185 = vector.broadcast %cst_97 : f32 to vector<20x1xf32>
    %186 = arith.divf %184, %185 : vector<20x1xf32>
    %187 = vector.broadcast %186 : vector<20x1xf32> to vector<20x32xf32>
    %188 = arith.subf %182, %187 : vector<20x32xf32>
    %189 = arith.mulf %188, %188 : vector<20x32xf32>
    %cst_98 = arith.constant dense<0.000000e+00> : vector<20xf32>
    %190 = vector.multi_reduction <add>, %189, %cst_98 [1] : vector<20x32xf32> to vector<20xf32>
    %191 = vector.shape_cast %190 : vector<20xf32> to vector<20x1xf32>
    %cst_99 = arith.constant 3.200000e+01 : f32
    %192 = vector.broadcast %cst_99 : f32 to vector<20x1xf32>
    %193 = arith.divf %191, %192 : vector<20x1xf32>
    %194 = vector.broadcast %186 : vector<20x1xf32> to vector<20x32xf32>
    %195 = arith.subf %182, %194 : vector<20x32xf32>
    %cst_100 = arith.constant 9.99999974E-6 : f32
    %196 = vector.broadcast %cst_100 : f32 to vector<20x1xf32>
    %197 = arith.addf %193, %196 : vector<20x1xf32>
    %198 = math.rsqrt %197 : vector<20x1xf32>
    %199 = vector.broadcast %198 : vector<20x1xf32> to vector<20x32xf32>
    %200 = arith.mulf %195, %199 : vector<20x32xf32>
    %201 = vector.broadcast %63 : vector<1x32xf32> to vector<20x32xf32>
    %202 = arith.mulf %200, %201 : vector<20x32xf32>
    %203 = vector.broadcast %64 : vector<1x32xf32> to vector<20x32xf32>
    %204 = arith.addf %202, %203 : vector<20x32xf32>
    %c0_101 = arith.constant 0 : index
    %c0_102 = arith.constant 0 : index
    %205 = vector.load %arg20[%c0_101, %c0_102] : memref<32x96xf32, #tpu.memory_space<vmem>>, vector<32x96xf32>
    %c0_103 = arith.constant 0 : index
    %c0_104 = arith.constant 0 : index
    %206 = vector.load %arg21[%c0_103, %c0_104] : memref<1x96xf32, #tpu.memory_space<vmem>>, vector<1x96xf32>
    %c0_105 = arith.constant 0 : index
    %c0_106 = arith.constant 0 : index
    %207 = vector.load %arg22[%c0_105, %c0_106] : memref<32x32xf32, #tpu.memory_space<vmem>>, vector<32x32xf32>
    %c0_107 = arith.constant 0 : index
    %c0_108 = arith.constant 0 : index
    %208 = vector.load %arg23[%c0_107, %c0_108] : memref<1x32xf32, #tpu.memory_space<vmem>>, vector<1x32xf32>
    %c0_109 = arith.constant 0 : index
    %c0_110 = arith.constant 0 : index
    %209 = vector.load %arg24[%c0_109, %c0_110] : memref<1x32xf32, #tpu.memory_space<vmem>>, vector<1x32xf32>
    %c0_111 = arith.constant 0 : index
    %c0_112 = arith.constant 0 : index
    %210 = vector.load %arg25[%c0_111, %c0_112] : memref<1x32xf32, #tpu.memory_space<vmem>>, vector<1x32xf32>
    %c0_113 = arith.constant 0 : index
    %c0_114 = arith.constant 0 : index
    %211 = vector.load %arg26[%c0_113, %c0_114] : memref<32x128xf32, #tpu.memory_space<vmem>>, vector<32x128xf32>
    %c0_115 = arith.constant 0 : index
    %c0_116 = arith.constant 0 : index
    %212 = vector.load %arg27[%c0_115, %c0_116] : memref<1x128xf32, #tpu.memory_space<vmem>>, vector<1x128xf32>
    %c0_117 = arith.constant 0 : index
    %c0_118 = arith.constant 0 : index
    %213 = vector.load %arg28[%c0_117, %c0_118] : memref<128x32xf32, #tpu.memory_space<vmem>>, vector<128x32xf32>
    %c0_119 = arith.constant 0 : index
    %c0_120 = arith.constant 0 : index
    %214 = vector.load %arg29[%c0_119, %c0_120] : memref<1x32xf32, #tpu.memory_space<vmem>>, vector<1x32xf32>
    %c0_121 = arith.constant 0 : index
    %c0_122 = arith.constant 0 : index
    %215 = vector.load %arg30[%c0_121, %c0_122] : memref<1x32xf32, #tpu.memory_space<vmem>>, vector<1x32xf32>
    %c0_123 = arith.constant 0 : index
    %c0_124 = arith.constant 0 : index
    %216 = vector.load %arg31[%c0_123, %c0_124] : memref<1x32xf32, #tpu.memory_space<vmem>>, vector<1x32xf32>
    %cst_125 = arith.constant dense<0.000000e+00> : vector<20x96xf32>
    %217 = tpu.matmul %204, %205, %cst_125 {dimension_numbers = #tpu.dot_dimension_numbers<[1], [0], [0], [1], [0, 0, 1, 1], [], []>} : vector<20x32xf32>, vector<32x96xf32>, vector<20x96xf32> -> vector<20x96xf32>
    %218 = vector.broadcast %206 : vector<1x96xf32> to vector<20x96xf32>
    %219 = arith.addf %217, %218 : vector<20x96xf32>
    %220 = vector.extract_strided_slice %219 {offsets = [0, 0], sizes = [20, 32], strides = [1, 1]} : vector<20x96xf32> to vector<20x32xf32>
    %221 = vector.extract_strided_slice %219 {offsets = [0, 32], sizes = [20, 32], strides = [1, 1]} : vector<20x96xf32> to vector<20x32xf32>
    %222 = vector.extract_strided_slice %219 {offsets = [0, 64], sizes = [20, 32], strides = [1, 1]} : vector<20x96xf32> to vector<20x32xf32>
    %223 = vector.extract_strided_slice %220 {offsets = [0, 0], sizes = [20, 8], strides = [1, 1]} : vector<20x32xf32> to vector<20x8xf32>
    %224 = vector.extract_strided_slice %221 {offsets = [0, 0], sizes = [20, 8], strides = [1, 1]} : vector<20x32xf32> to vector<20x8xf32>
    %225 = vector.extract_strided_slice %222 {offsets = [0, 0], sizes = [20, 8], strides = [1, 1]} : vector<20x32xf32> to vector<20x8xf32>
    %cst_126 = arith.constant dense<0.000000e+00> : vector<20x20xf32>
    %226 = tpu.matmul %223, %224, %cst_126 {dimension_numbers = #tpu.dot_dimension_numbers<[1], [1], [0], [0], [0, 0, 1, 0], [], []>} : vector<20x8xf32>, vector<20x8xf32>, vector<20x20xf32> -> vector<20x20xf32>
    %cst_127 = arith.constant 0.353553385 : f32
    %227 = vector.broadcast %cst_127 : f32 to vector<20x20xf32>
    %228 = arith.mulf %226, %227 : vector<20x20xf32>
    %cst_128 = arith.constant dense<0xFF800000> : vector<20xf32>
    %229 = vector.multi_reduction <maximumf>, %228, %cst_128 [1] : vector<20x20xf32> to vector<20xf32>
    %cst_129 = arith.constant 0xFF800000 : f32
    %230 = vector.broadcast %cst_129 : f32 to vector<20xf32>
    %231 = arith.maximumf %230, %229 : vector<20xf32>
    %232 = vector.shape_cast %231 : vector<20xf32> to vector<20x1xf32>
    %233 = vector.broadcast %232 : vector<20x1xf32> to vector<20x20xf32>
    %234 = arith.subf %228, %233 : vector<20x20xf32>
    %235 = math.exp %234 : vector<20x20xf32>
    %cst_130 = arith.constant dense<0.000000e+00> : vector<20xf32>
    %236 = vector.multi_reduction <add>, %235, %cst_130 [1] : vector<20x20xf32> to vector<20xf32>
    %237 = vector.shape_cast %236 : vector<20xf32> to vector<20x1xf32>
    %238 = vector.broadcast %237 : vector<20x1xf32> to vector<20x20xf32>
    %239 = arith.divf %235, %238 : vector<20x20xf32>
    %cst_131 = arith.constant dense<0.000000e+00> : vector<20x8xf32>
    %240 = tpu.matmul %239, %225, %cst_131 {dimension_numbers = #tpu.dot_dimension_numbers<[1], [0], [0], [1], [0, 0, 1, 1], [], []>} : vector<20x20xf32>, vector<20x8xf32>, vector<20x8xf32> -> vector<20x8xf32>
    %c0_132 = arith.constant 0 : index
    %c0_133 = arith.constant 0 : index
    %241 = vector.load %arg36[%c0_132, %c0_133] : memref<20x32xf32, #tpu.memory_space<vmem>>, vector<20x8xf32>
    tpu.vector_store %arg36[%c0_132, %c0_133], %240 {strides = array<i32>} : memref<20x32xf32, #tpu.memory_space<vmem>>, vector<20x8xf32>,
    %242 = vector.extract_strided_slice %220 {offsets = [0, 8], sizes = [20, 8], strides = [1, 1]} : vector<20x32xf32> to vector<20x8xf32>
    %243 = vector.extract_strided_slice %221 {offsets = [0, 8], sizes = [20, 8], strides = [1, 1]} : vector<20x32xf32> to vector<20x8xf32>
    %244 = vector.extract_strided_slice %222 {offsets = [0, 8], sizes = [20, 8], strides = [1, 1]} : vector<20x32xf32> to vector<20x8xf32>
    %cst_134 = arith.constant dense<0.000000e+00> : vector<20x20xf32>
    %245 = tpu.matmul %242, %243, %cst_134 {dimension_numbers = #tpu.dot_dimension_numbers<[1], [1], [0], [0], [0, 0, 1, 0], [], []>} : vector<20x8xf32>, vector<20x8xf32>, vector<20x20xf32> -> vector<20x20xf32>
    %cst_135 = arith.constant 0.353553385 : f32
    %246 = vector.broadcast %cst_135 : f32 to vector<20x20xf32>
    %247 = arith.mulf %245, %246 : vector<20x20xf32>
    %cst_136 = arith.constant dense<0xFF800000> : vector<20xf32>
    %248 = vector.multi_reduction <maximumf>, %247, %cst_136 [1] : vector<20x20xf32> to vector<20xf32>
    %cst_137 = arith.constant 0xFF800000 : f32
    %249 = vector.broadcast %cst_137 : f32 to vector<20xf32>
    %250 = arith.maximumf %249, %248 : vector<20xf32>
    %251 = vector.shape_cast %250 : vector<20xf32> to vector<20x1xf32>
    %252 = vector.broadcast %251 : vector<20x1xf32> to vector<20x20xf32>
    %253 = arith.subf %247, %252 : vector<20x20xf32>
    %254 = math.exp %253 : vector<20x20xf32>
    %cst_138 = arith.constant dense<0.000000e+00> : vector<20xf32>
    %255 = vector.multi_reduction <add>, %254, %cst_138 [1] : vector<20x20xf32> to vector<20xf32>
    %256 = vector.shape_cast %255 : vector<20xf32> to vector<20x1xf32>
    %257 = vector.broadcast %256 : vector<20x1xf32> to vector<20x20xf32>
    %258 = arith.divf %254, %257 : vector<20x20xf32>
    %cst_139 = arith.constant dense<0.000000e+00> : vector<20x8xf32>
    %259 = tpu.matmul %258, %244, %cst_139 {dimension_numbers = #tpu.dot_dimension_numbers<[1], [0], [0], [1], [0, 0, 1, 1], [], []>} : vector<20x20xf32>, vector<20x8xf32>, vector<20x8xf32> -> vector<20x8xf32>
    %c0_140 = arith.constant 0 : index
    %c8_141 = arith.constant 8 : index
    %260 = vector.load %arg36[%c0_140, %c8_141] : memref<20x32xf32, #tpu.memory_space<vmem>>, vector<20x8xf32>
    tpu.vector_store %arg36[%c0_140, %c8_141], %259 {strides = array<i32>} : memref<20x32xf32, #tpu.memory_space<vmem>>, vector<20x8xf32>,
    %261 = vector.extract_strided_slice %220 {offsets = [0, 16], sizes = [20, 8], strides = [1, 1]} : vector<20x32xf32> to vector<20x8xf32>
    %262 = vector.extract_strided_slice %221 {offsets = [0, 16], sizes = [20, 8], strides = [1, 1]} : vector<20x32xf32> to vector<20x8xf32>
    %263 = vector.extract_strided_slice %222 {offsets = [0, 16], sizes = [20, 8], strides = [1, 1]} : vector<20x32xf32> to vector<20x8xf32>
    %cst_142 = arith.constant dense<0.000000e+00> : vector<20x20xf32>
    %264 = tpu.matmul %261, %262, %cst_142 {dimension_numbers = #tpu.dot_dimension_numbers<[1], [1], [0], [0], [0, 0, 1, 0], [], []>} : vector<20x8xf32>, vector<20x8xf32>, vector<20x20xf32> -> vector<20x20xf32>
    %cst_143 = arith.constant 0.353553385 : f32
    %265 = vector.broadcast %cst_143 : f32 to vector<20x20xf32>
    %266 = arith.mulf %264, %265 : vector<20x20xf32>
    %cst_144 = arith.constant dense<0xFF800000> : vector<20xf32>
    %267 = vector.multi_reduction <maximumf>, %266, %cst_144 [1] : vector<20x20xf32> to vector<20xf32>
    %cst_145 = arith.constant 0xFF800000 : f32
    %268 = vector.broadcast %cst_145 : f32 to vector<20xf32>
    %269 = arith.maximumf %268, %267 : vector<20xf32>
    %270 = vector.shape_cast %269 : vector<20xf32> to vector<20x1xf32>
    %271 = vector.broadcast %270 : vector<20x1xf32> to vector<20x20xf32>
    %272 = arith.subf %266, %271 : vector<20x20xf32>
    %273 = math.exp %272 : vector<20x20xf32>
    %cst_146 = arith.constant dense<0.000000e+00> : vector<20xf32>
    %274 = vector.multi_reduction <add>, %273, %cst_146 [1] : vector<20x20xf32> to vector<20xf32>
    %275 = vector.shape_cast %274 : vector<20xf32> to vector<20x1xf32>
    %276 = vector.broadcast %275 : vector<20x1xf32> to vector<20x20xf32>
    %277 = arith.divf %273, %276 : vector<20x20xf32>
    %cst_147 = arith.constant dense<0.000000e+00> : vector<20x8xf32>
    %278 = tpu.matmul %277, %263, %cst_147 {dimension_numbers = #tpu.dot_dimension_numbers<[1], [0], [0], [1], [0, 0, 1, 1], [], []>} : vector<20x20xf32>, vector<20x8xf32>, vector<20x8xf32> -> vector<20x8xf32>
    %c0_148 = arith.constant 0 : index
    %c16_149 = arith.constant 16 : index
    %279 = vector.load %arg36[%c0_148, %c16_149] : memref<20x32xf32, #tpu.memory_space<vmem>>, vector<20x8xf32>
    tpu.vector_store %arg36[%c0_148, %c16_149], %278 {strides = array<i32>} : memref<20x32xf32, #tpu.memory_space<vmem>>, vector<20x8xf32>,
    %280 = vector.extract_strided_slice %220 {offsets = [0, 24], sizes = [20, 8], strides = [1, 1]} : vector<20x32xf32> to vector<20x8xf32>
    %281 = vector.extract_strided_slice %221 {offsets = [0, 24], sizes = [20, 8], strides = [1, 1]} : vector<20x32xf32> to vector<20x8xf32>
    %282 = vector.extract_strided_slice %222 {offsets = [0, 24], sizes = [20, 8], strides = [1, 1]} : vector<20x32xf32> to vector<20x8xf32>
    %cst_150 = arith.constant dense<0.000000e+00> : vector<20x20xf32>
    %283 = tpu.matmul %280, %281, %cst_150 {dimension_numbers = #tpu.dot_dimension_numbers<[1], [1], [0], [0], [0, 0, 1, 0], [], []>} : vector<20x8xf32>, vector<20x8xf32>, vector<20x20xf32> -> vector<20x20xf32>
    %cst_151 = arith.constant 0.353553385 : f32
    %284 = vector.broadcast %cst_151 : f32 to vector<20x20xf32>
    %285 = arith.mulf %283, %284 : vector<20x20xf32>
    %cst_152 = arith.constant dense<0xFF800000> : vector<20xf32>
    %286 = vector.multi_reduction <maximumf>, %285, %cst_152 [1] : vector<20x20xf32> to vector<20xf32>
    %cst_153 = arith.constant 0xFF800000 : f32
    %287 = vector.broadcast %cst_153 : f32 to vector<20xf32>
    %288 = arith.maximumf %287, %286 : vector<20xf32>
    %289 = vector.shape_cast %288 : vector<20xf32> to vector<20x1xf32>
    %290 = vector.broadcast %289 : vector<20x1xf32> to vector<20x20xf32>
    %291 = arith.subf %285, %290 : vector<20x20xf32>
    %292 = math.exp %291 : vector<20x20xf32>
    %cst_154 = arith.constant dense<0.000000e+00> : vector<20xf32>
    %293 = vector.multi_reduction <add>, %292, %cst_154 [1] : vector<20x20xf32> to vector<20xf32>
    %294 = vector.shape_cast %293 : vector<20xf32> to vector<20x1xf32>
    %295 = vector.broadcast %294 : vector<20x1xf32> to vector<20x20xf32>
    %296 = arith.divf %292, %295 : vector<20x20xf32>
    %cst_155 = arith.constant dense<0.000000e+00> : vector<20x8xf32>
    %297 = tpu.matmul %296, %282, %cst_155 {dimension_numbers = #tpu.dot_dimension_numbers<[1], [0], [0], [1], [0, 0, 1, 1], [], []>} : vector<20x20xf32>, vector<20x8xf32>, vector<20x8xf32> -> vector<20x8xf32>
    %c0_156 = arith.constant 0 : index
    %c24_157 = arith.constant 24 : index
    %298 = vector.load %arg36[%c0_156, %c24_157] : memref<20x32xf32, #tpu.memory_space<vmem>>, vector<20x8xf32>
    tpu.vector_store %arg36[%c0_156, %c24_157], %297 {strides = array<i32>} : memref<20x32xf32, #tpu.memory_space<vmem>>, vector<20x8xf32>,
    %c0_158 = arith.constant 0 : index
    %c0_159 = arith.constant 0 : index
    %299 = vector.load %arg36[%c0_158, %c0_159] : memref<20x32xf32, #tpu.memory_space<vmem>>, vector<20x32xf32>
    %cst_160 = arith.constant dense<0.000000e+00> : vector<20x32xf32>
    %300 = tpu.matmul %299, %207, %cst_160 {dimension_numbers = #tpu.dot_dimension_numbers<[1], [0], [0], [1], [0, 0, 1, 1], [], []>} : vector<20x32xf32>, vector<32x32xf32>, vector<20x32xf32> -> vector<20x32xf32>
    %301 = vector.broadcast %208 : vector<1x32xf32> to vector<20x32xf32>
    %302 = arith.addf %300, %301 : vector<20x32xf32>
    %303 = arith.addf %204, %302 : vector<20x32xf32>
    %cst_161 = arith.constant dense<0.000000e+00> : vector<20xf32>
    %304 = vector.multi_reduction <add>, %303, %cst_161 [1] : vector<20x32xf32> to vector<20xf32>
    %305 = vector.shape_cast %304 : vector<20xf32> to vector<20x1xf32>
    %cst_162 = arith.constant 3.200000e+01 : f32
    %306 = vector.broadcast %cst_162 : f32 to vector<20x1xf32>
    %307 = arith.divf %305, %306 : vector<20x1xf32>
    %308 = vector.broadcast %307 : vector<20x1xf32> to vector<20x32xf32>
    %309 = arith.subf %303, %308 : vector<20x32xf32>
    %310 = arith.mulf %309, %309 : vector<20x32xf32>
    %cst_163 = arith.constant dense<0.000000e+00> : vector<20xf32>
    %311 = vector.multi_reduction <add>, %310, %cst_163 [1] : vector<20x32xf32> to vector<20xf32>
    %312 = vector.shape_cast %311 : vector<20xf32> to vector<20x1xf32>
    %cst_164 = arith.constant 3.200000e+01 : f32
    %313 = vector.broadcast %cst_164 : f32 to vector<20x1xf32>
    %314 = arith.divf %312, %313 : vector<20x1xf32>
    %315 = vector.broadcast %307 : vector<20x1xf32> to vector<20x32xf32>
    %316 = arith.subf %303, %315 : vector<20x32xf32>
    %cst_165 = arith.constant 9.99999974E-6 : f32
    %317 = vector.broadcast %cst_165 : f32 to vector<20x1xf32>
    %318 = arith.addf %314, %317 : vector<20x1xf32>
    %319 = math.rsqrt %318 : vector<20x1xf32>
    %320 = vector.broadcast %319 : vector<20x1xf32> to vector<20x32xf32>
    %321 = arith.mulf %316, %320 : vector<20x32xf32>
    %322 = vector.broadcast %209 : vector<1x32xf32> to vector<20x32xf32>
    %323 = arith.mulf %321, %322 : vector<20x32xf32>
    %324 = vector.broadcast %210 : vector<1x32xf32> to vector<20x32xf32>
    %325 = arith.addf %323, %324 : vector<20x32xf32>
    %cst_166 = arith.constant dense<0.000000e+00> : vector<20x128xf32>
    %326 = tpu.matmul %325, %211, %cst_166 {dimension_numbers = #tpu.dot_dimension_numbers<[1], [0], [0], [1], [0, 0, 1, 1], [], []>} : vector<20x32xf32>, vector<32x128xf32>, vector<20x128xf32> -> vector<20x128xf32>
    %327 = vector.broadcast %212 : vector<1x128xf32> to vector<20x128xf32>
    %328 = arith.addf %326, %327 : vector<20x128xf32>
    %cst_167 = arith.constant 0.000000e+00 : f32
    %329 = vector.broadcast %cst_167 : f32 to vector<20x128xf32>
    %330 = arith.maximumf %328, %329 : vector<20x128xf32>
    %cst_168 = arith.constant dense<0.000000e+00> : vector<20x32xf32>
    %331 = tpu.matmul %330, %213, %cst_168 {dimension_numbers = #tpu.dot_dimension_numbers<[1], [0], [0], [1], [0, 0, 1, 1], [], []>} : vector<20x128xf32>, vector<128x32xf32>, vector<20x32xf32> -> vector<20x32xf32>
    %332 = vector.broadcast %214 : vector<1x32xf32> to vector<20x32xf32>
    %333 = arith.addf %331, %332 : vector<20x32xf32>
    %334 = arith.addf %325, %333 : vector<20x32xf32>
    %cst_169 = arith.constant dense<0.000000e+00> : vector<20xf32>
    %335 = vector.multi_reduction <add>, %334, %cst_169 [1] : vector<20x32xf32> to vector<20xf32>
    %336 = vector.shape_cast %335 : vector<20xf32> to vector<20x1xf32>
    %cst_170 = arith.constant 3.200000e+01 : f32
    %337 = vector.broadcast %cst_170 : f32 to vector<20x1xf32>
    %338 = arith.divf %336, %337 : vector<20x1xf32>
    %339 = vector.broadcast %338 : vector<20x1xf32> to vector<20x32xf32>
    %340 = arith.subf %334, %339 : vector<20x32xf32>
    %341 = arith.mulf %340, %340 : vector<20x32xf32>
    %cst_171 = arith.constant dense<0.000000e+00> : vector<20xf32>
    %342 = vector.multi_reduction <add>, %341, %cst_171 [1] : vector<20x32xf32> to vector<20xf32>
    %343 = vector.shape_cast %342 : vector<20xf32> to vector<20x1xf32>
    %cst_172 = arith.constant 3.200000e+01 : f32
    %344 = vector.broadcast %cst_172 : f32 to vector<20x1xf32>
    %345 = arith.divf %343, %344 : vector<20x1xf32>
    %346 = vector.broadcast %338 : vector<20x1xf32> to vector<20x32xf32>
    %347 = arith.subf %334, %346 : vector<20x32xf32>
    %cst_173 = arith.constant 9.99999974E-6 : f32
    %348 = vector.broadcast %cst_173 : f32 to vector<20x1xf32>
    %349 = arith.addf %345, %348 : vector<20x1xf32>
    %350 = math.rsqrt %349 : vector<20x1xf32>
    %351 = vector.broadcast %350 : vector<20x1xf32> to vector<20x32xf32>
    %352 = arith.mulf %347, %351 : vector<20x32xf32>
    %353 = vector.broadcast %215 : vector<1x32xf32> to vector<20x32xf32>
    %354 = arith.mulf %352, %353 : vector<20x32xf32>
    %355 = vector.broadcast %216 : vector<1x32xf32> to vector<20x32xf32>
    %356 = arith.addf %354, %355 : vector<20x32xf32>
    %357 = vector.extract_strided_slice %356 {offsets = [16, 0], sizes = [4, 32], strides = [1, 1]} : vector<20x32xf32> to vector<4x32xf32>
    %c0_174 = arith.constant 0 : index
    %c0_175 = arith.constant 0 : index
    %358 = vector.load %arg32[%c0_174, %c0_175] : memref<32x8xf32, #tpu.memory_space<vmem>>, vector<32x8xf32>
    %cst_176 = arith.constant dense<0.000000e+00> : vector<4x8xf32>
    %359 = tpu.matmul %357, %358, %cst_176 {dimension_numbers = #tpu.dot_dimension_numbers<[1], [0], [0], [1], [0, 0, 1, 1], [], []>} : vector<4x32xf32>, vector<32x8xf32>, vector<4x8xf32> -> vector<4x8xf32>
    %c0_177 = arith.constant 0 : index
    %c0_178 = arith.constant 0 : index
    %360 = vector.load %arg33[%c0_177, %c0_178] : memref<1x8xf32, #tpu.memory_space<vmem>>, vector<1x8xf32>
    %361 = vector.broadcast %360 : vector<1x8xf32> to vector<4x8xf32>
    %362 = arith.addf %359, %361 : vector<4x8xf32>
    %363 = vector.extract_strided_slice %19 {offsets = [16, 0], sizes = [4, 1], strides = [1, 1]} : vector<20x1xf32> to vector<4x1xf32>
    %364 = vector.broadcast %363 : vector<4x1xf32> to vector<4x8xf32>
    %365 = arith.addf %362, %364 : vector<4x8xf32>
    %c0_179 = arith.constant 0 : index
    %c0_180 = arith.constant 0 : index
    %c0_181 = arith.constant 0 : index
    %366 = vector.load %arg34[%c0_179, %c0_180, %c0_181] : memref<1x4x8xf32, #tpu.memory_space<vmem>>, vector<1x4x8xf32>
    %367 = vector.shape_cast %366 : vector<1x4x8xf32> to vector<4x8xf32>
    %368 = vector.shape_cast %365 : vector<4x8xf32> to vector<1x4x8xf32>
    tpu.vector_store %arg34[%c0_179, %c0_180, %c0_181], %368 {strides = array<i32>} : memref<1x4x8xf32, #tpu.memory_space<vmem>>, vector<1x4x8xf32>,
    return
  }
  func.func @transform_0(%arg0: i32) -> (i32, i32, i32) {
    %c0_i32 = arith.constant 0 : i32
    %c0_i32_0 = arith.constant 0 : i32
    %c0_i32_1 = arith.constant 0 : i32
    return %arg0, %c0_i32, %c0_i32_0 : i32, i32, i32
  }
  func.func @transform_1(%arg0: i32) -> (i32, i32) {
    %c0_i32 = arith.constant 0 : i32
    %c0_i32_0 = arith.constant 0 : i32
    %c0_i32_1 = arith.constant 0 : i32
    return %c0_i32, %c0_i32_0 : i32, i32
  }
  func.func @transform_2(%arg0: i32) -> (i32, i32) {
    %c0_i32 = arith.constant 0 : i32
    %c0_i32_0 = arith.constant 0 : i32
    %c0_i32_1 = arith.constant 0 : i32
    return %c0_i32, %c0_i32_0 : i32, i32
  }
  func.func @transform_3(%arg0: i32) -> (i32, i32) {
    %c0_i32 = arith.constant 0 : i32
    %c0_i32_0 = arith.constant 0 : i32
    %c0_i32_1 = arith.constant 0 : i32
    return %c0_i32, %c0_i32_0 : i32, i32
  }
  func.func @transform_4(%arg0: i32) -> (i32, i32) {
    %c0_i32 = arith.constant 0 : i32
    %c0_i32_0 = arith.constant 0 : i32
    %c0_i32_1 = arith.constant 0 : i32
    return %c0_i32, %c0_i32_0 : i32, i32
  }
  func.func @transform_5(%arg0: i32) -> (i32, i32) {
    %c0_i32 = arith.constant 0 : i32
    %c0_i32_0 = arith.constant 0 : i32
    %c0_i32_1 = arith.constant 0 : i32
    return %c0_i32, %c0_i32_0 : i32, i32
  }
  func.func @transform_6(%arg0: i32) -> (i32, i32) {
    %c0_i32 = arith.constant 0 : i32
    %c0_i32_0 = arith.constant 0 : i32
    %c0_i32_1 = arith.constant 0 : i32
    return %c0_i32, %c0_i32_0 : i32, i32
  }
  func.func @transform_7(%arg0: i32) -> (i32, i32) {
    %c0_i32 = arith.constant 0 : i32
    %c0_i32_0 = arith.constant 0 : i32
    %c0_i32_1 = arith.constant 0 : i32
    return %c0_i32, %c0_i32_0 : i32, i32
  }
  func.func @transform_8(%arg0: i32) -> (i32, i32) {
    %c0_i32 = arith.constant 0 : i32
    %c0_i32_0 = arith.constant 0 : i32
    %c0_i32_1 = arith.constant 0 : i32
    return %c0_i32, %c0_i32_0 : i32, i32
  }
  func.func @transform_9(%arg0: i32) -> (i32, i32) {
    %c0_i32 = arith.constant 0 : i32
    %c0_i32_0 = arith.constant 0 : i32
    %c0_i32_1 = arith.constant 0 : i32
    return %c0_i32, %c0_i32_0 : i32, i32
  }
  func.func @transform_10(%arg0: i32) -> (i32, i32) {
    %c0_i32 = arith.constant 0 : i32
    %c0_i32_0 = arith.constant 0 : i32
    %c0_i32_1 = arith.constant 0 : i32
    return %c0_i32, %c0_i32_0 : i32, i32
  }
  func.func @transform_11(%arg0: i32) -> (i32, i32) {
    %c0_i32 = arith.constant 0 : i32
    %c0_i32_0 = arith.constant 0 : i32
    %c0_i32_1 = arith.constant 0 : i32
    return %c0_i32, %c0_i32_0 : i32, i32
  }
  func.func @transform_12(%arg0: i32) -> (i32, i32) {
    %c0_i32 = arith.constant 0 : i32
    %c0_i32_0 = arith.constant 0 : i32
    %c0_i32_1 = arith.constant 0 : i32
    return %c0_i32, %c0_i32_0 : i32, i32
  }
  func.func @transform_13(%arg0: i32) -> (i32, i32) {
    %c0_i32 = arith.constant 0 : i32
    %c0_i32_0 = arith.constant 0 : i32
    %c0_i32_1 = arith.constant 0 : i32
    return %c0_i32, %c0_i32_0 : i32, i32
  }
  func.func @transform_14(%arg0: i32) -> (i32, i32) {
    %c0_i32 = arith.constant 0 : i32
    %c0_i32_0 = arith.constant 0 : i32
    %c0_i32_1 = arith.constant 0 : i32
    return %c0_i32, %c0_i32_0 : i32, i32
  }
  func.func @transform_15(%arg0: i32) -> (i32, i32) {
    %c0_i32 = arith.constant 0 : i32
    %c0_i32_0 = arith.constant 0 : i32
    %c0_i32_1 = arith.constant 0 : i32
    return %c0_i32, %c0_i32_0 : i32, i32
  }
  func.func @transform_16(%arg0: i32) -> (i32, i32) {
    %c0_i32 = arith.constant 0 : i32
    %c0_i32_0 = arith.constant 0 : i32
    %c0_i32_1 = arith.constant 0 : i32
    return %c0_i32, %c0_i32_0 : i32, i32
  }
  func.func @transform_17(%arg0: i32) -> (i32, i32) {
    %c0_i32 = arith.constant 0 : i32
    %c0_i32_0 = arith.constant 0 : i32
    %c0_i32_1 = arith.constant 0 : i32
    return %c0_i32, %c0_i32_0 : i32, i32
  }
  func.func @transform_18(%arg0: i32) -> (i32, i32) {
    %c0_i32 = arith.constant 0 : i32
    %c0_i32_0 = arith.constant 0 : i32
    %c0_i32_1 = arith.constant 0 : i32
    return %c0_i32, %c0_i32_0 : i32, i32
  }
  func.func @transform_19(%arg0: i32) -> (i32, i32) {
    %c0_i32 = arith.constant 0 : i32
    %c0_i32_0 = arith.constant 0 : i32
    %c0_i32_1 = arith.constant 0 : i32
    return %c0_i32, %c0_i32_0 : i32, i32
  }
  func.func @transform_20(%arg0: i32) -> (i32, i32) {
    %c0_i32 = arith.constant 0 : i32
    %c0_i32_0 = arith.constant 0 : i32
    %c0_i32_1 = arith.constant 0 : i32
    return %c0_i32, %c0_i32_0 : i32, i32
  }
  func.func @transform_21(%arg0: i32) -> (i32, i32) {
    %c0_i32 = arith.constant 0 : i32
    %c0_i32_0 = arith.constant 0 : i32
    %c0_i32_1 = arith.constant 0 : i32
    return %c0_i32, %c0_i32_0 : i32, i32
  }
  func.func @transform_22(%arg0: i32) -> (i32, i32) {
    %c0_i32 = arith.constant 0 : i32
    %c0_i32_0 = arith.constant 0 : i32
    %c0_i32_1 = arith.constant 0 : i32
    return %c0_i32, %c0_i32_0 : i32, i32
  }
  func.func @transform_23(%arg0: i32) -> (i32, i32) {
    %c0_i32 = arith.constant 0 : i32
    %c0_i32_0 = arith.constant 0 : i32
    %c0_i32_1 = arith.constant 0 : i32
    return %c0_i32, %c0_i32_0 : i32, i32
  }
  func.func @transform_24(%arg0: i32) -> (i32, i32) {
    %c0_i32 = arith.constant 0 : i32
    %c0_i32_0 = arith.constant 0 : i32
    %c0_i32_1 = arith.constant 0 : i32
    return %c0_i32, %c0_i32_0 : i32, i32
  }
  func.func @transform_25(%arg0: i32) -> (i32, i32) {
    %c0_i32 = arith.constant 0 : i32
    %c0_i32_0 = arith.constant 0 : i32
    %c0_i32_1 = arith.constant 0 : i32
    return %c0_i32, %c0_i32_0 : i32, i32
  }
  func.func @transform_26(%arg0: i32) -> (i32, i32) {
    %c0_i32 = arith.constant 0 : i32
    %c0_i32_0 = arith.constant 0 : i32
    %c0_i32_1 = arith.constant 0 : i32
    return %c0_i32, %c0_i32_0 : i32, i32
  }
  func.func @transform_27(%arg0: i32) -> (i32, i32) {
    %c0_i32 = arith.constant 0 : i32
    %c0_i32_0 = arith.constant 0 : i32
    %c0_i32_1 = arith.constant 0 : i32
    return %c0_i32, %c0_i32_0 : i32, i32
  }
  func.func @transform_28(%arg0: i32) -> (i32, i32) {
    %c0_i32 = arith.constant 0 : i32
    %c0_i32_0 = arith.constant 0 : i32
    %c0_i32_1 = arith.constant 0 : i32
    return %c0_i32, %c0_i32_0 : i32, i32
  }
  func.func @transform_29(%arg0: i32) -> (i32, i32) {
    %c0_i32 = arith.constant 0 : i32
    %c0_i32_0 = arith.constant 0 : i32
    %c0_i32_1 = arith.constant 0 : i32
    return %c0_i32, %c0_i32_0 : i32, i32
  }
  func.func @transform_30(%arg0: i32) -> (i32, i32) {
    %c0_i32 = arith.constant 0 : i32
    %c0_i32_0 = arith.constant 0 : i32
    %c0_i32_1 = arith.constant 0 : i32
    return %c0_i32, %c0_i32_0 : i32, i32
  }
  func.func @transform_31(%arg0: i32) -> (i32, i32) {
    %c0_i32 = arith.constant 0 : i32
    %c0_i32_0 = arith.constant 0 : i32
    %c0_i32_1 = arith.constant 0 : i32
    return %c0_i32, %c0_i32_0 : i32, i32
  }
  func.func @transform_32(%arg0: i32) -> (i32, i32) {
    %c0_i32 = arith.constant 0 : i32
    %c0_i32_0 = arith.constant 0 : i32
    %c0_i32_1 = arith.constant 0 : i32
    return %c0_i32, %c0_i32_0 : i32, i32
  }
  func.func @transform_33(%arg0: i32) -> (i32, i32, i32) {
    %c0_i32 = arith.constant 0 : i32
    %c0_i32_0 = arith.constant 0 : i32
    %c0_i32_1 = arith.constant 0 : i32
    return %arg0, %c0_i32, %c0_i32_0 : i32, i32, i32
  }
}

</mosaic_0001>

<bundles_post_ra>
// kernel: model_forward.1
= control target key start
LH: loop header
LB: loop body
LE: loop exit
PB: predicated region body
PF: predicated region fallthrough
CT: control target
= control target key end

     0   :  { %s5521_s6 = smov 1   ;;  %s5522_s10 = smov 2   ;;  %s6815_s0 = inlined_call_operand.smem [shape: u32[34], index: -1, kind: input, shape index: {}] }
   0x1   :  { %s5581_s5 = sld [smem:[%s6815_s0]]   ;;  %s5523_s14 = smov 3  }
   0x2   :  { %s5586_s9 = sld [smem:[%s6815_s0 + %s5521_s6]]   ;;  %s5524_s18 = smov 4  }
   0x3   :  { %s5591_s13 = sld [smem:[%s6815_s0 + %s5522_s10]]   ;;  %s5525_s22 = smov 5  }
   0x4   :  { %s5596_s17 = sld [smem:[%s6815_s0 + %s5523_s14]]   ;;  %s5526_s26 = smov 6  }
   0x5   :  { %s5601_s21 = sld [smem:[%s6815_s0 + %s5524_s18]]   ;;  %s5527_s30 = smov 7  }
   0x6   :  { %s5606_s25 = sld [smem:[%s6815_s0 + %s5525_s22]]   ;;  %s5528_s4 = smov 8  }
   0x7   :  { %6851 = sst [smem:[#allocation7_spill]] %s5581_s5  ;;  %s5529_s10 = smov 9  }
   0x8   :  { %6852 = sst [smem:[#allocation8_spill]] %s5586_s9  ;;  %s5530_s15 = smov 10  }
   0x9   :  { %6853 = sst [smem:[#allocation9_spill]] %s5591_s13  ;;  %s5531_s20 = smov 11  }
   0xa   :  { %s5611_s29 = sld [smem:[%s6815_s0 + %s5526_s26]]   ;;  %s5532_s26 = smov 12  }
   0xb   :  { %s5616_s3 = sld [smem:[%s6815_s0 + %s5527_s30]]   ;;  %s5533_s1 = smov 13  }
   0xc   :  { %s5621_s8 = sld [smem:[%s6815_s0 + %s5528_s4]]   ;;  %s5534_s7 = smov 14  }
   0xd   :  { %s5626_s14 = sld [smem:[%s6815_s0 + %s5529_s10]]   ;;  %s5536_s22 = smov 16  }
   0xe   :  { %s5631_s19 = sld [smem:[%s6815_s0 + %s5530_s15]]   ;;  %s5535_s15 = smov 15  }
   0xf   :  { %s5636_s24 = sld [smem:[%s6815_s0 + %s5531_s20]]   ;;  %s5537_s28 = smov 17  }
  0x10   :  { %s5641_s30 = sld [smem:[%s6815_s0 + %s5532_s26]]  }
  0x11   :  { %6854 = sst [smem:[#allocation10_spill]] %s5616_s3 }
  0x12   :  { %6855 = sst [smem:[#allocation11_spill]] %s5621_s8 }
  0x13   :  { %6856 = sst [smem:[#allocation12_spill]] %s5626_s14 }
  0x14   :  { %s5646_s6 = sld [smem:[%s6815_s0 + %s5533_s1]]  }
  0x15   :  { %s5651_s12 = sld [smem:[%s6815_s0 + %s5534_s7]]   ;;  %s5538_s7 = smov 18  }
  0x16   :  { %6857 = sst [smem:[#allocation13_spill]] %s5641_s30 }
  0x17   :  { %s5656_s20 = sld [smem:[%s6815_s0 + %s5535_s15]]   ;;  %s5539_s15 = smov 19  }
  0x18   :  { %s5661_s27 = sld [smem:[%s6815_s0 + %s5536_s22]]   ;;  %s5540_s22 = smov 20  }
  0x19   :  { %s5666_s4 = sld [smem:[%s6815_s0 + %s5537_s28]]   ;;  %s5541_s28 = smov 21  }
  0x1a   :  { %6858 = sst [smem:[#allocation14_spill]] %s5646_s6 }
  0x1b   :  { %6859 = sst [smem:[#allocation15_spill]] %s5651_s12 }
  0x1c   :  { %s5671_s12 = sld [smem:[%s6815_s0 + %s5538_s7]]   ;;  %s5542_s7 = smov 22  }
  0x1d   :  { %s5676_s30 = sld [smem:[%s6815_s0 + %s5539_s15]]   ;;  %s5543_s15 = smov 23  }
  0x1e   :  { %6860 = sst [smem:[#allocation16_spill]] %s5661_s27 }
  0x1f   :  { %6861 = sst [smem:[#allocation17_spill]] %s5666_s4 }
  0x20   :  { %s5681_s27 = sld [smem:[%s6815_s0 + %s5540_s22]]   ;;  %s5544_s22 = smov 24  }
  0x21   :  { %s5686_s4 = sld [smem:[%s6815_s0 + %s5541_s28]]   ;;  %s5545_s28 = smov 25  }
  0x22   :  { %6862 = sst [smem:[#allocation18_spill]] %s5671_s12 }
  0x23   :  { %6863 = sst [smem:[#allocation19_spill]] %s5676_s30 }
  0x24   :  { %s5691_s12 = sld [smem:[%s6815_s0 + %s5542_s7]]   ;;  %s5546_s7 = smov 26  }
  0x25   :  { %s5696_s30 = sld [smem:[%s6815_s0 + %s5543_s15]]   ;;  %s5547_s15 = smov 27  }
  0x26   :  { %6864 = sst [smem:[#allocation20_spill]] %s5681_s27 }
  0x27   :  { %6865 = sst [smem:[#allocation21_spill]] %s5686_s4 }
  0x28   :  { %s5701_s27 = sld [smem:[%s6815_s0 + %s5544_s22]]   ;;  %s5548_s22 = smov 28  }
  0x29   :  { %s5706_s4 = sld [smem:[%s6815_s0 + %s5545_s28]]   ;;  %s5549_s28 = smov 29  }
  0x2a   :  { %6866 = sst [smem:[#allocation22_spill]] %s5691_s12 }
  0x2b   :  { %6867 = sst [smem:[#allocation23_spill]] %s5696_s30 }
  0x2c   :  { %s5711_s12 = sld [smem:[%s6815_s0 + %s5546_s7]]   ;;  %s5550_s7 = smov 30  }
  0x2d   :  { %s5716_s30 = sld [smem:[%s6815_s0 + %s5547_s15]]   ;;  %s5551_s15 = smov 31  }
  0x2e   :  { %6868 = sst [smem:[#allocation24_spill]] %s5701_s27 }
  0x2f   :  { %6869 = sst [smem:[#allocation25_spill]] %s5706_s4 }
  0x30   :  { %s5721_s27 = sld [smem:[%s6815_s0 + %s5548_s22]]   ;;  %s5552_s22 = smov 32  }
  0x31   :  { %s5726_s4 = sld [smem:[%s6815_s0 + %s5549_s28]]   ;;  %s5553_s28 = smov 33  }
  0x32   :  { %6870 = sst [smem:[#allocation26_spill]] %s5711_s12 }
  0x33   :  { %6871 = sst [smem:[#allocation27_spill]] %s5716_s30 }
  0x34   :  { %s5731_s12 = sld [smem:[%s6815_s0 + %s5550_s7]]  }
  0x35   :  { %s5736_s30 = sld [smem:[%s6815_s0 + %s5551_s15]]  }
  0x36   :  { %6872 = sst [smem:[#allocation28_spill]] %s5721_s27 }
  0x37   :  { %6873 = sst [smem:[#allocation29_spill]] %s5726_s4 }
  0x38   :  { %s5741_s27 = sld [smem:[%s6815_s0 + %s5552_s22]]  }
  0x39   :  { %s5746_s4 = sld [smem:[%s6815_s0 + %s5553_s28]]  }
  0x3a   :  { %6874 = sst [smem:[#allocation30_spill]] %s5731_s12 }
  0x3b   :  { %72 = vsyncpa [#allocation5], 0 }
  0x3c   :  { %74 = vsyncpa [#allocation5 + $0x1], 0  ;;  %s5748_s7 = smov 0   ;;  %s5750_s10 = smov 0  }
  0x3d   :  { %s5752_s11 = smov 0   ;;  %s5754_s15 = smov 0  }
  0x3e LB: > { %s6875_s14 = sld [smem:[#allocation12_spill]]  ;;  %s5769_s0 = sadd.s32 4294967295, %s5519_s15   ;;  %s5519_s15 = sphi %s5754_s15, %s6920_s15   ;;  %s5515_s11 = sphi %s5752_s11, %s6917_s11   ;;  %s5511_s10 = sphi %s5750_s10, %s6919_s10   ;;  %s5507_s7 = sphi %s5748_s7, %s6918_s7  }
  0x3f   : > { %s6876_s13 = sld [smem:[#allocation9_spill]]  ;;  %s4474_s16 = sadd.s32 4294967294, %s5519_s15  }
  0x40   : > { %s6877_s6 = sld [smem:[#allocation14_spill]]  ;;  %s5773_s18 = sadd.s32 1, %s5519_s15  }
  0x41   : > { %s6878_s3 = sld [smem:[#allocation10_spill]]  ;;  %s785_s22 = sadd.s32 1, %s5515_s11 }
  0x42   : > { %6879 = sst [smem:[#allocation31_spill]] %s5515_s11  ;;  %s782_s23 = ssub.s32 %s5519_s15, %s5773_s18 }
  0x43   : > { %p795_p0 = scmp.ne.s32.totalorder %s5515_s11, %s5511_s10  ;;  %p783_p1 = scmp.eq.s32.totalorder %s782_s23, 0 }
  0x44   : > { %p796_p2 = scmp.eq.s32.totalorder %s5769_s0, 1  ;;  %p801_p3 = scmp.ne.s32.totalorder %s5511_s10, %s5507_s7 }
  0x45   : > { %p802_p4 = scmp.eq.s32.totalorder %s4474_s16, 1  ;;  %p4477_p7 = scmp.ge.s32.totalorder %s5519_s15, 1 }
  0x46   : > { %s5784_s26 = scalar_select %p783_p1, %s5515_s11, %s785_s22  }
  0x47   : > { %p5786_p5 = por %p796_p2, %p795_p0  ;;  %p5790_p6 = por %p802_p4, %p801_p3 }
  0x48   : > { %6880 = sst [smem:[#allocation32_spill]] %s5784_s26  ;;  %p923_p8 = scmp.lt.s32.totalorder %s5519_s15, 3 }
  0x4a   : > { %p924_p9 = pnand %p4477_p7, %p923_p8 }
  0x4b   : > { %s6883_s5 = sld [smem:[#allocation7_spill]] (!%p924_p9)  ;;  %p1006_p10 = scmp.lt.s32.totalorder (!%p924_p9), %s5769_s0, 1 }
  0x4c   : > { %927 = sbr.rel (%p924_p9) target bundleno = 6058 (0x17aa), region = 152  ;;  %s6825_s23 = smov (!%p924_p9), 112  }
  0x4d   : > { %s6884_s9 = sld [smem:[#allocation8_spill]] (!%p924_p9)  ;;  %s6845_s26 = smov (!%p924_p9), 104  }
  0x4e   : > { %s6821_s11 = smov (!%p924_p9), 120   ;;  %s6885_s8 = sld [smem:[#allocation11_spill]] (!%p924_p9) }
  0x4f   : > { %s6915_s12 = sld [smem:[#allocation30_spill]] (!%p924_p9) }
  0x51   : > { %v5554_v0 = vmov 47   ;;  %s1007_s2 = scalar_select %p1006_p10, %s5769_s0, 1  ;;  %vm1011_vm0 = vcmask 191488   ;;  %v5556_v2 = vmov 15   ;;  %v1072_v8 = vld [vmem:[%s5596_s17 + $0x10] sm:$0xff]  ;;  %v5561_v11 = vmov 0.0  }
  0x52   : > { %5334 = vset.pattern.permute.xlu0 %v5554_v0  ;;  %5336 = vset.pattern.permute.xlu1 %v5556_v2  ;;  %v1071_v12 = vld [vmem:[%s5596_s17 + $0x8] sm:$0xff]  ;;  %vm1029_vm1 = vcmask 125952   ;;  %v1070_v14 = vld [vmem:[%s5596_s17] sm:$0xff]  ;;  %vm5562_vm2 = vmmov 0   ;;  %vm1047_vm3 = vcmask 191616   ;;  %vm1080_vm4 = vcmask 195584  }
  0x53   : > { %s4479_s16 = sshll.u32 %s1007_s2, 2  ;;  %s6823_s2 = smov 96   ;;  %v4480_v5 = vld [vmem:[%s6884_s9] ss:$0 sm:$0xff]  ;;  %4794 = vmatprep.subr.mxu0 %v5561_v11  ;;  %4809 = vmatprep.subr.mxu1 %v5561_v11  ;;  %vm1178_vm5 = vcmask 261120   ;;  %v1171_v31 = vld [vmem:[%s6876_s13 + $0x8] sm:$0xff] }
  0x54   : > { %s1009_s22 = scalar_lea.vmem %s6883_s5, %s4479_s16  ;;  %s6839_s16 = smov 16   ;;  %4795 = vmatpush3.msra.mxu0 %v1072_v8  ;;  %4800 = vmatprep.mubr.msk.f32.mxu0 %vm5562_vm2, %v5561_v11  ;;  %v4481_v24 = vld [vmem:[%s5601_s21] ss:$0 sm:$0xff]  ;;  %v1172_v38 = vld [vmem:[%s6876_s13 + $0x10] sm:$0xf]  ;;  %vm1185_vm6 = vcmask 257024  }
  0x55   : > { %v1010_v1 = vld [vmem:[%s1009_s22] sm:$0xf]  ;;  %4796 = vmatprep.subr.mxu0 %v5561_v11  ;;  %4817 = vmatprep.mubr.msk.f32.mxu1 %vm5562_vm2, %v5561_v11  ;;  %v1241_v53 = vld [vmem:[%s6878_s3 + $0x18] sm:$0xff]  ;;  %v1240_v54 = vld [vmem:[%s6878_s3 + $0x10] sm:$0xff]  ;;  %s6827_s22 = smov 88   ;;  %vm1378_vm7 = vcmask 64512  }
  0x56   : > { %1039 = vperm.xlu0 %5334, %v1010_v1   ;;  %1018 = vrot.lane.b32.xlu1 %v1010_v1, %s6825_s23  ;;  %1012 = vst.msk [vmem:[#allocation2] sm:$0xf] %vm1011_vm0, %v1010_v1  ;;  %v1170_v26 = vld [vmem:[%s6876_s13] sm:$0xff]  ;;  %v1239_v55 = vld [vmem:[%s6878_s3 + $0x8] sm:$0xff]  ;;  %vm1526_vm8 = vcmask 1043456   ;;  %vm1474_vm9 = vcmask 162816  }
  0x57   : > { %4797 = vmatpush3.msra.mxu0 %v1071_v12  ;;  %4810 = vmatpush3.msra.mxu1 %v1241_v53  ;;  %v1238_v56 = vld [vmem:[%s6878_s3] sm:$0xff]  ;;  %vm1481_vm10 = vcmask 158720   ;;  %vm1611_vm11 = vcmask 60416   ;;  %vm1864_vm12 = vcmask 130112   ;;  %vm2120_vm13 = vcmask 195712   ;;  %s4604_s5 = sshll.u32 %s5769_s0, 6 }
  0x58   : > { %4798 = vmatprep.subr.mxu0 %v5561_v11  ;;  %4811 = vmatprep.subr.mxu1 %v5561_v11  ;;  %vm2375_vm14 = vcmask 261312   ;;  %vm1867_vm15 = vcmask 126016   ;;  %s5572_s13 = smov [#allocation4]  }
  0x59   : > { %4799 = vmatpush3.msra.mxu0 %v1070_v14  ;;  %4812 = vmatpush3.msra.mxu1 %v1240_v54 }
  0x5a   : > { %1022 = vrot.lane.b32.xlu1 %v1010_v1, %s6845_s26  ;;  %1014 = vrot.lane.b32.xlu0 %v1010_v1, %s6821_s11 }
  0x5b   : > { %5335 = vset.pattern.permute.xlu0 %v5556_v2  ;;  %4856 = vmatprep.subr.mxu0 %v5561_v11 }
  0x5c   : > { %4813 = vmatprep.subr.mxu1 %v5561_v11 }
  0x5d   : > { %4814 = vmatpush3.msra.mxu1 %v1239_v55 }
  0x5e   : > { %1026 = vrot.lane.b32.xlu0 %v1010_v1, %s6823_s2  ;;  %4815 = vmatprep.subr.mxu1 %v5561_v11 }
  0x5f   : > { %4816 = vmatpush3.msra.mxu1 %v1238_v56 }
  0x60   : > { %4826 = vmatprep.subr.mxu1 %v5561_v11 }
  0xc8   : > { %v1019_v3 = vpop.permute.xlu1 %1018 }
  0xc9   : > { %1021 = vst.msk [vmem:[#allocation2 + $0x8] sm:$0xf] %vm1011_vm0, %v1019_v3 }
  0xcc   : > { %v1023_v4 = vpop.permute.xlu1 %1022 }
  0xcd   : > { %1025 = vst.msk [vmem:[#allocation2 + $0xc] sm:$0xf] %vm1011_vm0, %v1023_v4 }
  0xd1   : > { %v1040_v6 = vpop.permute.xlu0 %1039 }
  0xd2   : > { %v1042_v7 = vadd.f32 %v4480_v5, %v1040_v6  ;;  %v4485_v5 = vld [vmem:[%s5606_s25] ss:$0 sm:$0xff] }
  0xd4   : > { %1044 = vrot.lane.b32.xlu1 %v1042_v7, %s6839_s16  ;;  %v1050_v10 = vld [vmem:[#allocation2 + $0x8] sm:$0xff]  ;;  %v4486_v7 = vld [vmem:[%s5611_s29] ss:$0 sm:$0xff] }
  0xd5   : > { %v1015_v9 = vpop.permute.xlu0 %1014 }
  0xd6   : > { %1017 = vst.msk [vmem:[#allocation2 + $0x4] sm:$0xf] %vm1011_vm0, %v1015_v9  ;;  %vm2378_vm0 = vcmask 257216  }
  0xd8   : > { %1059 = vperm.xlu1 %5336, %v1050_v10  }
  0xd9   : > { %v1027_v13 = vpop.permute.xlu0 %1026 }
  0xda   : > { %1030 = vst.msk [vmem:[#allocation2 + $0x10] sm:$0xf] %vm1029_vm1, %v1027_v13 }
  0xdd   : > { %v1049_v15 = vld [vmem:[#allocation2] sm:$0xff] }
  0xde   : > { %1054 = vperm.xlu0 %5335, %v1049_v15  }
 0x146   : > { %v1045_v16 = vpop.permute.xlu1 %1044 }
 0x147   : > { %1048 = vst.msk [vmem:[#allocation2 + $0x10] sm:$0xf] %vm1047_vm3, %v1045_v16 }
 0x14e   : > { %v1051_v17 = vld [vmem:[#allocation2 + $0x10] sm:$0xf] }
 0x14f   : > { %1064 = vperm.xlu1 %5336, %v1051_v17  }
 0x153   : > { %v1060_v20 = vpop.permute.xlu1 %1059 }
 0x154   : > { %v1068_v21 = vsub.f32 %v1050_v10, %v1060_v20 }
 0x159   : > { %v1055_v18 = vpop.permute.xlu0 %1054 }
 0x15a   : > { %v1067_v19 = vsub.f32 %v1049_v15, %v1055_v18 }
 0x15c   : > { %4801 = vmatmul.mubr.msk.f32.vlgmr.msra.gmra.mxu0 %vm1080_vm4, %v1067_v19 }
 0x15d   : > { %4803 = vmatprep.mubr.msk.f32.mxu0 %vm5562_vm2, %v5561_v11 }
 0x160   : > { %4804 = vmatmul.mubr.msk.f32.gmra.mxu0 %vm1080_vm4, %v1068_v21 }
 0x161   : > { %4806 = vmatprep.mubr.msk.f32.mxu0 %vm5562_vm2, %v5561_v11 }
 0x1ca   : > { %v5826_v22 = vpop.permute.xlu1 %1064 }
 0x1cb   : > { %v1069_v23 = vsub.f32 %v1051_v17, %v5826_v22 }
 0x1cd   : > { %4807 = vmatmul.mubr.msk.f32.gmra.mxu0 %vm1080_vm4, %v1069_v23 }
 0x1ce   : > { %4862 = vmatprep.mubr.msk.f32.mxu0 %vm5562_vm2, %v5561_v11 }
 0x21c   : > { %v1156_v25 = vpop.f32.mrf.mxu0 }
 0x21d   : > { %v1157_v27 = vadd.f32 %v4481_v24, %v1156_v25  ;;  %v4487_v25 = vld [vmem:[%s6885_s8] ss:$0 sm:$0xff] }
 0x21e   : > { %v4802_v28 = vpop.f32.mrf.mxu0 }
 0x21f   : > { %v1173_v29 = vadd.f32 %v1170_v26, %v1157_v27 }
 0x220   : > { %v1161_v30 = vpop.f32.mrf.mxu0 }
 0x221   : > { %v1162_v32 = vadd.f32 %v4481_v24, %v1161_v30  ;;  %v1179_v33 = vsel %vm1178_vm5, %v1173_v29, 0.0 }
 0x222   : > { %1180 = vadd.xlane.f32.xlu0 %v1179_v33  ;;  %v4805_v34 = vpop.f32.mrf.mxu0 }
 0x223   : > { %v1174_v35 = vadd.f32 %v1171_v31, %v1162_v32 }
 0x225   : > { %v1182_v36 = vsel %vm1178_vm5, %v1174_v35, 0.0 }
 0x226   : > { %1183 = vadd.xlane.f32.xlu1 %v1182_v36 }
 0x28d   : > { %v1166_v37 = vpop.f32.mrf.mxu0 }
 0x28e   : > { %v1167_v39 = vadd.f32 %v4481_v24, %v1166_v37 }
 0x28f   : > { %v4808_v40 = vpop.f32.mrf.mxu0 }
 0x290   : > { %v1175_v41 = vadd.f32 %v1172_v38, %v1167_v39 }
 0x292   : > { %v1186_v42 = vsel %vm1185_vm6, %v1175_v41, 0.0 }
 0x293   : > { %1187 = vadd.xlane.f32.xlu0 %v1186_v42 }
 0x2ab   : > { %v1181_v43 = vpop.xlane.xlu0 %1180 }
 0x2ac   : > { %v1190_v44 = vmul.f32 0.03125, %v1181_v43 }
 0x2ae   : > { %v1193_v45 = vsub.f32 %v1173_v29, %v1190_v44 }
 0x2af   : > { %v1184_v46 = vpop.xlane.xlu1 %1183 }
 0x2b0   : > { %v1191_v47 = vmul.f32 0.03125, %v1184_v46  ;;  %v1196_v48 = vmul.f32 %v1193_v45, %v1193_v45 }
 0x2b2   : > { %v1194_v49 = vsub.f32 %v1174_v35, %v1191_v47  ;;  %v1199_v50 = vsel %vm1178_vm5, %v1196_v48, 0.0 }
 0x2b3   : > { %1200 = vadd.xlane.f32.xlu0 %v1199_v50 }
 0x2b4   : > { %v1197_v51 = vmul.f32 %v1194_v49, %v1194_v49 }
 0x2b6   : > { %v1202_v52 = vsel %vm1178_vm5, %v1197_v51, 0.0 }
 0x2b7   : > { %1203 = vadd.xlane.f32.xlu1 %v1202_v52 }
 0x31c   : > { %v1188_v57 = vpop.xlane.xlu0 %1187 }
 0x31d   : > { %v1192_v58 = vmul.f32 0.03125, %v1188_v57 }
 0x31f   : > { %v1195_v59 = vsub.f32 %v1175_v41, %v1192_v58 }
 0x321   : > { %v1198_v60 = vmul.f32 %v1195_v59, %v1195_v59 }
 0x323   : > { %v1205_v61 = vsel %vm1185_vm6, %v1198_v60, 0.0 }
 0x324   : > { %1206 = vadd.xlane.f32.xlu0 %v1205_v61 }
 0x33c   : > { %v1201_v62 = vpop.xlane.xlu0 %1200 }
 0x33d   : > { %v1208_v63 = vmul.f32 0.03125, %v1201_v62 }
 0x33f   : > { %v1211_v0 = vadd.f32 1e-05, %v1208_v63 }
 0x340   : > { %v1204_v1 = vpop.xlane.xlu1 %1203 }
 0x341   : > { %5337 = vrsqrt.f32 %v1211_v0  ;;  %v1209_v2 = vmul.f32 0.03125, %v1204_v1 }
 0x343   : > { %v1212_v3 = vadd.f32 1e-05, %v1209_v2 }
 0x345   : > { %5339 = vrsqrt.f32 %v1212_v3 }
 0x34e   : > { %v5338_v4 = vpop.eup %5337 }
 0x34f   : > { %v1217_v6 = vmul.f32 %v5338_v4, %v1193_v45 }
 0x351   : > { %v1226_v8 = vmul.f32 %v4485_v5, %v1217_v6 }
 0x352   : > { %v5340_v9 = vpop.eup %5339 }
 0x353   : > { %v5851_v10 = vadd.f32 %v4486_v7, %v1226_v8  ;;  %v1218_v12 = vmul.f32 %v5340_v9, %v1194_v49 }
 0x355   : > { %4818 = vmatmul.mubr.msk.f32.vlgmr.msra.gmra.mxu1 %vm1178_vm5, %v5851_v10  ;;  %v1227_v13 = vmul.f32 %v4485_v5, %v1218_v12 }
 0x356   : > { %4820 = vmatprep.mubr.msk.f32.mxu1 %vm5562_vm2, %v5561_v11 }
 0x357   : > { %v5857_v14 = vadd.f32 %v4486_v7, %v1227_v13 }
 0x359   : > { %4821 = vmatmul.mubr.msk.f32.gmra.mxu1 %vm1178_vm5, %v5857_v14 }
 0x35a   : > { %4823 = vmatprep.mubr.msk.f32.mxu1 %vm5562_vm2, %v5561_v11 }
 0x3ad   : > { %v1207_v15 = vpop.xlane.xlu0 %1206 }
 0x3ae   : > { %v1210_v16 = vmul.f32 0.03125, %v1207_v15 }
 0x3b0   : > { %v1213_v17 = vadd.f32 1e-05, %v1210_v16 }
 0x3b2   : > { %5341 = vrsqrt.f32 %v1213_v17 }
 0x3bf   : > { %v5342_v18 = vpop.eup %5341 }
 0x3c0   : > { %v1219_v19 = vmul.f32 %v5342_v18, %v1195_v59 }
 0x3c2   : > { %v1228_v20 = vmul.f32 %v4485_v5, %v1219_v19 }
 0x3c4   : > { %v5863_v21 = vadd.f32 %v4486_v7, %v1228_v20 }
 0x3c6   : > { %4824 = vmatmul.mubr.msk.f32.gmra.mxu1 %vm1178_vm5, %v5863_v21 }
 0x3c7   : > { %4832 = vmatprep.mubr.msk.f32.mxu1 %vm5562_vm2, %v5561_v11 }
 0x415   : > { %v1355_v23 = vpop.f32.mrf.mxu1 }
 0x416   : > { %v5876_v29 = vadd.f32 %v4487_v25, %v1355_v23 }
 0x417   : > { %v4819_v24 = vpop.f32.mrf.mxu1 }
 0x419   : > { %v1360_v26 = vpop.f32.mrf.mxu1 }
 0x41a   : > { %v5870_v27 = vadd.f32 %v4487_v25, %v1360_v26 }
 0x41b   : > { %v4822_v28 = vpop.f32.mrf.mxu1 }
 0x41c   : > { %1374 = vrot.lane.b32.xlu0 %v5870_v27, %s6823_s2 }
 0x420   : > { %1621 = vrot.lane.b32.xlu0 %v5870_v27, %s6827_s22 }
 0x424   : > { %1613 = vrot.lane.b32.xlu0 %v5876_v29, %s6821_s11 }
 0x428   : > { %1615 = vrot.lane.b32.xlu0 %v5870_v27, %s6821_s11 }
 0x486   : > { %v1365_v30 = vpop.f32.mrf.mxu1 }
 0x487   : > { %v5882_v31 = vadd.f32 %v4487_v25, %v1365_v30 }
 0x488   : > { %v4825_v32 = vpop.f32.mrf.mxu1 }
 0x489   : > { %1617 = vrot.lane.b32.xlu0 %v5882_v31, %s6821_s11  ;;  %1376 = vrot.lane.b32.xlu1 %v5882_v31, %s6823_s2  ;;  %s5564_s11 = smov 80  }
 0x48d   : > { %1869 = vrot.lane.b32.xlu0 %v5876_v29, %s6825_s23  ;;  %1372 = vrot.lane.b32.xlu1 %v5876_v29, %s6823_s2  ;;  %s6831_s2 = smov 64  }
 0x48e   : > { %v1375_v33 = vpop.permute.xlu0 %1374 }
 0x491   : > { %1871 = vrot.lane.b32.xlu0 %v5870_v27, %s6825_s23  ;;  %1623 = vrot.lane.b32.xlu1 %v5882_v31, %s6827_s22 }
 0x492   : > { %v1622_v34 = vpop.permute.xlu0 %1621 }
 0x495   : > { %1873 = vrot.lane.b32.xlu0 %v5882_v31, %s6825_s23  ;;  %1619 = vrot.lane.b32.xlu1 %v5876_v29, %s6827_s22  ;;  %s6829_s23 = smov 56   ;;  %s6843_s22 = smov 72  }
 0x496   : > { %v1614_v35 = vpop.permute.xlu0 %1613 }
 0x499   : > { %2124 = vrot.lane.b32.xlu0 %v5876_v29, %s6845_s26  ;;  %1879 = vrot.lane.b32.xlu1 %v5882_v31, %s5564_s11 }
 0x49a   : > { %v1616_v36 = vpop.permute.xlu0 %1615 }
 0x49d   : > { %2128 = vrot.lane.b32.xlu0 %v5882_v31, %s6845_s26  ;;  %1877 = vrot.lane.b32.xlu1 %v5870_v27, %s5564_s11 }
 0x4a1   : > { %1509 = vrot.lane.b32.xlu0 %v5876_v29, %s6831_s2  ;;  %1875 = vrot.lane.b32.xlu1 %v5876_v29, %s5564_s11 }
 0x4a5   : > { %1753 = vrot.lane.b32.xlu0 %v5876_v29, %s6829_s23  ;;  %2134 = vrot.lane.b32.xlu1 %v5882_v31, %s6843_s22 }
 0x4a9   : > { %1513 = vrot.lane.b32.xlu0 %v5882_v31, %s6831_s2  ;;  %2132 = vrot.lane.b32.xlu1 %v5870_v27, %s6843_s22 }
 0x4ad   : > { %1757 = vrot.lane.b32.xlu0 %v5882_v31, %s6829_s23  ;;  %2130 = vrot.lane.b32.xlu1 %v5876_v29, %s6843_s22  ;;  %s6892_s22 = sld [smem:[#allocation20_spill]] }
 0x4b1   : > { %2126 = vrot.lane.b32.xlu1 %v5870_v27, %s6845_s26  ;;  %s6896_s26 = smov 112  }
 0x4b5   : > { %1511 = vrot.lane.b32.xlu1 %v5870_v27, %s6831_s2  ;;  %s6833_s2 = smov 40  }
 0x4b9   : > { %1755 = vrot.lane.b32.xlu1 %v5870_v27, %s6829_s23  ;;  %s6835_s23 = smov 48  }
 0x4fb   : > { %v1377_v37 = vpop.permute.xlu1 %1376  ;;  %v1618_v38 = vpop.permute.xlu0 %1617 }
 0x4fc   : > { %4827 = vmatpush3.xpose.msk.msra.mxu1 %vm1378_vm7, %v1377_v37 }
 0x4fd   : > { %4828 = vmatprep.subr.mxu1 %v5561_v11 }
 0x4ff   : > { %v1373_v39 = vpop.permute.xlu1 %1372  ;;  %v1870_v40 = vpop.permute.xlu0 %1869 }
 0x500   : > { %4829 = vmatpush3.xpose.msk.msra.mxu1 %vm1378_vm7, %v1375_v33 }
 0x501   : > { %4830 = vmatprep.subr.mxu1 %v5561_v11 }
 0x503   : > { %v1624_v41 = vpop.permute.xlu1 %1623  ;;  %v1872_v42 = vpop.permute.xlu0 %1871 }
 0x504   : > { %4831 = vmatpush3.xpose.msk.msra.mxu1 %vm1378_vm7, %v1373_v39  ;;  %4857 = vmatpush3.xpose.msk.msra.mxu0 %vm1378_vm7, %v1624_v41 }
 0x505   : > { %4858 = vmatprep.subr.mxu0 %v5561_v11  ;;  %4841 = vmatprep.subr.mxu1 %v5561_v11 }
 0x507   : > { %v1620_v43 = vpop.permute.xlu1 %1619  ;;  %4833 = vmatmul.mubr.msk.f32.vlgmr.msra.gmra.mxu1 %vm1378_vm7, %v5876_v29  ;;  %v1874_v44 = vpop.permute.xlu0 %1873 }
 0x508   : > { %4859 = vmatpush3.xpose.msk.msra.mxu0 %vm1378_vm7, %v1622_v34  ;;  %4835 = vmatprep.mubr.msk.f32.mxu1 %vm5562_vm2, %v5561_v11 }
 0x509   : > { %4860 = vmatprep.subr.mxu0 %v5561_v11 }
 0x50b   : > { %v1880_v45 = vpop.permute.xlu1 %1879  ;;  %4836 = vmatmul.mubr.msk.f32.gmra.mxu1 %vm1378_vm7, %v5870_v27  ;;  %v2125_v46 = vpop.permute.xlu0 %2124 }
 0x50c   : > { %4861 = vmatpush3.xpose.msk.msra.mxu0 %vm1378_vm7, %v1620_v43  ;;  %4838 = vmatprep.mubr.msk.f32.mxu1 %vm5562_vm2, %v5561_v11 }
 0x50d   : > { %4886 = vmatprep.subr.mxu0 %v5561_v11 }
 0x50f   : > { %v1878_v47 = vpop.permute.xlu1 %1877  ;;  %4839 = vmatmul.mubr.msk.f32.gmra.mxu1 %vm1378_vm7, %v5882_v31  ;;  %4863 = vmatmul.mubr.msk.f32.vlgmr.msra.gmra.mxu0 %vm1378_vm7, %v1614_v35  ;;  %v2129_v48 = vpop.permute.xlu0 %2128 }
 0x510   : > { %4887 = vmatpush3.xpose.msk.msra.mxu0 %vm1378_vm7, %v1880_v45  ;;  %4865 = vmatprep.mubr.msk.f32.mxu0 %vm5562_vm2, %v5561_v11 }
 0x511   : > { %4888 = vmatprep.subr.mxu0 %v5561_v11  ;;  %4847 = vmatprep.mubr.msk.f32.mxu1 %vm5562_vm2, %v5561_v11 }
 0x513   : > { %v1876_v49 = vpop.permute.xlu1 %1875  ;;  %4866 = vmatmul.mubr.msk.f32.gmra.mxu0 %vm1378_vm7, %v1616_v36  ;;  %v1510_v50 = vpop.permute.xlu0 %1509 }
 0x514   : > { %4889 = vmatpush3.xpose.msk.msra.mxu0 %vm1378_vm7, %v1878_v47  ;;  %4868 = vmatprep.mubr.msk.f32.mxu0 %vm5562_vm2, %v5561_v11 }
 0x515   : > { %4890 = vmatprep.subr.mxu0 %v5561_v11 }
 0x517   : > { %v2135_v51 = vpop.permute.xlu1 %2134  ;;  %4869 = vmatmul.mubr.msk.f32.gmra.mxu0 %vm1378_vm7, %v1618_v38  ;;  %v5965_v52 = vpop.permute.xlu0 %1753 }
 0x518   : > { %4891 = vmatpush3.xpose.msk.msra.mxu0 %vm1378_vm7, %v1876_v49  ;;  %4892 = vmatprep.mubr.msk.f32.mxu0 %vm5562_vm2, %v5561_v11 }
 0x519   : > { %4916 = vmatprep.subr.mxu0 %v5561_v11 }
 0x51b   : > { %v2133_v53 = vpop.permute.xlu1 %2132  ;;  %4893 = vmatmul.mubr.msk.f32.vlgmr.msra.gmra.mxu0 %vm1378_vm7, %v1870_v40  ;;  %v1514_v54 = vpop.permute.xlu0 %1513 }
 0x51c   : > { %4842 = vmatpush3.msk.msra.mxu1 %vm1526_vm8, %v1514_v54  ;;  %4917 = vmatpush3.xpose.msk.msra.mxu0 %vm1378_vm7, %v2135_v51 }
 0x51d   : > { %4895 = vmatprep.mubr.msk.f32.mxu0 %vm5562_vm2, %v5561_v11  ;;  %4918 = vmatprep.subr.mxu0 %v5561_v11 }
 0x51e   : > { %4843 = vmatprep.subr.mxu1 %v5561_v11 }
 0x51f   : > { %v2131_v55 = vpop.permute.xlu1 %2130  ;;  %4896 = vmatmul.mubr.msk.f32.gmra.mxu0 %vm1378_vm7, %v1872_v42  ;;  %v6050_v51 = vpop.permute.xlu0 %1757 }
 0x520   : > { %4919 = vmatpush3.xpose.msk.msra.mxu0 %vm1378_vm7, %v2133_v53  ;;  %4898 = vmatprep.mubr.msk.f32.mxu0 %vm5562_vm2, %v5561_v11 }
 0x521   : > { %4920 = vmatprep.subr.mxu0 %v5561_v11 }
 0x523   : > { %v2127_v56 = vpop.permute.xlu1 %2126  ;;  %4899 = vmatmul.mubr.msk.f32.gmra.mxu0 %vm1378_vm7, %v1874_v44 }
 0x524   : > { %4921 = vmatpush3.xpose.msk.msra.mxu0 %vm1378_vm7, %v2131_v55  ;;  %4922 = vmatprep.mubr.msk.f32.mxu0 %vm5562_vm2, %v5561_v11 }
 0x525   : > { %4946 = vmatprep.subr.mxu0 %v5561_v11 }
 0x527   : > { %v1512_v57 = vpop.permute.xlu1 %1511  ;;  %4923 = vmatmul.mubr.msk.f32.vlgmr.msra.gmra.mxu0 %vm1378_vm7, %v2125_v46 }
 0x528   : > { %4844 = vmatpush3.msra.mxu1 %v1512_v57  ;;  %4925 = vmatprep.mubr.msk.f32.mxu0 %vm5562_vm2, %v5561_v11 }
 0x529   : > { %4845 = vmatprep.subr.mxu1 %v5561_v11 }
 0x52a   : > { %4846 = vmatpush3.msra.mxu1 %v1510_v50 }
 0x52b   : > { %4926 = vmatmul.mubr.msk.f32.gmra.mxu0 %vm1378_vm7, %v2127_v56  ;;  %4871 = vmatprep.subr.mxu1 %v5561_v11  ;;  %v6048_v50 = vpop.permute.xlu1 %1755 }
 0x52c   : > { %4928 = vmatprep.mubr.msk.f32.mxu0 %vm5562_vm2, %v5561_v11 }
 0x52f   : > { %4929 = vmatmul.mubr.msk.f32.gmra.mxu0 %vm1378_vm7, %v2129_v48 }
 0x530   : > { %4954 = vmatprep.mubr.msk.f32.mxu0 %vm5562_vm2, %v5561_v11 }
 0x5c7   : > { %v1457_v58 = vpop.f32.mrf.mxu1 }
 0x5c8   : > { %v5999_v59 = vmul.f32 0.35355338, %v1457_v58 }
 0x5c9   : > { %v4834_v60 = vpop.f32.mrf.mxu1 }
 0x5ca   : > { %v1475_v61 = vsel %vm1474_vm9, %v5999_v59, -inf }
 0x5cb   : > { %1476 = vmax.xlane.f32.xlu1 %v1475_v61  ;;  %v1462_v62 = vpop.f32.mrf.mxu1 }
 0x5cc   : > { %v6003_v63 = vmul.f32 0.35355338, %v1462_v62 }
 0x5cd   : > { %v4837_v0 = vpop.f32.mrf.mxu1 }
 0x5ce   : > { %v1478_v1 = vsel %vm1474_vm9, %v6003_v63, -inf }
 0x5cf   : > { %1479 = vmax.xlane.f32.xlu0 %v1478_v1  ;;  %v1467_v2 = vpop.f32.mrf.mxu1  ;;  %v1703_v3 = vpop.f32.mrf.mxu0 }
 0x5d0   : > { %v6007_v4 = vmul.f32 0.35355338, %v1703_v3  ;;  %v6011_v13 = vmul.f32 0.35355338, %v1467_v2 }
 0x5d1   : > { %v4840_v5 = vpop.f32.mrf.mxu1  ;;  %v4864_v6 = vpop.f32.mrf.mxu0 }
 0x5d2   : > { %v1720_v7 = vsel %vm1474_vm9, %v6007_v4, -inf  ;;  %v1482_v19 = vsel %vm1481_vm10, %v6011_v13, -inf }
 0x5d3   : > { %1721 = vmax.xlane.f32.xlu1 %v1720_v7  ;;  %v1708_v8 = vpop.f32.mrf.mxu0 }
 0x5d4   : > { %v1718_v9 = vmul.f32 0.35355338, %v1708_v8 }
 0x5d5   : > { %v4867_v12 = vpop.f32.mrf.mxu0 }
 0x5d6   : > { %v1723_v15 = vsel %vm1474_vm9, %v1718_v9, -inf }
 0x5d7   : > { %1724 = vmax.xlane.f32.xlu0 %v1723_v15  ;;  %v1713_v16 = vpop.f32.mrf.mxu0 }
 0x5d8   : > { %v6014_v17 = vmul.f32 0.35355338, %v1713_v16 }
 0x5d9   : > { %v4870_v18 = vpop.f32.mrf.mxu0 }
 0x5da   : > { %v1726_v20 = vsel %vm1481_vm10, %v6014_v17, -inf }
 0x5db   : > { %1483 = vmax.xlane.f32.xlu0 %v1482_v19  ;;  %1727 = vmax.xlane.f32.xlu1 %v1726_v20  ;;  %v1959_v23 = vpop.f32.mrf.mxu0 }
 0x5dc   : > { %v6020_v24 = vmul.f32 0.35355338, %v1959_v23 }
 0x5dd   : > { %v4894_v25 = vpop.f32.mrf.mxu0 }
 0x5de   : > { %v1976_v26 = vsel %vm1474_vm9, %v6020_v24, -inf }
 0x5df   : > { %1977 = vmax.xlane.f32.xlu0 %v1976_v26  ;;  %v1964_v28 = vpop.f32.mrf.mxu0 }
 0x5e0   : > { %v6024_v30 = vmul.f32 0.35355338, %v1964_v28 }
 0x5e1   : > { %v4897_v32 = vpop.f32.mrf.mxu0 }
 0x5e2   : > { %v1979_v33 = vsel %vm1474_vm9, %v6024_v30, -inf }
 0x5e3   : > { %1980 = vmax.xlane.f32.xlu1 %v1979_v33  ;;  %v1969_v34 = vpop.f32.mrf.mxu0 }
 0x5e4   : > { %v6028_v35 = vmul.f32 0.35355338, %v1969_v34 }
 0x5e5   : > { %v4900_v36 = vpop.f32.mrf.mxu0 }
 0x5e6   : > { %v1982_v37 = vsel %vm1481_vm10, %v6028_v35, -inf }
 0x5e7   : > { %1983 = vmax.xlane.f32.xlu0 %v1982_v37  ;;  %v2214_v38 = vpop.f32.mrf.mxu0 }
 0x5e8   : > { %v6032_v39 = vmul.f32 0.35355338, %v2214_v38 }
 0x5e9   : > { %v4924_v40 = vpop.f32.mrf.mxu0 }
 0x5ea   : > { %v2231_v41 = vsel %vm1474_vm9, %v6032_v39, -inf }
 0x5eb   : > { %2232 = vmax.xlane.f32.xlu1 %v2231_v41  ;;  %v2219_v42 = vpop.f32.mrf.mxu0 }
 0x5ec   : > { %v6036_v43 = vmul.f32 0.35355338, %v2219_v42 }
 0x5ed   : > { %v4927_v44 = vpop.f32.mrf.mxu0 }
 0x5ee   : > { %v2234_v45 = vsel %vm1474_vm9, %v6036_v43, -inf }
 0x5ef   : > { %2235 = vmax.xlane.f32.xlu0 %v2234_v45  ;;  %v2224_v46 = vpop.f32.mrf.mxu0 }
 0x5f0   : > { %v6044_v48 = vmul.f32 0.35355338, %v2224_v46 }
 0x5f1   : > { %v4930_v47 = vpop.f32.mrf.mxu0 }
 0x5f2   : > { %v2237_v49 = vsel %vm1481_vm10, %v6044_v48, -inf }
 0x5fc   : > { %2011 = vrot.lane.b32.xlu1 %v5870_v27, %s6835_s23 }
 0x605   : > { %2013 = vrot.lane.b32.xlu0 %v5882_v31, %s6835_s23 }
 0x620   : > { %2238 = vmax.xlane.f32.xlu1 %v2237_v49 }
 0x654   : > { %v1477_v53 = vpop.xlane.xlu1 %1476 }
 0x655   : > { %v1485_v54 = vsub.f32 %v5999_v59, %v1477_v53 }
 0x657   : > { %v1488_v55 = vmul.f32 1.442695, %v1485_v54 }
 0x658   : > { %v1480_v56 = vpop.xlane.xlu0 %1479 }
 0x659   : > { %5343 = vpow2.f32 %v1488_v55  ;;  %v1486_v57 = vsub.f32 %v6003_v63, %v1480_v56 }
 0x65b   : > { %v1490_v61 = vmul.f32 1.442695, %v1486_v57 }
 0x65c   : > { %v1722_v58 = vpop.xlane.xlu1 %1721 }
 0x65d   : > { %v1729_v60 = vsub.f32 %v6007_v4, %v1722_v58 }
 0x65f   : > { %v1732_v62 = vmul.f32 1.442695, %v1729_v60 }
 0x660   : > { %v1725_v0 = vpop.xlane.xlu0 %1724 }
 0x661   : > { %5345 = vpow2.f32 %v1732_v62  ;;  %v1730_v1 = vsub.f32 %v1718_v9, %v1725_v0 }
 0x662   : > { %5347 = vpow2.f32 %v1490_v61 }
 0x663   : > { %v1734_v2 = vmul.f32 1.442695, %v1730_v1 }
 0x664   : > { %v1484_v3 = vpop.xlane.xlu0 %1483  ;;  %v1728_v18 = vpop.xlane.xlu1 %1727 }
 0x665   : > { %5349 = vpow2.f32 %v1734_v2  ;;  %v1487_v5 = vsub.f32 %v6011_v13, %v1484_v3  ;;  %v1731_v20 = vsub.f32 %v6014_v17, %v1728_v18 }
 0x666   : > { %v6056_v59 = vpop.eup %5343 }
 0x667   : > { %v1492_v6 = vmul.f32 1.442695, %v1487_v5  ;;  %v1494_v63 = vsel %vm1474_vm9, %v6056_v59, 0.0  ;;  %v1736_v26 = vmul.f32 1.442695, %v1731_v20 }
 0x668   : > { %1495 = vadd.xlane.f32.xlu0 %v1494_v63  ;;  %v1978_v19 = vpop.xlane.xlu0 %1977 }
 0x669   : > { %5351 = vpow2.f32 %v1492_v6  ;;  %v1985_v25 = vsub.f32 %v6020_v24, %v1978_v19 }
 0x66a   : > { %5353 = vpow2.f32 %v1736_v26 }
 0x66b   : > { %v1988_v33 = vmul.f32 1.442695, %v1985_v25 }
 0x66c   : > { %v1981_v32 = vpop.xlane.xlu1 %1980 }
 0x66d   : > { %v1986_v34 = vsub.f32 %v6024_v30, %v1981_v32  ;;  %5355 = vpow2.f32 %v1988_v33 }
 0x66e   : > { %v6060_v4 = vpop.eup %5345 }
 0x66f   : > { %v1738_v7 = vsel %vm1474_vm9, %v6060_v4, 0.0  ;;  %v6064_v8 = vpop.eup %5347  ;;  %v1990_v38 = vmul.f32 1.442695, %v1986_v34 }
 0x670   : > { %1739 = vadd.xlane.f32.xlu1 %v1738_v7  ;;  %v1497_v13 = vsel %vm1474_vm9, %v6064_v8, 0.0  ;;  %v1984_v23 = vpop.xlane.xlu0 %1983 }
 0x671   : > { %v1987_v28 = vsub.f32 %v6028_v35, %v1984_v23 }
 0x672   : > { %v6066_v9 = vpop.eup %5349 }
 0x673   : > { %v1741_v12 = vsel %vm1474_vm9, %v6066_v9, 0.0  ;;  %v1992_v36 = vmul.f32 1.442695, %v1987_v28 }
 0x674   : > { %1742 = vadd.xlane.f32.xlu0 %v1741_v12  ;;  %1498 = vadd.xlane.f32.xlu1 %v1497_v13  ;;  %v2233_v37 = vpop.xlane.xlu1 %2232 }
 0x675   : > { %5357 = vpow2.f32 %v1992_v36 }
 0x676   : > { %v6072_v15 = vpop.eup %5351  ;;  %5359 = vpow2.f32 %v1990_v38 }
 0x677   : > { %v1500_v16 = vsel %vm1481_vm10, %v6072_v15, 0.0  ;;  %v6086_v35 = vpop.eup %5353 }
 0x678   : > { %1501 = vadd.xlane.f32.xlu0 %v1500_v16  ;;  %v2236_v40 = vpop.xlane.xlu0 %2235  ;;  %v6088_v42 = vpop.permute.xlu1 %2011  ;;  %v1744_v30 = vsel %vm1481_vm10, %v6086_v35, 0.0 }
 0x679   : > { %v2241_v24 = vsub.f32 %v6036_v43, %v2236_v40 }
 0x67a   : > { %v6090_v44 = vpop.eup %5355 }
 0x67b   : > { %v2245_v41 = vmul.f32 1.442695, %v2241_v24  ;;  %v1994_v49 = vsel %vm1474_vm9, %v6090_v44, 0.0 }
 0x67c   : > { %v2014_v61 = vpop.permute.xlu0 %2013 }
 0x682   : > { %v6094_v45 = vpop.eup %5357 }
 0x683   : > { %v2000_v43 = vsel %vm1481_vm10, %v6094_v45, 0.0  ;;  %v6101_v53 = vpop.eup %5359 }
 0x684   : > { %v1997_v54 = vsel %vm1474_vm9, %v6101_v53, 0.0 }
 0x685   : > { %2009 = vrot.lane.b32.xlu1 %v5876_v29, %s6835_s23  ;;  %s6837_s23 = smov 24  }
 0x68e   : > { %2268 = vrot.lane.b32.xlu0 %v5882_v31, %s6833_s2  ;;  %v2240_v31 = vsub.f32 %v6032_v39, %v2233_v37 }
 0x690   : > { %v2243_v17 = vmul.f32 1.442695, %v2240_v31 }
 0x692   : > { %5361 = vpow2.f32 %v2243_v17 }
 0x693   : > { %5363 = vpow2.f32 %v2245_v41 }
 0x69f   : > { %v6105_v55 = vpop.eup %5361 }
 0x6a0   : > { %v6109_v56 = vpop.eup %5363 }
 0x6a1   : > { %v2252_v57 = vsel %vm1474_vm9, %v6109_v56, 0.0 }
 0x6a9   : > { %1745 = vadd.xlane.f32.xlu1 %v1744_v30  ;;  %v2239_v39 = vpop.xlane.xlu1 %2238 }
 0x6aa   : > { %v2242_v46 = vsub.f32 %v6044_v48, %v2239_v39  ;;  %v2249_v48 = vsel %vm1474_vm9, %v6105_v55, 0.0 }
 0x6ac   : > { %v2247_v47 = vmul.f32 1.442695, %v2242_v46 }
 0x6ad   : > { %2001 = vadd.xlane.f32.xlu0 %v2000_v43  ;;  %1995 = vadd.xlane.f32.xlu1 %v1994_v49 }
 0x6ae   : > { %5365 = vpow2.f32 %v2247_v47 }
 0x6b1   : > { %1998 = vadd.xlane.f32.xlu1 %v1997_v54 }
 0x6b5   : > { %2250 = vadd.xlane.f32.xlu1 %v2249_v48 }
 0x6b9   : > { %2253 = vadd.xlane.f32.xlu1 %v2252_v57 }
 0x6bb   : > { %v6113_v58 = vpop.eup %5365 }
 0x6bc   : > { %v2255_v60 = vsel %vm1481_vm10, %v6113_v58, 0.0 }
 0x6bd   : > { %2256 = vadd.xlane.f32.xlu0 %v2255_v60  ;;  %v1244_v60 = vld [vmem:[%s6875_s14 + $0x8] sm:$0xff] }
 0x6ca   : > { %2266 = vrot.lane.b32.xlu1 %v5870_v27, %s6833_s2 }
 0x6d3   : > { %2264 = vrot.lane.b32.xlu0 %v5876_v29, %s6833_s2  ;;  %s6841_s2 = smov 8  }
 0x6f1   : > { %v1496_v62 = vpop.xlane.xlu0 %1495 }
 0x6f2   : > { %5367 = vrcp.f32 %v1496_v62 }
 0x6f9   : > { %v1740_v0 = vpop.xlane.xlu1 %1739 }
 0x6fd   : > { %v1743_v1 = vpop.xlane.xlu0 %1742  ;;  %v1499_v2 = vpop.xlane.xlu1 %1498 }
 0x6fe   : > { %5369 = vrcp.f32 %v1499_v2 }
 0x6ff   : > { %v5368_v3 = vpop.eup %5367 }
 0x700   : > { %v1504_v5 = vmul.f32 %v5368_v3, %v6056_v59 }
 0x701   : > { %v1502_v6 = vpop.xlane.xlu0 %1501 }
 0x702   : > { %5371 = vrcp.f32 %v1502_v6  ;;  %4848 = vmatmul.mubr.msk.f32.vlgmr.msra.gmra.mxu1 %vm1474_vm9, %v1504_v5 }
 0x703   : > { %4872 = vmatpush3.msk.msra.mxu1 %vm1526_vm8, %v6050_v51  ;;  %4850 = vmatprep.mubr.msk.f32.mxu1 %vm5562_vm2, %v5561_v11  ;;  %5373 = vrcp.f32 %v1740_v0 }
 0x704   : > { %4873 = vmatprep.subr.mxu1 %v5561_v11  ;;  %5375 = vrcp.f32 %v1743_v1 }
 0x705   : > { %4874 = vmatpush3.msra.mxu1 %v6048_v50  ;;  %v2269_v13 = vpop.permute.xlu0 %2268 }
 0x706   : > { %4875 = vmatprep.subr.mxu1 %v5561_v11 }
 0x707   : > { %4876 = vmatpush3.msra.mxu1 %v5965_v52 }
 0x708   : > { %4901 = vmatprep.subr.mxu1 %v5561_v11 }
 0x70b   : > { %v5370_v27 = vpop.eup %5369 }
 0x70c   : > { %v1506_v29 = vmul.f32 %v5370_v27, %v6064_v8  ;;  %v2010_v8 = vpop.permute.xlu1 %2009 }
 0x70e   : > { %4851 = vmatmul.mubr.msk.f32.gmra.mxu1 %vm1474_vm9, %v1506_v29 }
 0x70f   : > { %v5372_v59 = vpop.eup %5371  ;;  %4853 = vmatprep.mubr.msk.f32.mxu1 %vm5562_vm2, %v5561_v11 }
 0x710   : > { %v1508_v51 = vmul.f32 %v5372_v59, %v6072_v15  ;;  %v5374_v63 = vpop.eup %5373 }
 0x711   : > { %v1748_v52 = vmul.f32 %v5374_v63, %v6060_v4  ;;  %v5376_v50 = vpop.eup %5375 }
 0x712   : > { %4854 = vmatmul.mubr.msk.f32.gmra.mxu1 %vm1474_vm9, %v1508_v51  ;;  %v1750_v7 = vmul.f32 %v5376_v50, %v6066_v9 }
 0x713   : > { %4877 = vmatprep.mubr.msk.f32.mxu1 %vm5562_vm2, %v5561_v11 }
 0x716   : > { %4878 = vmatmul.mubr.msk.f32.vlgmr.msra.gmra.mxu1 %vm1474_vm9, %v1748_v52 }
 0x717   : > { %4902 = vmatpush3.msk.msra.mxu1 %vm1526_vm8, %v2014_v61  ;;  %4880 = vmatprep.mubr.msk.f32.mxu1 %vm5562_vm2, %v5561_v11  ;;  %v1243_v61 = vld [vmem:[%s6875_s14] sm:$0xff] }
 0x718   : > { %4903 = vmatprep.subr.mxu1 %v5561_v11 }
 0x719   : > { %4904 = vmatpush3.msra.mxu1 %v6088_v42 }
 0x71a   : > { %4905 = vmatprep.subr.mxu1 %v5561_v11  ;;  %4881 = vmatmul.mubr.msk.f32.gmra.mxu1 %vm1474_vm9, %v1750_v7 }
 0x71b   : > { %4906 = vmatpush3.msra.mxu1 %v2010_v8  ;;  %4883 = vmatprep.mubr.msk.f32.mxu1 %vm5562_vm2, %v5561_v11 }
 0x71c   : > { %4931 = vmatprep.subr.mxu1 %v5561_v11 }
 0x732   : > { %v1746_v4 = vpop.xlane.xlu1 %1745 }
 0x733   : > { %5377 = vrcp.f32 %v1746_v4 }
 0x736   : > { %v1996_v12 = vpop.xlane.xlu1 %1995  ;;  %v2002_v9 = vpop.xlane.xlu0 %2001 }
 0x737   : > { %5379 = vrcp.f32 %v1996_v12 }
 0x73a   : > { %v1999_v15 = vpop.xlane.xlu1 %1998 }
 0x73b   : > { %5381 = vrcp.f32 %v1999_v15 }
 0x73c   : > { %5383 = vrcp.f32 %v2002_v9 }
 0x73e   : > { %v2251_v16 = vpop.xlane.xlu1 %2250 }
 0x73f   : > { %5385 = vrcp.f32 %v2251_v16  ;;  %v4531_v16 = vld [vmem:[%s5631_s19] ss:$0 sm:$0xff] }
 0x740   : > { %v5378_v18 = vpop.eup %5377 }
 0x741   : > { %v1752_v19 = vmul.f32 %v5378_v18, %v6086_v35 }
 0x742   : > { %v2254_v20 = vpop.xlane.xlu1 %2253 }
 0x743   : > { %4884 = vmatmul.mubr.msk.f32.gmra.mxu1 %vm1474_vm9, %v1752_v19  ;;  %5387 = vrcp.f32 %v2254_v20 }
 0x744   : > { %4907 = vmatprep.mubr.msk.f32.mxu1 %vm5562_vm2, %v5561_v11  ;;  %v5380_v23 = vpop.eup %5379 }
 0x745   : > { %v2004_v25 = vmul.f32 %v5380_v23, %v6090_v44 }
 0x746   : > { %v2257_v26 = vpop.xlane.xlu0 %2256  ;;  %v2267_v33 = vpop.permute.xlu1 %2266 }
 0x747   : > { %4908 = vmatmul.mubr.msk.f32.vlgmr.msra.gmra.mxu1 %vm1474_vm9, %v2004_v25  ;;  %5389 = vrcp.f32 %v2257_v26 }
 0x748   : > { %v5382_v28 = vpop.eup %5381  ;;  %4932 = vmatpush3.msk.msra.mxu1 %vm1526_vm8, %v2269_v13  ;;  %4910 = vmatprep.mubr.msk.f32.mxu1 %vm5562_vm2, %v5561_v11 }
 0x749   : > { %v2006_v32 = vmul.f32 %v5382_v28, %v6101_v53  ;;  %4933 = vmatprep.subr.mxu1 %v5561_v11  ;;  %v5384_v36 = vpop.eup %5383  ;;  %v1246_v53 = vld [vmem:[%s6875_s14 + $0x18] sm:$0xff] }
 0x74a   : > { %v2265_v34 = vpop.permute.xlu0 %2264  ;;  %4934 = vmatpush3.msra.mxu1 %v2267_v33  ;;  %v2008_v37 = vmul.f32 %v5384_v36, %v6094_v45  ;;  %4947 = vmatpush3.msra.mxu0 %v1246_v53  ;;  %v1252_v53 = vld [vmem:[%s6877_s6 + $0x10] sm:$0xff] }
 0x74b   : > { %4935 = vmatprep.subr.mxu1 %v5561_v11  ;;  %4911 = vmatmul.mubr.msk.f32.gmra.mxu1 %vm1474_vm9, %v2006_v32 }
 0x74c   : > { %4936 = vmatpush3.msra.mxu1 %v2265_v34  ;;  %4913 = vmatprep.mubr.msk.f32.mxu1 %vm5562_vm2, %v5561_v11  ;;  %v5386_v38 = vpop.eup %5385 }
 0x74d   : > { %4963 = vmatprep.subr.mxu1 %v5561_v11  ;;  %v2259_v31 = vmul.f32 %v5386_v38, %v6105_v55  ;;  %4948 = vmatprep.subr.mxu0 %v5561_v11 }
 0x74f   : > { %4914 = vmatmul.mubr.msk.f32.gmra.mxu1 %vm1474_vm9, %v2008_v37 }
 0x750   : > { %4937 = vmatprep.mubr.msk.f32.mxu1 %vm5562_vm2, %v5561_v11  ;;  %v5388_v40 = vpop.eup %5387 }
 0x751   : > { %v2261_v17 = vmul.f32 %v5388_v40, %v6109_v56  ;;  %v1245_v56 = vld [vmem:[%s6875_s14 + $0x10] sm:$0xff]  ;;  %s5463_s14 = sshll.u32 %s5572_s13, 4  ;;  %s5464_s14 = int_to_ptr.vmem [resolvable:$false] %s5463_s14 }
 0x752   : > { %4949 = vmatpush3.msra.mxu0 %v1245_v56  ;;  %v1269_v56 = vld [vmem:[%s5656_s20 + $0x70] sm:$0xff]  ;;  %s5465_s0 = scalar_lea.vmem %s5464_s14, 128 }
 0x753   : > { %4938 = vmatmul.mubr.msk.f32.vlgmr.msra.gmra.mxu1 %vm1474_vm9, %v2259_v31  ;;  %4950 = vmatprep.subr.mxu0 %v5561_v11 }
 0x754   : > { %4940 = vmatprep.mubr.msk.f32.mxu1 %vm5562_vm2, %v5561_v11  ;;  %v5390_v24 = vpop.eup %5389  ;;  %4951 = vmatpush3.msra.mxu0 %v1244_v60  ;;  %v1266_v60 = vld [vmem:[%s5656_s20 + $0x58] sm:$0xff] }
 0x755   : > { %v2263_v41 = vmul.f32 %v5390_v24, %v6113_v58  ;;  %4952 = vmatprep.subr.mxu0 %v5561_v11 }
 0x756   : > { %4953 = vmatpush3.msra.mxu0 %v1243_v61  ;;  %v1265_v61 = vld [vmem:[%s5656_s20 + $0x50] sm:$0xff] }
 0x757   : > { %4941 = vmatmul.mubr.msk.f32.gmra.mxu1 %vm1474_vm9, %v2261_v17  ;;  %4980 = vmatprep.subr.mxu0 %v5561_v11 }
 0x758   : > { %4943 = vmatprep.mubr.msk.f32.mxu1 %vm5562_vm2, %v5561_v11 }
 0x75b   : > { %4944 = vmatmul.mubr.msk.f32.gmra.mxu1 %vm1474_vm9, %v2263_v41 }
 0x75c   : > { %4971 = vmatprep.mubr.msk.f32.mxu1 %vm5562_vm2, %v5561_v11 }
 0x7c2   : > { %v1595_v35 = vpop.f32.mrf.mxu1 }
 0x7c3   : > { %1609 = vst.msk [vmem:[#allocation3] sm:$0xff] %vm1378_vm7, %v1595_v35 }
 0x7c4   : > { %v4849_v42 = vpop.f32.mrf.mxu1 }
 0x7ce   : > { %v1600_v44 = vpop.f32.mrf.mxu1 }
 0x7cf   : > { %1610 = vst.msk [vmem:[#allocation3 + $0x8] sm:$0xff] %vm1378_vm7, %v1600_v44 }
 0x7d0   : > { %v4852_v30 = vpop.f32.mrf.mxu1 }
 0x7d2   : > { %v1605_v45 = vpop.f32.mrf.mxu1 }
 0x7d3   : > { %1612 = vst.msk [vmem:[#allocation3 + $0x10] sm:$0xf] %vm1611_vm11, %v1605_v45 }
 0x7d4   : > { %v4855_v39 = vpop.f32.mrf.mxu1 }
 0x7d6   : > { %v1838_v46 = vpop.f32.mrf.mxu1 }
 0x7d7   : > { %1855 = vrot.lane.b32.xlu1 %v1838_v46, %s6841_s2 }
 0x7d8   : > { %v4879_v47 = vpop.f32.mrf.mxu1 }
 0x7da   : > { %v1843_v43 = vpop.f32.mrf.mxu1 }
 0x7db   : > { %1857 = vrot.lane.b32.xlu0 %v1843_v43, %s6841_s2 }
 0x7dc   : > { %v4882_v49 = vpop.f32.mrf.mxu1 }
 0x7dd   : > { %v1253_v49 = vld [vmem:[%s6877_s6 + $0x18] sm:$0xff] }
 0x7de   : > { %4964 = vmatpush3.msra.mxu1 %v1253_v49 }
 0x7df   : > { %4965 = vmatprep.subr.mxu1 %v5561_v11 }
 0x7e0   : > { %4966 = vmatpush3.msra.mxu1 %v1252_v53 }
 0x7e1   : > { %4967 = vmatprep.subr.mxu1 %v5561_v11 }
 0x803   : > { %v1848_v54 = vpop.f32.mrf.mxu1 }
 0x805   : > { %v4885_v55 = vpop.f32.mrf.mxu1 }
 0x806   : > { %v1250_v55 = vld [vmem:[%s6877_s6] sm:$0xff] }
 0x807   : > { %v2094_v48 = vpop.f32.mrf.mxu1 }
 0x808   : > { %2111 = vrot.lane.b32.xlu0 %v2094_v48, %s6839_s16  ;;  %v1270_v48 = vld [vmem:[%s5656_s20 + $0x78] sm:$0xff] }
 0x809   : > { %v4909_v57 = vpop.f32.mrf.mxu1 }
 0x80a   : > { %v1268_v57 = vld [vmem:[%s5656_s20 + $0x68] sm:$0xff] }
 0x80b   : > { %v2099_v58 = vpop.f32.mrf.mxu1 }
 0x80c   : > { %2113 = vrot.lane.b32.xlu1 %v2099_v58, %s6839_s16  ;;  %v1267_v58 = vld [vmem:[%s5656_s20 + $0x60] sm:$0xff] }
 0x80d   : > { %v4912_v62 = vpop.f32.mrf.mxu1 }
 0x80e   : > { %v1264_v62 = vld [vmem:[%s5656_s20 + $0x48] sm:$0xff] }
 0x80f   : > { %v2104_v0 = vpop.f32.mrf.mxu1 }
 0x811   : > { %v4915_v1 = vpop.f32.mrf.mxu1 }
 0x812   : > { %v1262_v1 = vld [vmem:[%s5656_s20 + $0x38] sm:$0xff] }
 0x813   : > { %v2349_v2 = vpop.f32.mrf.mxu1 }
 0x814   : > { %2366 = vrot.lane.b32.xlu1 %v2349_v2, %s6837_s23  ;;  %v1261_v2 = vld [vmem:[%s5656_s20 + $0x30] sm:$0xff] }
 0x815   : > { %v4939_v3 = vpop.f32.mrf.mxu1 }
 0x816   : > { %v1260_v3 = vld [vmem:[%s5656_s20 + $0x28] sm:$0xff] }
 0x817   : > { %v2354_v5 = vpop.f32.mrf.mxu1 }
 0x818   : > { %1859 = vrot.lane.b32.xlu1 %v1848_v54, %s6841_s2  ;;  %2368 = vrot.lane.b32.xlu0 %v2354_v5, %s6837_s23  ;;  %v1251_v54 = vld [vmem:[%s6877_s6 + $0x8] sm:$0xff]  ;;  %v1259_v5 = vld [vmem:[%s5656_s20 + $0x20] sm:$0xff]  ;;  %s6891_s2 = sld [smem:[#allocation18_spill]] }
 0x819   : > { %v4942_v6 = vpop.f32.mrf.mxu1  ;;  %4968 = vmatpush3.msra.mxu1 %v1251_v54 }
 0x81a   : > { %4969 = vmatprep.subr.mxu1 %v5561_v11  ;;  %v1258_v6 = vld [vmem:[%s5656_s20 + $0x18] sm:$0xff] }
 0x81b   : > { %v2359_v27 = vpop.f32.mrf.mxu1  ;;  %4970 = vmatpush3.msra.mxu1 %v1250_v55 }
 0x81c   : > { %2115 = vrot.lane.b32.xlu0 %v2104_v0, %s6839_s16  ;;  %2370 = vrot.lane.b32.xlu1 %v2359_v27, %s6837_s23  ;;  %v1263_v0 = vld [vmem:[%s5656_s20 + $0x40] sm:$0xff]  ;;  %s6886_s23 = sld [smem:[#allocation13_spill]] }
 0x81d   : > { %v4945_v29 = vpop.f32.mrf.mxu1  ;;  %5021 = vmatprep.subr.mxu1 %v5561_v11  ;;  %s6888_s16 = sld [smem:[#allocation16_spill]] }
 0x849   : > { %v1856_v59 = vpop.permute.xlu1 %1855 }
 0x84a   : > { %1865 = vst.msk [vmem:[#allocation3] sm:$0xff] %vm1864_vm12, %v1856_v59 }
 0x84d   : > { %v1858_v51 = vpop.permute.xlu0 %1857 }
 0x84e   : > { %1866 = vst.msk [vmem:[#allocation3 + $0x8] sm:$0xff] %vm1864_vm12, %v1858_v51 }
 0x87a   : > { %v2112_v63 = vpop.permute.xlu0 %2111 }
 0x87b   : > { %2121 = vst.msk [vmem:[#allocation3] sm:$0xff] %vm2120_vm13, %v2112_v63 }
 0x87e   : > { %v2114_v52 = vpop.permute.xlu1 %2113 }
 0x87f   : > { %2122 = vst.msk [vmem:[#allocation3 + $0x8] sm:$0xff] %vm2120_vm13, %v2114_v52 }
 0x886   : > { %v2367_v50 = vpop.permute.xlu1 %2366 }
 0x887   : > { %2376 = vst.msk [vmem:[#allocation3] sm:$0xff] %vm2375_vm14, %v2367_v50 }
 0x88a   : > { %v2369_v7 = vpop.permute.xlu0 %2368  ;;  %v1860_v8 = vpop.permute.xlu1 %1859 }
 0x88b   : > { %2377 = vst.msk [vmem:[#allocation3 + $0x8] sm:$0xff] %vm2375_vm14, %v2369_v7 }
 0x88c   : > { %1868 = vst.msk [vmem:[#allocation3 + $0x10] sm:$0xf] %vm1867_vm15, %v1860_v8 }
 0x88e   : > { %v2116_v4 = vpop.permute.xlu0 %2115  ;;  %v2371_v12 = vpop.permute.xlu1 %2370  ;;  %v2380_v13 = vld [vmem:[#allocation3] sm:$0xff] }
 0x88f   : > { %2123 = vst.msk [vmem:[#allocation3 + $0x10] sm:$0xf] %vm1047_vm3, %v2116_v4  ;;  %4955 = vmatmul.mubr.msk.f32.vlgmr.msra.gmra.mxu0 %vm1178_vm5, %v2380_v13 }
 0x890   : > { %2379 = vst.msk [vmem:[#allocation3 + $0x10] sm:$0xf] %vm2378_vm0, %v2371_v12  ;;  %4957 = vmatprep.mubr.msk.f32.mxu0 %vm5562_vm2, %v5561_v11  ;;  %4981 = vmatpush3.msra.mxu0 %v1270_v48  ;;  %v4535_v12 = vld [vmem:[%s5636_s24] ss:$0 sm:$0xff] }
 0x891   : > { %4982 = vmatprep.subr.mxu0 %v5561_v11 }
 0x892   : > { %v2381_v15 = vld [vmem:[#allocation3 + $0x8] sm:$0xff]  ;;  %4983 = vmatpush3.msra.mxu0 %v1269_v56 }
 0x893   : > { %4958 = vmatmul.mubr.msk.f32.gmra.mxu0 %vm1178_vm5, %v2381_v15  ;;  %4984 = vmatprep.subr.mxu0 %v5561_v11  ;;  %v4536_v15 = vld [vmem:[%s6886_s23] ss:$0 sm:$0xff]  ;;  %s6887_s23 = sld [smem:[#allocation15_spill]] }
 0x894   : > { %4960 = vmatprep.mubr.msk.f32.mxu0 %vm5562_vm2, %v5561_v11  ;;  %4985 = vmatpush3.msra.mxu0 %v1268_v57 }
 0x895   : > { %4986 = vmatprep.subr.mxu0 %v5561_v11 }
 0x896   : > { %4987 = vmatpush3.msra.mxu0 %v1267_v58 }
 0x897   : > { %v2382_v9 = vld [vmem:[#allocation3 + $0x10] sm:$0xf]  ;;  %4988 = vmatprep.subr.mxu0 %v5561_v11 }
 0x898   : > { %4961 = vmatmul.mubr.msk.f32.gmra.mxu0 %vm1178_vm5, %v2382_v9 }
 0x899   : > { %5012 = vmatprep.mubr.msk.f32.mxu0 %vm5562_vm2, %v5561_v11  ;;  %4989 = vmatpush3.msra.mxu0 %v1266_v60 }
 0x89a   : > { %4990 = vmatprep.subr.mxu0 %v5561_v11 }
 0x89b   : > { %4991 = vmatpush3.msra.mxu0 %v1265_v61 }
 0x89c   : > { %4992 = vmatprep.subr.mxu0 %v5561_v11 }
 0x89d   : > { %4993 = vmatpush3.msra.mxu0 %v1264_v62 }
 0x89e   : > { %4994 = vmatprep.subr.mxu0 %v5561_v11 }
 0x89f   : > { %4995 = vmatpush3.msra.mxu0 %v1263_v0 }
 0x8a0   : > { %4996 = vmatprep.subr.mxu0 %v5561_v11 }
 0x8a1   : > { %4997 = vmatpush3.msra.mxu0 %v1262_v1 }
 0x8a2   : > { %4998 = vmatprep.subr.mxu0 %v5561_v11 }
 0x8a3   : > { %4999 = vmatpush3.msra.mxu0 %v1261_v2 }
 0x8a4   : > { %5000 = vmatprep.subr.mxu0 %v5561_v11 }
 0x8a5   : > { %5001 = vmatpush3.msra.mxu0 %v1260_v3 }
 0x8a6   : > { %5002 = vmatprep.subr.mxu0 %v5561_v11 }
 0x8a7   : > { %5003 = vmatpush3.msra.mxu0 %v1259_v5 }
 0x8a8   : > { %5004 = vmatprep.subr.mxu0 %v5561_v11 }
 0x8a9   : > { %5005 = vmatpush3.msra.mxu0 %v1258_v6 }
 0x8aa   : > { %5006 = vmatprep.subr.mxu0 %v5561_v11 }
 0x94f   : > { %v2464_v18 = vpop.f32.mrf.mxu0 }
 0x950   : > { %v2465_v19 = vadd.f32 %v4531_v16, %v2464_v18 }
 0x951   : > { %v4956_v20 = vpop.f32.mrf.mxu0 }
 0x952   : > { %v2478_v23 = vadd.f32 %v2465_v19, %v5851_v10 }
 0x953   : > { %v2469_v25 = vpop.f32.mrf.mxu0 }
 0x954   : > { %v2470_v26 = vadd.f32 %v4531_v16, %v2469_v25  ;;  %v2481_v28 = vsel %vm1178_vm5, %v2478_v23, 0.0 }
 0x955   : > { %2482 = vadd.xlane.f32.xlu0 %v2481_v28  ;;  %v4959_v32 = vpop.f32.mrf.mxu0 }
 0x956   : > { %v2479_v33 = vadd.f32 %v2470_v26, %v5857_v14 }
 0x958   : > { %v2474_v34 = vpop.f32.mrf.mxu0  ;;  %v2484_v36 = vsel %vm1178_vm5, %v2479_v33, 0.0 }
 0x959   : > { %v2475_v37 = vadd.f32 %v4531_v16, %v2474_v34  ;;  %2485 = vadd.xlane.f32.xlu1 %v2484_v36  ;;  %v1256_v34 = vld [vmem:[%s5656_s20 + $0x8] sm:$0xff]  ;;  %v1255_v36 = vld [vmem:[%s5656_s20] sm:$0xff] }
 0x95a   : > { %v4962_v38 = vpop.f32.mrf.mxu0 }
 0x95b   : > { %v2480_v31 = vadd.f32 %v2475_v37, %v5863_v21  ;;  %v4537_v37 = vld [vmem:[%s6887_s23] ss:$0 sm:$0xff]  ;;  %s6890_s23 = sld [smem:[#allocation17_spill]] }
 0x95d   : > { %v2487_v40 = vsel %vm1185_vm6, %v2480_v31, 0.0 }
 0x95e   : > { %2488 = vadd.xlane.f32.xlu0 %v2487_v40 }
 0x9de   : > { %v2483_v10 = vpop.xlane.xlu0 %2482 }
 0x9df   : > { %v2490_v17 = vmul.f32 0.03125, %v2483_v10 }
 0x9e1   : > { %v6230_v24 = vsub.f32 %v2478_v23, %v2490_v17 }
 0x9e2   : > { %v2486_v41 = vpop.xlane.xlu1 %2485 }
 0x9e3   : > { %v2491_v35 = vmul.f32 0.03125, %v2486_v41  ;;  %v2496_v14 = vmul.f32 %v6230_v24, %v6230_v24 }
 0x9e5   : > { %v6234_v42 = vsub.f32 %v2479_v33, %v2491_v35  ;;  %v2499_v44 = vsel %vm1178_vm5, %v2496_v14, 0.0  ;;  %v1257_v33 = vld [vmem:[%s5656_s20 + $0x10] sm:$0xff] }
 0x9e6   : > { %2500 = vadd.xlane.f32.xlu0 %v2499_v44  ;;  %5007 = vmatpush3.msra.mxu0 %v1257_v33 }
 0x9e7   : > { %v2489_v21 = vpop.xlane.xlu0 %2488  ;;  %v2497_v30 = vmul.f32 %v6234_v42, %v6234_v42  ;;  %5008 = vmatprep.subr.mxu0 %v5561_v11 }
 0x9e8   : > { %v2492_v45 = vmul.f32 0.03125, %v2489_v21  ;;  %5009 = vmatpush3.msra.mxu0 %v1256_v34  ;;  %v4543_v34 = vld [vmem:[%s6891_s2] ss:$0 sm:$0xff]  ;;  %s6893_s2 = smov 96  }
 0x9e9   : > { %v2502_v39 = vsel %vm1178_vm5, %v2497_v30, 0.0  ;;  %5010 = vmatprep.subr.mxu0 %v5561_v11  ;;  %v4541_v30 = vld [vmem:[%s6888_s16] ss:$0 sm:$0xff]  ;;  %s6889_s16 = sld [smem:[#allocation19_spill]] }
 0x9ea   : > { %v6240_v46 = vsub.f32 %v2480_v31, %v2492_v45  ;;  %2503 = vadd.xlane.f32.xlu1 %v2502_v39  ;;  %5011 = vmatpush3.msra.mxu0 %v1255_v36 }
 0x9eb   : > { %5068 = vmatprep.subr.mxu0 %v5561_v11 }
 0x9ec   : > { %v2498_v47 = vmul.f32 %v6240_v46, %v6240_v46 }
 0x9ee   : > { %v2505_v43 = vsel %vm1185_vm6, %v2498_v47, 0.0 }
 0x9ef   : > { %2506 = vadd.xlane.f32.xlu0 %v2505_v43 }
 0xa6f   : > { %v2501_v27 = vpop.xlane.xlu0 %2500 }
 0xa70   : > { %v2508_v29 = vmul.f32 0.03125, %v2501_v27 }
 0xa72   : > { %v2511_v59 = vadd.f32 1e-05, %v2508_v29 }
 0xa73   : > { %v2504_v51 = vpop.xlane.xlu1 %2503 }
 0xa74   : > { %5391 = vrsqrt.f32 %v2511_v59  ;;  %v2509_v63 = vmul.f32 0.03125, %v2504_v51 }
 0xa76   : > { %v2512_v52 = vadd.f32 1e-05, %v2509_v63 }
 0xa78   : > { %5393 = vrsqrt.f32 %v2512_v52  ;;  %v2507_v50 = vpop.xlane.xlu0 %2506 }
 0xa79   : > { %v2510_v7 = vmul.f32 0.03125, %v2507_v50 }
 0xa7b   : > { %v2513_v8 = vadd.f32 1e-05, %v2510_v7 }
 0xa7d   : > { %5395 = vrsqrt.f32 %v2513_v8  ;;  %v2785_v8 = vld [vmem:[%s6889_s16 + $0x18] sm:$0xff] }
 0xa81   : > { %v5392_v4 = vpop.eup %5391 }
 0xa82   : > { %v2517_v13 = vmul.f32 %v5392_v4, %v6230_v24  ;;  %v2784_v4 = vld [vmem:[%s6889_s16 + $0x10] sm:$0xff] }
 0xa84   : > { %v2526_v9 = vmul.f32 %v4535_v12, %v2517_v13  ;;  %v2782_v13 = vld [vmem:[%s6889_s16] sm:$0xff] }
 0xa85   : > { %v5394_v16 = vpop.eup %5393 }
 0xa86   : > { %v2535_v18 = vadd.f32 %v4536_v15, %v2526_v9  ;;  %v2518_v19 = vmul.f32 %v5394_v16, %v6234_v42 }
 0xa88   : > { %4972 = vmatmul.mubr.msk.f32.vlgmr.msra.gmra.mxu1 %vm1178_vm5, %v2535_v18  ;;  %v2527_v20 = vmul.f32 %v4535_v12, %v2518_v19 }
 0xa89   : > { %4974 = vmatprep.mubr.msk.f32.mxu1 %vm5562_vm2, %v5561_v11  ;;  %5022 = vmatpush3.msra.mxu1 %v2785_v8 }
 0xa8a   : > { %v5396_v23 = vpop.eup %5395  ;;  %v2536_v25 = vadd.f32 %v4536_v15, %v2527_v20  ;;  %5023 = vmatprep.subr.mxu1 %v5561_v11 }
 0xa8b   : > { %v2519_v26 = vmul.f32 %v5396_v23, %v6240_v46  ;;  %5024 = vmatpush3.msra.mxu1 %v2784_v4 }
 0xa8c   : > { %4975 = vmatmul.mubr.msk.f32.gmra.mxu1 %vm1178_vm5, %v2536_v25  ;;  %5025 = vmatprep.subr.mxu1 %v5561_v11 }
 0xa8d   : > { %4977 = vmatprep.mubr.msk.f32.mxu1 %vm5562_vm2, %v5561_v11  ;;  %v2528_v28 = vmul.f32 %v4535_v12, %v2519_v26  ;;  %v2783_v12 = vld [vmem:[%s6889_s16 + $0x8] sm:$0xff] }
 0xa8e   : > { %5026 = vmatpush3.msra.mxu1 %v2783_v12 }
 0xa8f   : > { %v2537_v32 = vadd.f32 %v4536_v15, %v2528_v28  ;;  %5027 = vmatprep.subr.mxu1 %v5561_v11 }
 0xa90   : > { %5028 = vmatpush3.msra.mxu1 %v2782_v13 }
 0xa91   : > { %4978 = vmatmul.mubr.msk.f32.gmra.mxu1 %vm1178_vm5, %v2537_v32  ;;  %5038 = vmatprep.subr.mxu1 %v5561_v11 }
 0xa92   : > { %5029 = vmatprep.mubr.msk.f32.mxu1 %vm5562_vm2, %v5561_v11 }
 0xb48   : > { %v2619_v38 = vpop.f32.mrf.mxu1 }
 0xb49   : > { %v2620_v31 = vadd.f32 %v4537_v37, %v2619_v38 }
 0xb4a   : > { %v4973_v40 = vpop.f32.mrf.mxu1 }
 0xb4b   : > { %v2633_v10 = vmax.f32 %v2620_v31, 0.0 }
 0xb4c   : > { %v2624_v17 = vpop.f32.mrf.mxu1 }
 0xb4d   : > { %v2625_v24 = vadd.f32 %v4537_v37, %v2624_v17  ;;  %5013 = vmatmul.mubr.f32.vlgmr.msra.gmra.mxu0 %v2633_v10 }
 0xb4e   : > { %v4976_v41 = vpop.f32.mrf.mxu1  ;;  %5015 = vmatprep.mubr.msk.f32.mxu0 %vm5562_vm2, %v5561_v11 }
 0xb4f   : > { %v2634_v35 = vmax.f32 %v2625_v24, 0.0 }
 0xb51   : > { %v2629_v14 = vpop.f32.mrf.mxu1  ;;  %5016 = vmatmul.mubr.f32.gmra.mxu0 %v2634_v35 }
 0xb52   : > { %v2630_v42 = vadd.f32 %v4537_v37, %v2629_v14  ;;  %5018 = vmatprep.mubr.msk.f32.mxu0 %vm5562_vm2, %v5561_v11 }
 0xb53   : > { %v4979_v44 = vpop.f32.mrf.mxu1 }
 0xb54   : > { %v2635_v21 = vmax.f32 %v2630_v42, 0.0  ;;  %v4544_v44 = vld [vmem:[%s6892_s22] ss:$0 sm:$0xff]  ;;  %s6895_s22 = smov 120  }
 0xb56   : > { %5019 = vmatmul.mubr.f32.gmra.mxu0 %v2635_v21 }
 0xb57   : > { %5074 = vmatprep.mubr.msk.f32.mxu0 %vm5562_vm2, %v5561_v11 }
 0xc0d   : > { %v2708_v45 = vpop.f32.mrf.mxu0 }
 0xc0e   : > { %v2709_v39 = vadd.f32 %v4541_v30, %v2708_v45 }
 0xc0f   : > { %v5014_v46 = vpop.f32.mrf.mxu0 }
 0xc10   : > { %v2722_v47 = vadd.f32 %v2709_v39, %v2535_v18 }
 0xc11   : > { %v2713_v43 = vpop.f32.mrf.mxu0 }
 0xc12   : > { %v2714_v49 = vadd.f32 %v4541_v30, %v2713_v43  ;;  %v2725_v53 = vsel %vm1178_vm5, %v2722_v47, 0.0 }
 0xc13   : > { %2726 = vadd.xlane.f32.xlu1 %v2725_v53  ;;  %v5017_v54 = vpop.f32.mrf.mxu0 }
 0xc14   : > { %v2723_v55 = vadd.f32 %v2714_v49, %v2536_v25 }
 0xc16   : > { %v2718_v48 = vpop.f32.mrf.mxu0  ;;  %v2728_v56 = vsel %vm1178_vm5, %v2723_v55, 0.0 }
 0xc17   : > { %v2719_v57 = vadd.f32 %v4541_v30, %v2718_v48  ;;  %2729 = vadd.xlane.f32.xlu0 %v2728_v56 }
 0xc18   : > { %v5020_v58 = vpop.f32.mrf.mxu0 }
 0xc19   : > { %v2724_v60 = vadd.f32 %v2719_v57, %v2537_v32  ;;  %v4542_v32 = vld [vmem:[%s6890_s23] ss:$0 sm:$0xff]  ;;  %s6894_s23 = smov 88  }
 0xc1b   : > { %v2731_v61 = vsel %vm1185_vm6, %v2724_v60, 0.0 }
 0xc1c   : > { %2732 = vadd.xlane.f32.xlu1 %v2731_v61 }
 0xc9c   : > { %v2727_v62 = vpop.xlane.xlu1 %2726 }
 0xc9d   : > { %v2734_v0 = vmul.f32 0.03125, %v2727_v62 }
 0xc9f   : > { %v2737_v1 = vsub.f32 %v2722_v47, %v2734_v0 }
 0xca0   : > { %v2730_v2 = vpop.xlane.xlu0 %2729 }
 0xca1   : > { %v2735_v3 = vmul.f32 0.03125, %v2730_v2  ;;  %v2740_v5 = vmul.f32 %v2737_v1, %v2737_v1 }
 0xca3   : > { %v2738_v6 = vsub.f32 %v2723_v55, %v2735_v3  ;;  %v2743_v27 = vsel %vm1178_vm5, %v2740_v5, 0.0 }
 0xca4   : > { %2744 = vadd.xlane.f32.xlu0 %v2743_v27 }
 0xca5   : > { %v2733_v29 = vpop.xlane.xlu1 %2732  ;;  %v2741_v59 = vmul.f32 %v2738_v6, %v2738_v6 }
 0xca6   : > { %v2736_v51 = vmul.f32 0.03125, %v2733_v29 }
 0xca7   : > { %v2746_v63 = vsel %vm1178_vm5, %v2741_v59, 0.0 }
 0xca8   : > { %v2739_v52 = vsub.f32 %v2724_v60, %v2736_v51  ;;  %2747 = vadd.xlane.f32.xlu1 %v2746_v63 }
 0xcaa   : > { %v2742_v50 = vmul.f32 %v2739_v52, %v2739_v52 }
 0xcac   : > { %v2749_v7 = vsel %vm1185_vm6, %v2742_v50, 0.0 }
 0xcad   : > { %2750 = vadd.xlane.f32.xlu0 %v2749_v7 }
 0xd2d   : > { %v2745_v15 = vpop.xlane.xlu0 %2744 }
 0xd2e   : > { %v2752_v9 = vmul.f32 0.03125, %v2745_v15 }
 0xd30   : > { %v2755_v16 = vadd.f32 1e-05, %v2752_v9 }
 0xd31   : > { %v2748_v18 = vpop.xlane.xlu1 %2747 }
 0xd32   : > { %5397 = vrsqrt.f32 %v2755_v16  ;;  %v2753_v19 = vmul.f32 0.03125, %v2748_v18 }
 0xd34   : > { %v2756_v20 = vadd.f32 1e-05, %v2753_v19 }
 0xd36   : > { %5399 = vrsqrt.f32 %v2756_v20  ;;  %v2751_v23 = vpop.xlane.xlu0 %2750 }
 0xd37   : > { %v2754_v25 = vmul.f32 0.03125, %v2751_v23 }
 0xd39   : > { %v2757_v26 = vadd.f32 1e-05, %v2754_v25 }
 0xd3b   : > { %5401 = vrsqrt.f32 %v2757_v26 }
 0xd3f   : > { %v5398_v28 = vpop.eup %5397 }
 0xd40   : > { %v2761_v33 = vmul.f32 %v5398_v28, %v2737_v1 }
 0xd42   : > { %v2770_v36 = vmul.f32 %v4542_v32, %v2761_v33 }
 0xd43   : > { %v5400_v37 = vpop.eup %5399 }
 0xd44   : > { %v6323_v38 = vadd.f32 %v4543_v34, %v2770_v36  ;;  %v2762_v31 = vmul.f32 %v5400_v37, %v2738_v6 }
 0xd46   : > { %5030 = vmatmul.mubr.msk.f32.vlgmr.msra.gmra.mxu1 %vm1178_vm5, %v6323_v38  ;;  %v2771_v40 = vmul.f32 %v4542_v32, %v2762_v31 }
 0xd47   : > { %5032 = vmatprep.mubr.msk.f32.mxu1 %vm5562_vm2, %v5561_v11 }
 0xd48   : > { %v5402_v10 = vpop.eup %5401  ;;  %v6329_v17 = vadd.f32 %v4543_v34, %v2771_v40 }
 0xd49   : > { %v2763_v24 = vmul.f32 %v5402_v10, %v2739_v52 }
 0xd4a   : > { %5033 = vmatmul.mubr.msk.f32.gmra.mxu1 %vm1178_vm5, %v6329_v17 }
 0xd4b   : > { %5035 = vmatprep.mubr.msk.f32.mxu1 %vm5562_vm2, %v5561_v11  ;;  %v2772_v41 = vmul.f32 %v4542_v32, %v2763_v24 }
 0xd4d   : > { %v6335_v35 = vadd.f32 %v4543_v34, %v2772_v41 }
 0xd4f   : > { %5036 = vmatmul.mubr.msk.f32.gmra.mxu1 %vm1178_vm5, %v6335_v35 }
 0xd50   : > { %5044 = vmatprep.mubr.msk.f32.mxu1 %vm5562_vm2, %v5561_v11 }
 0xe06   : > { %v2899_v14 = vpop.f32.mrf.mxu1 }
 0xe07   : > { %v6352_v43 = vadd.f32 %v4544_v44, %v2899_v14 }
 0xe08   : > { %v5031_v42 = vpop.f32.mrf.mxu1 }
 0xe0a   : > { %v2904_v21 = vpop.f32.mrf.mxu1 }
 0xe0b   : > { %v6342_v30 = vadd.f32 %v4544_v44, %v2904_v21 }
 0xe0c   : > { %v5034_v45 = vpop.f32.mrf.mxu1 }
 0xe0d   : > { %2918 = vrot.lane.b32.xlu0 %v6342_v30, %s6893_s2 }
 0xe0f   : > { %v2909_v39 = vpop.f32.mrf.mxu1 }
 0xe10   : > { %v6346_v46 = vadd.f32 %v4544_v44, %v2909_v39 }
 0xe11   : > { %3160 = vrot.lane.b32.xlu0 %v6342_v30, %s6894_s23  ;;  %v5037_v47 = vpop.f32.mrf.mxu1 }
 0xe12   : > { %2920 = vrot.lane.b32.xlu1 %v6346_v46, %s6893_s2 }
 0xe15   : > { %3152 = vrot.lane.b32.xlu0 %v6352_v43, %s6895_s22 }
 0xe16   : > { %2916 = vrot.lane.b32.xlu1 %v6352_v43, %s6893_s2  ;;  %s6897_s2 = smov 104  }
 0xe19   : > { %3154 = vrot.lane.b32.xlu0 %v6342_v30, %s6895_s22 }
 0xe1a   : > { %3162 = vrot.lane.b32.xlu1 %v6346_v46, %s6894_s23 }
 0xe1d   : > { %3156 = vrot.lane.b32.xlu0 %v6346_v46, %s6895_s22  ;;  %s6899_s22 = smov 64  }
 0xe1e   : > { %3158 = vrot.lane.b32.xlu1 %v6352_v43, %s6894_s23  ;;  %s6898_s23 = smov 72  }
 0xe21   : > { %3406 = vrot.lane.b32.xlu0 %v6352_v43, %s6896_s26 }
 0xe22   : > { %3416 = vrot.lane.b32.xlu1 %v6346_v46, %s5564_s11 }
 0xe25   : > { %3408 = vrot.lane.b32.xlu0 %v6342_v30, %s6896_s26 }
 0xe26   : > { %3414 = vrot.lane.b32.xlu1 %v6342_v30, %s5564_s11 }
 0xe29   : > { %3410 = vrot.lane.b32.xlu0 %v6346_v46, %s6896_s26  ;;  %s6900_s26 = smov 56  }
 0xe2a   : > { %3412 = vrot.lane.b32.xlu1 %v6352_v43, %s5564_s11  ;;  %s6901_s11 = smov 48  }
 0xe2d   : > { %3660 = vrot.lane.b32.xlu0 %v6352_v43, %s6897_s2 }
 0xe2e   : > { %3670 = vrot.lane.b32.xlu1 %v6346_v46, %s6898_s23 }
 0xe31   : > { %3664 = vrot.lane.b32.xlu0 %v6346_v46, %s6897_s2 }
 0xe32   : > { %3668 = vrot.lane.b32.xlu1 %v6342_v30, %s6898_s23 }
 0xe35   : > { %3050 = vrot.lane.b32.xlu0 %v6352_v43, %s6899_s22 }
 0xe36   : > { %3666 = vrot.lane.b32.xlu1 %v6352_v43, %s6898_s23  ;;  %s6903_s23 = sld [smem:[#allocation21_spill]] }
 0xe39   : > { %3292 = vrot.lane.b32.xlu0 %v6352_v43, %s6900_s26 }
 0xe3a   : > { %3662 = vrot.lane.b32.xlu1 %v6342_v30, %s6897_s2  ;;  %s6902_s2 = smov 40  }
 0xe3d   : > { %3054 = vrot.lane.b32.xlu0 %v6346_v46, %s6899_s22 }
 0xe3e   : > { %3052 = vrot.lane.b32.xlu1 %v6342_v30, %s6899_s22  ;;  %s6904_s22 = smov 8  }
 0xe41   : > { %3296 = vrot.lane.b32.xlu0 %v6346_v46, %s6900_s26 }
 0xe42   : > { %3294 = vrot.lane.b32.xlu1 %v6342_v30, %s6900_s26  ;;  %s6905_s26 = smov 16  }
 0xe7f   : > { %v2919_v49 = vpop.permute.xlu0 %2918 }
 0xe83   : > { %v3161_v53 = vpop.permute.xlu0 %3160 }
 0xe84   : > { %v2921_v54 = vpop.permute.xlu1 %2920 }
 0xe85   : > { %5039 = vmatpush3.xpose.msk.msra.mxu1 %vm1378_vm7, %v2921_v54 }
 0xe86   : > { %5040 = vmatprep.subr.mxu1 %v5561_v11 }
 0xe87   : > { %v3153_v55 = vpop.permute.xlu0 %3152 }
 0xe88   : > { %v2917_v48 = vpop.permute.xlu1 %2916 }
 0xe89   : > { %5041 = vmatpush3.xpose.msk.msra.mxu1 %vm1378_vm7, %v2919_v49 }
 0xe8a   : > { %5042 = vmatprep.subr.mxu1 %v5561_v11 }
 0xe8b   : > { %v3155_v56 = vpop.permute.xlu0 %3154 }
 0xe8c   : > { %v3163_v57 = vpop.permute.xlu1 %3162 }
 0xe8d   : > { %5043 = vmatpush3.xpose.msk.msra.mxu1 %vm1378_vm7, %v2917_v48  ;;  %5069 = vmatpush3.xpose.msk.msra.mxu0 %vm1378_vm7, %v3163_v57 }
 0xe8e   : > { %5070 = vmatprep.subr.mxu0 %v5561_v11  ;;  %5053 = vmatprep.subr.mxu1 %v5561_v11 }
 0xe8f   : > { %v3157_v58 = vpop.permute.xlu0 %3156 }
 0xe90   : > { %5045 = vmatmul.mubr.msk.f32.vlgmr.msra.gmra.mxu1 %vm1378_vm7, %v6352_v43  ;;  %v3159_v60 = vpop.permute.xlu1 %3158 }
 0xe91   : > { %5071 = vmatpush3.xpose.msk.msra.mxu0 %vm1378_vm7, %v3161_v53  ;;  %5047 = vmatprep.mubr.msk.f32.mxu1 %vm5562_vm2, %v5561_v11 }
 0xe92   : > { %5072 = vmatprep.subr.mxu0 %v5561_v11 }
 0xe93   : > { %v3407_v61 = vpop.permute.xlu0 %3406 }
 0xe94   : > { %5048 = vmatmul.mubr.msk.f32.gmra.mxu1 %vm1378_vm7, %v6342_v30  ;;  %v3417_v62 = vpop.permute.xlu1 %3416 }
 0xe95   : > { %5073 = vmatpush3.xpose.msk.msra.mxu0 %vm1378_vm7, %v3159_v60  ;;  %5050 = vmatprep.mubr.msk.f32.mxu1 %vm5562_vm2, %v5561_v11 }
 0xe96   : > { %5098 = vmatprep.subr.mxu0 %v5561_v11 }
 0xe97   : > { %v3409_v0 = vpop.permute.xlu0 %3408 }
 0xe98   : > { %5051 = vmatmul.mubr.msk.f32.gmra.mxu1 %vm1378_vm7, %v6346_v46  ;;  %5075 = vmatmul.mubr.msk.f32.vlgmr.msra.gmra.mxu0 %vm1378_vm7, %v3153_v55  ;;  %v3415_v1 = vpop.permute.xlu1 %3414 }
 0xe99   : > { %5099 = vmatpush3.xpose.msk.msra.mxu0 %vm1378_vm7, %v3417_v62  ;;  %5077 = vmatprep.mubr.msk.f32.mxu0 %vm5562_vm2, %v5561_v11 }
 0xe9a   : > { %5100 = vmatprep.subr.mxu0 %v5561_v11  ;;  %5059 = vmatprep.mubr.msk.f32.mxu1 %vm5562_vm2, %v5561_v11 }
 0xe9b   : > { %v3411_v2 = vpop.permute.xlu0 %3410 }
 0xe9c   : > { %5078 = vmatmul.mubr.msk.f32.gmra.mxu0 %vm1378_vm7, %v3155_v56  ;;  %v3413_v3 = vpop.permute.xlu1 %3412 }
 0xe9d   : > { %5101 = vmatpush3.xpose.msk.msra.mxu0 %vm1378_vm7, %v3415_v1  ;;  %5080 = vmatprep.mubr.msk.f32.mxu0 %vm5562_vm2, %v5561_v11 }
 0xe9e   : > { %5102 = vmatprep.subr.mxu0 %v5561_v11 }
 0xe9f   : > { %v3661_v5 = vpop.permute.xlu0 %3660 }
 0xea0   : > { %5081 = vmatmul.mubr.msk.f32.gmra.mxu0 %vm1378_vm7, %v3157_v58  ;;  %v3671_v6 = vpop.permute.xlu1 %3670 }
 0xea1   : > { %5103 = vmatpush3.xpose.msk.msra.mxu0 %vm1378_vm7, %v3413_v3  ;;  %5104 = vmatprep.mubr.msk.f32.mxu0 %vm5562_vm2, %v5561_v11 }
 0xea2   : > { %5128 = vmatprep.subr.mxu0 %v5561_v11 }
 0xea3   : > { %v3665_v27 = vpop.permute.xlu0 %3664 }
 0xea4   : > { %5105 = vmatmul.mubr.msk.f32.vlgmr.msra.gmra.mxu0 %vm1378_vm7, %v3407_v61  ;;  %v3669_v29 = vpop.permute.xlu1 %3668 }
 0xea5   : > { %5129 = vmatpush3.xpose.msk.msra.mxu0 %vm1378_vm7, %v3671_v6  ;;  %5107 = vmatprep.mubr.msk.f32.mxu0 %vm5562_vm2, %v5561_v11 }
 0xea6   : > { %5130 = vmatprep.subr.mxu0 %v5561_v11 }
 0xea7   : > { %v3051_v59 = vpop.permute.xlu0 %3050 }
 0xea8   : > { %5108 = vmatmul.mubr.msk.f32.gmra.mxu0 %vm1378_vm7, %v3409_v0  ;;  %v3667_v51 = vpop.permute.xlu1 %3666 }
 0xea9   : > { %5131 = vmatpush3.xpose.msk.msra.mxu0 %vm1378_vm7, %v3669_v29  ;;  %5110 = vmatprep.mubr.msk.f32.mxu0 %vm5562_vm2, %v5561_v11 }
 0xeaa   : > { %5132 = vmatprep.subr.mxu0 %v5561_v11 }
 0xeab   : > { %v6451_v63 = vpop.permute.xlu0 %3292 }
 0xeac   : > { %5111 = vmatmul.mubr.msk.f32.gmra.mxu0 %vm1378_vm7, %v3411_v2  ;;  %v3663_v52 = vpop.permute.xlu1 %3662 }
 0xead   : > { %5133 = vmatpush3.xpose.msk.msra.mxu0 %vm1378_vm7, %v3667_v51  ;;  %5134 = vmatprep.mubr.msk.f32.mxu0 %vm5562_vm2, %v5561_v11 }
 0xeae   : > { %5158 = vmatprep.subr.mxu0 %v5561_v11 }
 0xeaf   : > { %v3055_v50 = vpop.permute.xlu0 %3054 }
 0xeb0   : > { %5054 = vmatpush3.msk.msra.mxu1 %vm1526_vm8, %v3055_v50  ;;  %5135 = vmatmul.mubr.msk.f32.vlgmr.msra.gmra.mxu0 %vm1378_vm7, %v3661_v5  ;;  %v3053_v7 = vpop.permute.xlu1 %3052 }
 0xeb1   : > { %5055 = vmatprep.subr.mxu1 %v5561_v11  ;;  %5137 = vmatprep.mubr.msk.f32.mxu0 %vm5562_vm2, %v5561_v11 }
 0xeb2   : > { %5056 = vmatpush3.msra.mxu1 %v3053_v7 }
 0xeb3   : > { %5057 = vmatprep.subr.mxu1 %v5561_v11  ;;  %v6519_v29 = vpop.permute.xlu0 %3296 }
 0xeb4   : > { %5058 = vmatpush3.msra.mxu1 %v3051_v59  ;;  %5138 = vmatmul.mubr.msk.f32.gmra.mxu0 %vm1378_vm7, %v3663_v52 }
 0xeb5   : > { %5140 = vmatprep.mubr.msk.f32.mxu0 %vm5562_vm2, %v5561_v11  ;;  %5083 = vmatprep.subr.mxu1 %v5561_v11 }
 0xeb8   : > { %5141 = vmatmul.mubr.msk.f32.gmra.mxu0 %vm1378_vm7, %v3665_v27  ;;  %v6517_v27 = vpop.permute.xlu1 %3294 }
 0xeb9   : > { %5166 = vmatprep.mubr.msk.f32.mxu0 %vm5562_vm2, %v5561_v11 }
 0xf50   : > { %v3000_v8 = vpop.f32.mrf.mxu1 }
 0xf51   : > { %v6471_v4 = vmul.f32 0.35355338, %v3000_v8 }
 0xf52   : > { %v5046_v12 = vpop.f32.mrf.mxu1 }
 0xf53   : > { %v3017_v13 = vsel %vm1474_vm9, %v6471_v4, -inf }
 0xf54   : > { %3018 = vmax.xlane.f32.xlu1 %v3017_v13  ;;  %v3005_v15 = vpop.f32.mrf.mxu1 }
 0xf55   : > { %v6475_v9 = vmul.f32 0.35355338, %v3005_v15 }
 0xf56   : > { %v5049_v16 = vpop.f32.mrf.mxu1 }
 0xf57   : > { %v3020_v18 = vsel %vm1474_vm9, %v6475_v9, -inf }
 0xf58   : > { %3021 = vmax.xlane.f32.xlu0 %v3020_v18  ;;  %v3010_v19 = vpop.f32.mrf.mxu1  ;;  %v3242_v20 = vpop.f32.mrf.mxu0 }
 0xf59   : > { %v3256_v23 = vmul.f32 0.35355338, %v3242_v20  ;;  %v6480_v36 = vmul.f32 0.35355338, %v3010_v19 }
 0xf5a   : > { %v5052_v25 = vpop.f32.mrf.mxu1  ;;  %v5076_v26 = vpop.f32.mrf.mxu0 }
 0xf5b   : > { %v3259_v28 = vsel %vm1474_vm9, %v3256_v23, -inf  ;;  %v3023_v24 = vsel %vm1481_vm10, %v6480_v36, -inf }
 0xf5c   : > { %3260 = vmax.xlane.f32.xlu1 %v3259_v28  ;;  %v3247_v32 = vpop.f32.mrf.mxu0 }
 0xf5d   : > { %v3257_v33 = vmul.f32 0.35355338, %v3247_v32 }
 0xf5e   : > { %v5079_v34 = vpop.f32.mrf.mxu0 }
 0xf5f   : > { %v3262_v37 = vsel %vm1474_vm9, %v3257_v33, -inf }
 0xf60   : > { %3263 = vmax.xlane.f32.xlu0 %v3262_v37  ;;  %v3252_v31 = vpop.f32.mrf.mxu0 }
 0xf61   : > { %v6483_v40 = vmul.f32 0.35355338, %v3252_v31 }
 0xf62   : > { %v5082_v10 = vpop.f32.mrf.mxu0 }
 0xf63   : > { %v3265_v41 = vsel %vm1481_vm10, %v6483_v40, -inf }
 0xf64   : > { %3024 = vmax.xlane.f32.xlu0 %v3023_v24  ;;  %3266 = vmax.xlane.f32.xlu1 %v3265_v41  ;;  %v3496_v14 = vpop.f32.mrf.mxu0 }
 0xf65   : > { %v6489_v42 = vmul.f32 0.35355338, %v3496_v14 }
 0xf66   : > { %v5106_v44 = vpop.f32.mrf.mxu0 }
 0xf67   : > { %v3513_v21 = vsel %vm1474_vm9, %v6489_v42, -inf }
 0xf68   : > { %3514 = vmax.xlane.f32.xlu0 %v3513_v21  ;;  %v3501_v45 = vpop.f32.mrf.mxu0 }
 0xf69   : > { %v6493_v39 = vmul.f32 0.35355338, %v3501_v45 }
 0xf6a   : > { %v5109_v47 = vpop.f32.mrf.mxu0 }
 0xf6b   : > { %v3516_v49 = vsel %vm1474_vm9, %v6493_v39, -inf }
 0xf6c   : > { %3517 = vmax.xlane.f32.xlu1 %v3516_v49  ;;  %v3506_v53 = vpop.f32.mrf.mxu0 }
 0xf6d   : > { %v6497_v54 = vmul.f32 0.35355338, %v3506_v53 }
 0xf6e   : > { %v5112_v55 = vpop.f32.mrf.mxu0 }
 0xf6f   : > { %v3519_v48 = vsel %vm1481_vm10, %v6497_v54, -inf }
 0xf70   : > { %3520 = vmax.xlane.f32.xlu0 %v3519_v48  ;;  %v3750_v56 = vpop.f32.mrf.mxu0 }
 0xf71   : > { %v6501_v57 = vmul.f32 0.35355338, %v3750_v56 }
 0xf72   : > { %v5136_v58 = vpop.f32.mrf.mxu0 }
 0xf73   : > { %v3767_v60 = vsel %vm1474_vm9, %v6501_v57, -inf }
 0xf74   : > { %3768 = vmax.xlane.f32.xlu1 %v3767_v60  ;;  %v3755_v61 = vpop.f32.mrf.mxu0 }
 0xf75   : > { %v6505_v62 = vmul.f32 0.35355338, %v3755_v61 }
 0xf76   : > { %v5139_v0 = vpop.f32.mrf.mxu0 }
 0xf77   : > { %v3770_v1 = vsel %vm1474_vm9, %v6505_v62, -inf }
 0xf78   : > { %3771 = vmax.xlane.f32.xlu0 %v3770_v1  ;;  %v3760_v2 = vpop.f32.mrf.mxu0 }
 0xf79   : > { %v6513_v5 = vmul.f32 0.35355338, %v3760_v2 }
 0xf7a   : > { %v5142_v3 = vpop.f32.mrf.mxu0 }
 0xf7b   : > { %v3773_v6 = vsel %vm1481_vm10, %v6513_v5, -inf }
 0xf85   : > { %3548 = vrot.lane.b32.xlu1 %v6342_v30, %s6901_s11 }
 0xf8e   : > { %3550 = vrot.lane.b32.xlu0 %v6346_v46, %s6901_s11 }
 0xfa9   : > { %3774 = vmax.xlane.f32.xlu1 %v3773_v6 }
 0xfdd   : > { %v3019_v59 = vpop.xlane.xlu1 %3018 }
 0xfde   : > { %v3026_v51 = vsub.f32 %v6471_v4, %v3019_v59 }
 0xfe0   : > { %v3029_v52 = vmul.f32 1.442695, %v3026_v51 }
 0xfe1   : > { %v3022_v50 = vpop.xlane.xlu0 %3021 }
 0xfe2   : > { %5403 = vpow2.f32 %v3029_v52  ;;  %v3027_v7 = vsub.f32 %v6475_v9, %v3022_v50 }
 0xfe4   : > { %v3031_v13 = vmul.f32 1.442695, %v3027_v7 }
 0xfe5   : > { %v3261_v8 = vpop.xlane.xlu1 %3260 }
 0xfe6   : > { %v3268_v12 = vsub.f32 %v3256_v23, %v3261_v8 }
 0xfe8   : > { %v3271_v15 = vmul.f32 1.442695, %v3268_v12 }
 0xfe9   : > { %v3264_v16 = vpop.xlane.xlu0 %3263 }
 0xfea   : > { %5405 = vpow2.f32 %v3271_v15  ;;  %v3269_v18 = vsub.f32 %v3257_v33, %v3264_v16 }
 0xfeb   : > { %5407 = vpow2.f32 %v3031_v13 }
 0xfec   : > { %v3273_v19 = vmul.f32 1.442695, %v3269_v18 }
 0xfed   : > { %v3025_v20 = vpop.xlane.xlu0 %3024  ;;  %v3267_v10 = vpop.xlane.xlu1 %3266 }
 0xfee   : > { %5409 = vpow2.f32 %v3273_v19  ;;  %v3028_v25 = vsub.f32 %v6480_v36, %v3025_v20  ;;  %v3270_v41 = vsub.f32 %v6483_v40, %v3267_v10 }
 0xfef   : > { %v6524_v26 = vpop.eup %5403 }
 0xff0   : > { %v3033_v4 = vmul.f32 1.442695, %v3028_v25  ;;  %v3035_v28 = vsel %vm1474_vm9, %v6524_v26, 0.0  ;;  %v3275_v21 = vmul.f32 1.442695, %v3270_v41 }
 0xff1   : > { %3036 = vadd.xlane.f32.xlu0 %v3035_v28  ;;  %v3515_v24 = vpop.xlane.xlu0 %3514 }
 0xff2   : > { %5411 = vpow2.f32 %v3033_v4  ;;  %v3522_v44 = vsub.f32 %v6489_v42, %v3515_v24 }
 0xff3   : > { %5413 = vpow2.f32 %v3275_v21 }
 0xff4   : > { %v3525_v49 = vmul.f32 1.442695, %v3522_v44 }
 0xff5   : > { %v3518_v47 = vpop.xlane.xlu1 %3517 }
 0xff6   : > { %v3523_v53 = vsub.f32 %v6493_v39, %v3518_v47  ;;  %5415 = vpow2.f32 %v3525_v49 }
 0xff7   : > { %v6528_v9 = vpop.eup %5405 }
 0xff8   : > { %v3277_v23 = vsel %vm1474_vm9, %v6528_v9, 0.0  ;;  %v6532_v32 = vpop.eup %5407  ;;  %v3527_v56 = vmul.f32 1.442695, %v3523_v53 }
 0xff9   : > { %3278 = vadd.xlane.f32.xlu1 %v3277_v23  ;;  %v3038_v36 = vsel %vm1474_vm9, %v6532_v32, 0.0  ;;  %v3521_v14 = vpop.xlane.xlu0 %3520 }
 0xffa   : > { %v3524_v45 = vsub.f32 %v6497_v54, %v3521_v14 }
 0xffb   : > { %v6534_v33 = vpop.eup %5409 }
 0xffc   : > { %v3280_v34 = vsel %vm1474_vm9, %v6534_v33, 0.0  ;;  %v3529_v55 = vmul.f32 1.442695, %v3524_v45 }
 0xffd   : > { %3281 = vadd.xlane.f32.xlu0 %v3280_v34  ;;  %3039 = vadd.xlane.f32.xlu1 %v3038_v36  ;;  %v3769_v48 = vpop.xlane.xlu1 %3768 }
 0xffe   : > { %5417 = vpow2.f32 %v3529_v55 }
 0xfff   : > { %v6540_v37 = vpop.eup %5411  ;;  %5419 = vpow2.f32 %v3527_v56 }
0x1000   : > { %v3041_v31 = vsel %vm1481_vm10, %v6540_v37, 0.0  ;;  %v6554_v54 = vpop.eup %5413 }
0x1001   : > { %3042 = vadd.xlane.f32.xlu0 %v3041_v31  ;;  %v3772_v58 = vpop.xlane.xlu0 %3771  ;;  %v6556_v61 = vpop.permute.xlu1 %3548  ;;  %v3283_v39 = vsel %vm1481_vm10, %v6554_v54, 0.0 }
0x1002   : > { %v3777_v42 = vsub.f32 %v6505_v62, %v3772_v58 }
0x1003   : > { %v6558_v0 = vpop.eup %5415 }
0x1004   : > { %v3781_v60 = vmul.f32 1.442695, %v3777_v42  ;;  %v3531_v6 = vsel %vm1474_vm9, %v6558_v0, 0.0 }
0x1005   : > { %v3551_v13 = vpop.permute.xlu0 %3550 }
0x100b   : > { %v6562_v1 = vpop.eup %5417 }
0x100c   : > { %v3537_v62 = vsel %vm1481_vm10, %v6562_v1, 0.0  ;;  %v6569_v59 = vpop.eup %5419 }
0x100d   : > { %v3534_v51 = vsel %vm1474_vm9, %v6569_v59, 0.0 }
0x100e   : > { %3546 = vrot.lane.b32.xlu1 %v6352_v43, %s6901_s11  ;;  %s6906_s11 = smov 24  }
0x1017   : > { %3804 = vrot.lane.b32.xlu0 %v6346_v46, %s6902_s2  ;;  %v3776_v46 = vsub.f32 %v6501_v57, %v3769_v48 }
0x1019   : > { %v3779_v40 = vmul.f32 1.442695, %v3776_v46 }
0x101b   : > { %5421 = vpow2.f32 %v3779_v40 }
0x101c   : > { %5423 = vpow2.f32 %v3781_v60 }
0x1028   : > { %v6573_v52 = vpop.eup %5421 }
0x1029   : > { %v6577_v50 = vpop.eup %5423 }
0x102a   : > { %v3788_v7 = vsel %vm1474_vm9, %v6577_v50, 0.0 }
0x1032   : > { %3284 = vadd.xlane.f32.xlu1 %v3283_v39  ;;  %v3775_v57 = vpop.xlane.xlu1 %3774 }
0x1033   : > { %v3778_v2 = vsub.f32 %v6513_v5, %v3775_v57  ;;  %v3785_v5 = vsel %vm1474_vm9, %v6573_v52, 0.0 }
0x1035   : > { %v3783_v3 = vmul.f32 1.442695, %v3778_v2 }
0x1036   : > { %3538 = vadd.xlane.f32.xlu0 %v3537_v62  ;;  %3532 = vadd.xlane.f32.xlu1 %v3531_v6 }
0x1037   : > { %5425 = vpow2.f32 %v3783_v3 }
0x103a   : > { %3535 = vadd.xlane.f32.xlu1 %v3534_v51 }
0x103e   : > { %3786 = vadd.xlane.f32.xlu1 %v3785_v5 }
0x1042   : > { %3789 = vadd.xlane.f32.xlu1 %v3788_v7 }
0x1044   : > { %v6581_v8 = vpop.eup %5425 }
0x1045   : > { %v3791_v12 = vsel %vm1481_vm10, %v6581_v8, 0.0 }
0x1046   : > { %3792 = vadd.xlane.f32.xlu0 %v3791_v12  ;;  %v2788_v12 = vld [vmem:[%s6903_s23 + $0x8] sm:$0xff] }
0x1053   : > { %3802 = vrot.lane.b32.xlu1 %v6342_v30, %s6902_s2 }
0x105c   : > { %3800 = vrot.lane.b32.xlu0 %v6352_v43, %s6902_s2  ;;  %s6907_s2 = sld [smem:[#allocation22_spill]] }
0x107a   : > { %v3037_v15 = vpop.xlane.xlu0 %3036 }
0x107b   : > { %5427 = vrcp.f32 %v3037_v15 }
0x1082   : > { %v3279_v16 = vpop.xlane.xlu1 %3278 }
0x1086   : > { %v3282_v18 = vpop.xlane.xlu0 %3281  ;;  %v3040_v19 = vpop.xlane.xlu1 %3039 }
0x1087   : > { %5429 = vrcp.f32 %v3040_v19 }
0x1088   : > { %v5428_v20 = vpop.eup %5427 }
0x1089   : > { %v3045_v25 = vmul.f32 %v5428_v20, %v6524_v26 }
0x108a   : > { %v3043_v4 = vpop.xlane.xlu0 %3042 }
0x108b   : > { %5431 = vrcp.f32 %v3043_v4  ;;  %5060 = vmatmul.mubr.msk.f32.vlgmr.msra.gmra.mxu1 %vm1474_vm9, %v3045_v25 }
0x108c   : > { %5084 = vmatpush3.msk.msra.mxu1 %vm1526_vm8, %v6519_v29  ;;  %5062 = vmatprep.mubr.msk.f32.mxu1 %vm5562_vm2, %v5561_v11  ;;  %5433 = vrcp.f32 %v3279_v16 }
0x108d   : > { %5085 = vmatprep.subr.mxu1 %v5561_v11  ;;  %5435 = vrcp.f32 %v3282_v18 }
0x108e   : > { %5086 = vmatpush3.msra.mxu1 %v6517_v27  ;;  %v3805_v36 = vpop.permute.xlu0 %3804 }
0x108f   : > { %5087 = vmatprep.subr.mxu1 %v5561_v11 }
0x1090   : > { %5088 = vmatpush3.msra.mxu1 %v6451_v63 }
0x1091   : > { %5113 = vmatprep.subr.mxu1 %v5561_v11 }
0x1094   : > { %v5430_v30 = vpop.eup %5429 }
0x1095   : > { %v3047_v43 = vmul.f32 %v5430_v30, %v6532_v32  ;;  %v3547_v32 = vpop.permute.xlu1 %3546 }
0x1097   : > { %5063 = vmatmul.mubr.msk.f32.gmra.mxu1 %vm1474_vm9, %v3047_v43 }
0x1098   : > { %v5432_v26 = vpop.eup %5431  ;;  %5065 = vmatprep.mubr.msk.f32.mxu1 %vm5562_vm2, %v5561_v11 }
0x1099   : > { %v3049_v29 = vmul.f32 %v5432_v26, %v6540_v37  ;;  %v5434_v28 = vpop.eup %5433 }
0x109a   : > { %v3287_v63 = vmul.f32 %v5434_v28, %v6528_v9  ;;  %v5436_v27 = vpop.eup %5435 }
0x109b   : > { %5066 = vmatmul.mubr.msk.f32.gmra.mxu1 %vm1474_vm9, %v3049_v29  ;;  %v3289_v23 = vmul.f32 %v5436_v27, %v6534_v33 }
0x109c   : > { %5089 = vmatprep.mubr.msk.f32.mxu1 %vm5562_vm2, %v5561_v11 }
0x109f   : > { %5090 = vmatmul.mubr.msk.f32.vlgmr.msra.gmra.mxu1 %vm1474_vm9, %v3287_v63 }
0x10a0   : > { %5114 = vmatpush3.msk.msra.mxu1 %vm1526_vm8, %v3551_v13  ;;  %5092 = vmatprep.mubr.msk.f32.mxu1 %vm5562_vm2, %v5561_v11  ;;  %v2787_v13 = vld [vmem:[%s6903_s23] sm:$0xff] }
0x10a1   : > { %5115 = vmatprep.subr.mxu1 %v5561_v11 }
0x10a2   : > { %5116 = vmatpush3.msra.mxu1 %v6556_v61 }
0x10a3   : > { %5117 = vmatprep.subr.mxu1 %v5561_v11  ;;  %5093 = vmatmul.mubr.msk.f32.gmra.mxu1 %vm1474_vm9, %v3289_v23 }
0x10a4   : > { %5118 = vmatpush3.msra.mxu1 %v3547_v32  ;;  %5095 = vmatprep.mubr.msk.f32.mxu1 %vm5562_vm2, %v5561_v11 }
0x10a5   : > { %5143 = vmatprep.subr.mxu1 %v5561_v11 }
0x10bb   : > { %v3285_v9 = vpop.xlane.xlu1 %3284 }
0x10bc   : > { %5437 = vrcp.f32 %v3285_v9 }
0x10bf   : > { %v3533_v34 = vpop.xlane.xlu1 %3532  ;;  %v3539_v33 = vpop.xlane.xlu0 %3538 }
0x10c0   : > { %5439 = vrcp.f32 %v3533_v34 }
0x10c3   : > { %v3536_v37 = vpop.xlane.xlu1 %3535 }
0x10c4   : > { %5441 = vrcp.f32 %v3536_v37 }
0x10c5   : > { %5443 = vrcp.f32 %v3539_v33 }
0x10c7   : > { %v3787_v31 = vpop.xlane.xlu1 %3786 }
0x10c8   : > { %5445 = vrcp.f32 %v3787_v31  ;;  %v4588_v31 = vld [vmem:[%s6907_s2] ss:$0 sm:$0xff]  ;;  %s6911_s2 = sld [smem:[#allocation24_spill]] }
0x10c9   : > { %v5438_v10 = vpop.eup %5437 }
0x10ca   : > { %v3291_v24 = vmul.f32 %v5438_v10, %v6554_v54 }
0x10cb   : > { %v3790_v41 = vpop.xlane.xlu1 %3789 }
0x10cc   : > { %5096 = vmatmul.mubr.msk.f32.gmra.mxu1 %vm1474_vm9, %v3291_v24  ;;  %5447 = vrcp.f32 %v3790_v41 }
0x10cd   : > { %5119 = vmatprep.mubr.msk.f32.mxu1 %vm5562_vm2, %v5561_v11  ;;  %v5440_v14 = vpop.eup %5439 }
0x10ce   : > { %v3541_v44 = vmul.f32 %v5440_v14, %v6558_v0 }
0x10cf   : > { %v3793_v21 = vpop.xlane.xlu0 %3792  ;;  %v3803_v49 = vpop.permute.xlu1 %3802 }
0x10d0   : > { %5120 = vmatmul.mubr.msk.f32.vlgmr.msra.gmra.mxu1 %vm1474_vm9, %v3541_v44  ;;  %5449 = vrcp.f32 %v3793_v21 }
0x10d1   : > { %v5442_v45 = vpop.eup %5441  ;;  %5144 = vmatpush3.msk.msra.mxu1 %vm1526_vm8, %v3805_v36  ;;  %5122 = vmatprep.mubr.msk.f32.mxu1 %vm5562_vm2, %v5561_v11 }
0x10d2   : > { %v3543_v47 = vmul.f32 %v5442_v45, %v6569_v59  ;;  %5145 = vmatprep.subr.mxu1 %v5561_v11  ;;  %v5444_v55 = vpop.eup %5443  ;;  %v2790_v59 = vld [vmem:[%s6903_s23 + $0x18] sm:$0xff] }
0x10d3   : > { %v3801_v53 = vpop.permute.xlu0 %3800  ;;  %5146 = vmatpush3.msra.mxu1 %v3803_v49  ;;  %v3545_v48 = vmul.f32 %v5444_v55, %v6562_v1  ;;  %5159 = vmatpush3.msra.mxu0 %v2790_v59 }
0x10d4   : > { %5147 = vmatprep.subr.mxu1 %v5561_v11  ;;  %5123 = vmatmul.mubr.msk.f32.gmra.mxu1 %vm1474_vm9, %v3543_v47 }
0x10d5   : > { %5148 = vmatpush3.msra.mxu1 %v3801_v53  ;;  %5125 = vmatprep.mubr.msk.f32.mxu1 %vm5562_vm2, %v5561_v11  ;;  %v5446_v56 = vpop.eup %5445 }
0x10d6   : > { %5175 = vmatprep.subr.mxu1 %v5561_v11  ;;  %v3795_v46 = vmul.f32 %v5446_v56, %v6573_v52  ;;  %5160 = vmatprep.subr.mxu0 %v5561_v11 }
0x10d8   : > { %5126 = vmatmul.mubr.msk.f32.gmra.mxu1 %vm1474_vm9, %v3545_v48 }
0x10d9   : > { %5149 = vmatprep.mubr.msk.f32.mxu1 %vm5562_vm2, %v5561_v11  ;;  %v5448_v58 = vpop.eup %5447 }
0x10da   : > { %v3797_v40 = vmul.f32 %v5448_v58, %v6577_v50  ;;  %v2789_v50 = vld [vmem:[%s6903_s23 + $0x10] sm:$0xff] }
0x10db   : > { %5161 = vmatpush3.msra.mxu0 %v2789_v50 }
0x10dc   : > { %5150 = vmatmul.mubr.msk.f32.vlgmr.msra.gmra.mxu1 %vm1474_vm9, %v3795_v46  ;;  %5162 = vmatprep.subr.mxu0 %v5561_v11 }
0x10dd   : > { %5152 = vmatprep.mubr.msk.f32.mxu1 %vm5562_vm2, %v5561_v11  ;;  %v5450_v42 = vpop.eup %5449  ;;  %5163 = vmatpush3.msra.mxu0 %v2788_v12 }
0x10de   : > { %v3799_v60 = vmul.f32 %v5450_v42, %v6581_v8  ;;  %5164 = vmatprep.subr.mxu0 %v5561_v11 }
0x10df   : > { %5165 = vmatpush3.msra.mxu0 %v2787_v13 }
0x10e0   : > { %5153 = vmatmul.mubr.msk.f32.gmra.mxu1 %vm1474_vm9, %v3797_v40  ;;  %5192 = vmatprep.subr.mxu0 %v5561_v11 }
0x10e1   : > { %5155 = vmatprep.mubr.msk.f32.mxu1 %vm5562_vm2, %v5561_v11 }
0x10e4   : > { %5156 = vmatmul.mubr.msk.f32.gmra.mxu1 %vm1474_vm9, %v3799_v60 }
0x10e5   : > { %5183 = vmatprep.mubr.msk.f32.mxu1 %vm5562_vm2, %v5561_v11 }
0x114b   : > { %v3135_v54 = vpop.f32.mrf.mxu1 }
0x114c   : > { %3149 = vst.msk [vmem:[#allocation3] sm:$0xff] %vm1378_vm7, %v3135_v54 }
0x114d   : > { %v5061_v61 = vpop.f32.mrf.mxu1 }
0x1157   : > { %v3140_v0 = vpop.f32.mrf.mxu1 }
0x1158   : > { %3150 = vst.msk [vmem:[#allocation3 + $0x8] sm:$0xff] %vm1378_vm7, %v3140_v0 }
0x1159   : > { %v5064_v39 = vpop.f32.mrf.mxu1 }
0x115b   : > { %v3145_v1 = vpop.f32.mrf.mxu1 }
0x115c   : > { %3151 = vst.msk [vmem:[#allocation3 + $0x10] sm:$0xf] %vm1611_vm11, %v3145_v1 }
0x115d   : > { %v5067_v57 = vpop.f32.mrf.mxu1 }
0x115f   : > { %v3377_v2 = vpop.f32.mrf.mxu1 }
0x1160   : > { %3394 = vrot.lane.b32.xlu1 %v3377_v2, %s6904_s22 }
0x1161   : > { %v5091_v3 = vpop.f32.mrf.mxu1 }
0x1163   : > { %v3382_v62 = vpop.f32.mrf.mxu1 }
0x1164   : > { %3396 = vrot.lane.b32.xlu0 %v3382_v62, %s6904_s22 }
0x1165   : > { %v5094_v6 = vpop.f32.mrf.mxu1 }
0x118c   : > { %v3387_v51 = vpop.f32.mrf.mxu1 }
0x118e   : > { %v5097_v52 = vpop.f32.mrf.mxu1 }
0x1190   : > { %v3631_v5 = vpop.f32.mrf.mxu1 }
0x1191   : > { %3648 = vrot.lane.b32.xlu0 %v3631_v5, %s6905_s26 }
0x1192   : > { %v5121_v7 = vpop.f32.mrf.mxu1 }
0x1194   : > { %v3636_v8 = vpop.f32.mrf.mxu1 }
0x1195   : > { %3650 = vrot.lane.b32.xlu1 %v3636_v8, %s6905_s26 }
0x1196   : > { %v5124_v15 = vpop.f32.mrf.mxu1 }
0x1198   : > { %v3641_v16 = vpop.f32.mrf.mxu1 }
0x119a   : > { %v5127_v18 = vpop.f32.mrf.mxu1 }
0x119c   : > { %v3885_v19 = vpop.f32.mrf.mxu1 }
0x119d   : > { %3902 = vrot.lane.b32.xlu1 %v3885_v19, %s6906_s11 }
0x119e   : > { %v5151_v20 = vpop.f32.mrf.mxu1 }
0x11a0   : > { %v3890_v25 = vpop.f32.mrf.mxu1 }
0x11a1   : > { %3398 = vrot.lane.b32.xlu1 %v3387_v51, %s6904_s22  ;;  %3904 = vrot.lane.b32.xlu0 %v3890_v25, %s6906_s11  ;;  %s6908_s22 = sld [smem:[#allocation25_spill]] }
0x11a2   : > { %v5154_v4 = vpop.f32.mrf.mxu1 }
0x11a4   : > { %v3895_v30 = vpop.f32.mrf.mxu1 }
0x11a5   : > { %3652 = vrot.lane.b32.xlu0 %v3641_v16, %s6905_s26  ;;  %3906 = vrot.lane.b32.xlu1 %v3895_v30, %s6906_s11  ;;  %s6909_s26 = sld [smem:[#allocation27_spill]] }
0x11a6   : > { %v5157_v43 = vpop.f32.mrf.mxu1  ;;  %s6910_s11 = sld [smem:[#allocation23_spill]] }
0x11a7   : > { %v2797_v6 = vld [vmem:[%s6908_s22 + $0x18] sm:$0xff]  ;;  %v2796_v59 = vld [vmem:[%s6908_s22 + $0x10] sm:$0xff]  ;;  %v2795_v51 = vld [vmem:[%s6908_s22 + $0x8] sm:$0xff] }
0x11a8   : > { %5176 = vmatpush3.msra.mxu1 %v2797_v6  ;;  %v2794_v52 = vld [vmem:[%s6908_s22] sm:$0xff] }
0x11a9   : > { %5177 = vmatprep.subr.mxu1 %v5561_v11 }
0x11aa   : > { %5178 = vmatpush3.msra.mxu1 %v2796_v59 }
0x11ab   : > { %5179 = vmatprep.subr.mxu1 %v5561_v11  ;;  %v2814_v5 = vld [vmem:[%s6909_s26 + $0x78] sm:$0xff]  ;;  %v2813_v50 = vld [vmem:[%s6909_s26 + $0x70] sm:$0xff]  ;;  %v2812_v7 = vld [vmem:[%s6909_s26 + $0x68] sm:$0xff] }
0x11ac   : > { %5180 = vmatpush3.msra.mxu1 %v2795_v51  ;;  %v2811_v8 = vld [vmem:[%s6909_s26 + $0x60] sm:$0xff]  ;;  %v2810_v12 = vld [vmem:[%s6909_s26 + $0x58] sm:$0xff]  ;;  %v2809_v13 = vld [vmem:[%s6909_s26 + $0x50] sm:$0xff] }
0x11ad   : > { %5181 = vmatprep.subr.mxu1 %v5561_v11  ;;  %v2808_v15 = vld [vmem:[%s6909_s26 + $0x48] sm:$0xff]  ;;  %v2807_v16 = vld [vmem:[%s6909_s26 + $0x40] sm:$0xff]  ;;  %v2806_v18 = vld [vmem:[%s6909_s26 + $0x38] sm:$0xff] }
0x11ae   : > { %5182 = vmatpush3.msra.mxu1 %v2794_v52  ;;  %v2805_v19 = vld [vmem:[%s6909_s26 + $0x30] sm:$0xff]  ;;  %v2804_v20 = vld [vmem:[%s6909_s26 + $0x28] sm:$0xff]  ;;  %v2803_v25 = vld [vmem:[%s6909_s26 + $0x20] sm:$0xff] }
0x11af   : > { %5233 = vmatprep.subr.mxu1 %v5561_v11  ;;  %v2802_v4 = vld [vmem:[%s6909_s26 + $0x18] sm:$0xff] }
0x11d2   : > { %v3395_v26 = vpop.permute.xlu1 %3394 }
0x11d3   : > { %3403 = vst.msk [vmem:[#allocation3] sm:$0xff] %vm1864_vm12, %v3395_v26 }
0x11d6   : > { %v3397_v29 = vpop.permute.xlu0 %3396 }
0x11d7   : > { %3404 = vst.msk [vmem:[#allocation3 + $0x8] sm:$0xff] %vm1864_vm12, %v3397_v29 }
0x1203   : > { %v3649_v28 = vpop.permute.xlu0 %3648 }
0x1204   : > { %3657 = vst.msk [vmem:[#allocation3] sm:$0xff] %vm2120_vm13, %v3649_v28 }
0x1207   : > { %v3651_v63 = vpop.permute.xlu1 %3650 }
0x1208   : > { %3658 = vst.msk [vmem:[#allocation3 + $0x8] sm:$0xff] %vm2120_vm13, %v3651_v63 }
0x120f   : > { %v3903_v27 = vpop.permute.xlu1 %3902 }
0x1210   : > { %3911 = vst.msk [vmem:[#allocation3] sm:$0xff] %vm2375_vm14, %v3903_v27 }
0x1213   : > { %v3905_v23 = vpop.permute.xlu0 %3904  ;;  %v3399_v32 = vpop.permute.xlu1 %3398 }
0x1214   : > { %3912 = vst.msk [vmem:[#allocation3 + $0x8] sm:$0xff] %vm2375_vm14, %v3905_v23 }
0x1215   : > { %3405 = vst.msk [vmem:[#allocation3 + $0x10] sm:$0xf] %vm1867_vm15, %v3399_v32 }
0x1217   : > { %v3653_v9 = vpop.permute.xlu0 %3652  ;;  %v3907_v34 = vpop.permute.xlu1 %3906  ;;  %v3914_v36 = vld [vmem:[#allocation3] sm:$0xff] }
0x1218   : > { %3659 = vst.msk [vmem:[#allocation3 + $0x10] sm:$0xf] %vm1047_vm3, %v3653_v9  ;;  %5167 = vmatmul.mubr.msk.f32.vlgmr.msra.gmra.mxu0 %vm1178_vm5, %v3914_v36 }
0x1219   : > { %3913 = vst.msk [vmem:[#allocation3 + $0x10] sm:$0xf] %vm2378_vm0, %v3907_v34  ;;  %5169 = vmatprep.mubr.msk.f32.mxu0 %vm5562_vm2, %v5561_v11  ;;  %5193 = vmatpush3.msra.mxu0 %v2814_v5  ;;  %v4592_v34 = vld [vmem:[%s6910_s11] ss:$0 sm:$0xff]  ;;  %s6912_s11 = sld [smem:[#allocation26_spill]] }
0x121a   : > { %5194 = vmatprep.subr.mxu0 %v5561_v11 }
0x121b   : > { %v3915_v37 = vld [vmem:[#allocation3 + $0x8] sm:$0xff]  ;;  %5195 = vmatpush3.msra.mxu0 %v2813_v50 }
0x121c   : > { %5170 = vmatmul.mubr.msk.f32.gmra.mxu0 %vm1178_vm5, %v3915_v37  ;;  %5196 = vmatprep.subr.mxu0 %v5561_v11  ;;  %v4593_v37 = vld [vmem:[%s6911_s2] ss:$0 sm:$0xff]  ;;  %s6913_s2 = sld [smem:[#allocation28_spill]] }
0x121d   : > { %5172 = vmatprep.mubr.msk.f32.mxu0 %vm5562_vm2, %v5561_v11  ;;  %5197 = vmatpush3.msra.mxu0 %v2812_v7 }
0x121e   : > { %5198 = vmatprep.subr.mxu0 %v5561_v11 }
0x121f   : > { %5199 = vmatpush3.msra.mxu0 %v2811_v8 }
0x1220   : > { %v3916_v33 = vld [vmem:[#allocation3 + $0x10] sm:$0xf]  ;;  %5200 = vmatprep.subr.mxu0 %v5561_v11 }
0x1221   : > { %5173 = vmatmul.mubr.msk.f32.gmra.mxu0 %vm1178_vm5, %v3916_v33 }
0x1222   : > { %5224 = vmatprep.mubr.msk.f32.mxu0 %vm5562_vm2, %v5561_v11  ;;  %5201 = vmatpush3.msra.mxu0 %v2810_v12 }
0x1223   : > { %5202 = vmatprep.subr.mxu0 %v5561_v11 }
0x1224   : > { %5203 = vmatpush3.msra.mxu0 %v2809_v13  ;;  %v4285_v13 = vld [vmem:[%s5736_s30 + $0x18] sm:$0xff] }
0x1225   : > { %5204 = vmatprep.subr.mxu0 %v5561_v11 }
0x1226   : > { %5205 = vmatpush3.msra.mxu0 %v2808_v15  ;;  %v4284_v15 = vld [vmem:[%s5736_s30 + $0x10] sm:$0xff] }
0x1227   : > { %5206 = vmatprep.subr.mxu0 %v5561_v11 }
0x1228   : > { %5207 = vmatpush3.msra.mxu0 %v2807_v16  ;;  %v4283_v16 = vld [vmem:[%s5736_s30 + $0x8] sm:$0xff] }
0x1229   : > { %5208 = vmatprep.subr.mxu0 %v5561_v11 }
0x122a   : > { %5209 = vmatpush3.msra.mxu0 %v2806_v18  ;;  %v4282_v18 = vld [vmem:[%s5736_s30] sm:$0xff] }
0x122b   : > { %5210 = vmatprep.subr.mxu0 %v5561_v11 }
0x122c   : > { %5211 = vmatpush3.msra.mxu0 %v2805_v19 }
0x122d   : > { %5212 = vmatprep.subr.mxu0 %v5561_v11 }
0x122e   : > { %5213 = vmatpush3.msra.mxu0 %v2804_v20 }
0x122f   : > { %5214 = vmatprep.subr.mxu0 %v5561_v11 }
0x1230   : > { %5215 = vmatpush3.msra.mxu0 %v2803_v25 }
0x1231   : > { %5216 = vmatprep.subr.mxu0 %v5561_v11 }
0x1232   : > { %5217 = vmatpush3.msra.mxu0 %v2802_v4 }
0x1233   : > { %5218 = vmatprep.subr.mxu0 %v5561_v11 }
0x12d8   : > { %v3998_v10 = vpop.f32.mrf.mxu0 }
0x12d9   : > { %v3999_v24 = vadd.f32 %v4588_v31, %v3998_v10 }
0x12da   : > { %v5168_v41 = vpop.f32.mrf.mxu0 }
0x12db   : > { %v4012_v14 = vadd.f32 %v3999_v24, %v6323_v38 }
0x12dc   : > { %v4003_v44 = vpop.f32.mrf.mxu0 }
0x12dd   : > { %v4004_v21 = vadd.f32 %v4588_v31, %v4003_v44  ;;  %v4015_v45 = vsel %vm1178_vm5, %v4012_v14, 0.0 }
0x12de   : > { %4016 = vadd.xlane.f32.xlu0 %v4015_v45  ;;  %v5171_v47 = vpop.f32.mrf.mxu0 }
0x12df   : > { %v4013_v49 = vadd.f32 %v4004_v21, %v6329_v17 }
0x12e1   : > { %v4008_v53 = vpop.f32.mrf.mxu0  ;;  %v4018_v55 = vsel %vm1178_vm5, %v4013_v49, 0.0 }
0x12e2   : > { %v4009_v48 = vadd.f32 %v4588_v31, %v4008_v53  ;;  %4019 = vadd.xlane.f32.xlu1 %v4018_v55  ;;  %v2800_v53 = vld [vmem:[%s6909_s26 + $0x8] sm:$0xff]  ;;  %v2799_v55 = vld [vmem:[%s6909_s26] sm:$0xff] }
0x12e3   : > { %v5174_v56 = vpop.f32.mrf.mxu0 }
0x12e4   : > { %v4014_v46 = vadd.f32 %v4009_v48, %v6335_v35  ;;  %v4594_v48 = vld [vmem:[%s6912_s11] ss:$0 sm:$0xff]  ;;  %s6914_s11 = sld [smem:[#allocation29_spill]] }
0x12e6   : > { %v4021_v58 = vsel %vm1185_vm6, %v4014_v46, 0.0 }
0x12e7   : > { %4022 = vadd.xlane.f32.xlu0 %v4021_v58 }
0x1367   : > { %v4017_v38 = vpop.xlane.xlu0 %4016 }
0x1368   : > { %v4024_v40 = vmul.f32 0.03125, %v4017_v38 }
0x136a   : > { %v6698_v42 = vsub.f32 %v4012_v14, %v4024_v40 }
0x136b   : > { %v4020_v60 = vpop.xlane.xlu1 %4019 }
0x136c   : > { %v4025_v54 = vmul.f32 0.03125, %v4020_v60  ;;  %v4030_v17 = vmul.f32 %v6698_v42, %v6698_v42 }
0x136e   : > { %v6702_v61 = vsub.f32 %v4013_v49, %v4025_v54  ;;  %v4033_v0 = vsel %vm1178_vm5, %v4030_v17, 0.0  ;;  %v2801_v49 = vld [vmem:[%s6909_s26 + $0x10] sm:$0xff] }
0x136f   : > { %4034 = vadd.xlane.f32.xlu0 %v4033_v0  ;;  %5219 = vmatpush3.msra.mxu0 %v2801_v49 }
0x1370   : > { %v4023_v35 = vpop.xlane.xlu0 %4022  ;;  %v4031_v39 = vmul.f32 %v6702_v61, %v6702_v61  ;;  %5220 = vmatprep.subr.mxu0 %v5561_v11 }
0x1371   : > { %v4026_v1 = vmul.f32 0.03125, %v4023_v35  ;;  %5221 = vmatpush3.msra.mxu0 %v2800_v53 }
0x1372   : > { %v4036_v57 = vsel %vm1178_vm5, %v4031_v39, 0.0  ;;  %5222 = vmatprep.subr.mxu0 %v5561_v11 }
0x1373   : > { %v6708_v2 = vsub.f32 %v4014_v46, %v4026_v1  ;;  %4037 = vadd.xlane.f32.xlu1 %v4036_v57  ;;  %5223 = vmatpush3.msra.mxu0 %v2799_v55 }
0x1375   : > { %v4032_v3 = vmul.f32 %v6708_v2, %v6708_v2 }
0x1377   : > { %v4039_v62 = vsel %vm1185_vm6, %v4032_v3, 0.0  ;;  %v4598_v3 = vld [vmem:[%s6913_s2] ss:$0 sm:$0xff]  ;;  %s1003_s2 = sand.u32 1, %s5511_s10  }
0x1378   : > { %4040 = vadd.xlane.f32.xlu0 %v4039_v62  ;;  %s4478_s3 = sshll.u32 %s1003_s2, 2  ;;  %s4369_s9 = scalar_lea.sflag [#allocation5], %s1003_s2 }
0x1379   : > { %s1005_s6 = scalar_lea.vmem [#allocation4], %s4478_s3 }
0x137a   : > { %s4382_s8 = sshll.u32 %s1005_s6, 4  ;;  %s4383_s8 = int_to_ptr.vmem [resolvable:$true] %s4382_s8 }
0x137b   : > { %p5466_p0 = scmp.lt.s32.totalorder %s4383_s8, %s5464_s14 }
0x13f8   : > { %v4035_v30 = vpop.xlane.xlu0 %4034 }
0x13f9   : > { %v4042_v43 = vmul.f32 0.03125, %v4035_v30  ;;  %v4599_v30 = vld [vmem:[%s6914_s11] ss:$0 sm:$0xff]  ;;  %s4380_s11 = scalar_lea.hbm %s5746_s4, %s4604_s5 }
0x13fb   : > { %v4045_v26 = vadd.f32 1e-05, %v4042_v43 }
0x13fc   : > { %v4038_v29 = vpop.xlane.xlu1 %4037 }
0x13fd   : > { %5451 = vrsqrt.f32 %v4045_v26  ;;  %v4043_v28 = vmul.f32 0.03125, %v4038_v29  ;;  %v4600_v26 = vld [vmem:[%s6915_s12] ss:$0 sm:$0xff]  ;;  %s5459_s12 = scalar_lea.vmem %s4383_s8, 64 }
0x13fe   : > { %p5460_p11 = scmp.ne.s32.totalorder %s4383_s8, %s5459_s12  ;;  %p5467_p1 = scmp.lt.s32.totalorder %s5465_s0, %s5459_s12 }
0x13ff   : > { %v4046_v63 = vadd.f32 1e-05, %v4043_v28 }
0x1400   : > { %p5461_p12 = pnand %p5460_p11, %p5786_p5  ;;  %p5468_p2 = por %p5467_p1, %p5466_p0 }
0x1401   : > { %5453 = vrsqrt.f32 %v4046_v63  ;;  %v4041_v27 = vpop.xlane.xlu0 %4040  ;;  %v4601_v63 = vld [vmem:[%s5741_s27] ss:$0 sm:$0xff] }
0x1402   : > { %v4044_v23 = vmul.f32 0.03125, %v4041_v27  ;;  %p5462_p13 = pneg %p5461_p12 }
0x1404   : > { %v4047_v32 = vadd.f32 1e-05, %v4044_v23  ;;  %p5469_p3 = pnand %p5468_p2, %p5462_p13 }
0x1406   : > { %5455 = vrsqrt.f32 %v4047_v32 }
0x140a   : > { %v5452_v9 = vpop.eup %5451 }
0x140b   : > { %v4051_v36 = vmul.f32 %v5452_v9, %v6698_v42 }
0x140d   : > { %v4060_v33 = vmul.f32 %v4592_v34, %v4051_v36 }
0x140e   : > { %v5454_v31 = vpop.eup %5453 }
0x140f   : > { %v4069_v10 = vadd.f32 %v4593_v37, %v4060_v33  ;;  %v4052_v24 = vmul.f32 %v5454_v31, %v6702_v61 }
0x1411   : > { %5184 = vmatmul.mubr.msk.f32.vlgmr.msra.gmra.mxu1 %vm1178_vm5, %v4069_v10  ;;  %v4061_v41 = vmul.f32 %v4592_v34, %v4052_v24 }
0x1412   : > { %5186 = vmatprep.mubr.msk.f32.mxu1 %vm5562_vm2, %v5561_v11  ;;  %5234 = vmatpush3.msra.mxu1 %v4285_v13 }
0x1413   : > { %v5456_v14 = vpop.eup %5455  ;;  %v4070_v44 = vadd.f32 %v4593_v37, %v4061_v41  ;;  %5235 = vmatprep.subr.mxu1 %v5561_v11 }
0x1414   : > { %v4053_v21 = vmul.f32 %v5456_v14, %v6708_v2  ;;  %5236 = vmatpush3.msra.mxu1 %v4284_v15 }
0x1415   : > { %5187 = vmatmul.mubr.msk.f32.gmra.mxu1 %vm1178_vm5, %v4070_v44  ;;  %5237 = vmatprep.subr.mxu1 %v5561_v11 }
0x1416   : > { %5189 = vmatprep.mubr.msk.f32.mxu1 %vm5562_vm2, %v5561_v11  ;;  %v4062_v45 = vmul.f32 %v4592_v34, %v4053_v21  ;;  %5238 = vmatpush3.msra.mxu1 %v4283_v16 }
0x1417   : > { %5239 = vmatprep.subr.mxu1 %v5561_v11 }
0x1418   : > { %v4071_v47 = vadd.f32 %v4593_v37, %v4062_v45  ;;  %5240 = vmatpush3.msra.mxu1 %v4282_v18 }
0x141a   : > { %5190 = vmatmul.mubr.msk.f32.gmra.mxu1 %vm1178_vm5, %v4071_v47 }
0x141b   : > { %5241 = vmatprep.mubr.msk.f32.mxu1 %vm5562_vm2, %v5561_v11 }
0x14d1   : > { %v4153_v56 = vpop.f32.mrf.mxu1 }
0x14d2   : > { %v4154_v46 = vadd.f32 %v4594_v48, %v4153_v56 }
0x14d3   : > { %v5185_v58 = vpop.f32.mrf.mxu1 }
0x14d4   : > { %v4167_v38 = vmax.f32 %v4154_v46, 0.0 }
0x14d5   : > { %v4158_v40 = vpop.f32.mrf.mxu1 }
0x14d6   : > { %v4159_v42 = vadd.f32 %v4594_v48, %v4158_v40  ;;  %5225 = vmatmul.mubr.f32.vlgmr.msra.gmra.mxu0 %v4167_v38 }
0x14d7   : > { %v5188_v60 = vpop.f32.mrf.mxu1  ;;  %5227 = vmatprep.mubr.msk.f32.mxu0 %vm5562_vm2, %v5561_v11 }
0x14d8   : > { %v4168_v54 = vmax.f32 %v4159_v42, 0.0 }
0x14da   : > { %v4163_v17 = vpop.f32.mrf.mxu1  ;;  %5228 = vmatmul.mubr.f32.gmra.mxu0 %v4168_v54 }
0x14db   : > { %v4164_v61 = vadd.f32 %v4594_v48, %v4163_v17  ;;  %5230 = vmatprep.mubr.msk.f32.mxu0 %vm5562_vm2, %v5561_v11 }
0x14dc   : > { %v5191_v0 = vpop.f32.mrf.mxu1 }
0x14dd   : > { %v4169_v35 = vmax.f32 %v4164_v61, 0.0 }
0x14df   : > { %5231 = vmatmul.mubr.f32.gmra.mxu0 %v4169_v35 }
0x1596   : > { %v4242_v39 = vpop.f32.mrf.mxu0 }
0x1598   : > { %v5226_v1 = vpop.f32.mrf.mxu0 }
0x159a   : > { %v4246_v57 = vpop.f32.mrf.mxu0 }
0x159c   : > { %v5229_v2 = vpop.f32.mrf.mxu0 }
0x159f   : > { %v4250_v62 = vpop.f32.mrf.mxu0 }
0x15a0   : > { %v4251_v6 = vadd.f32 %v4598_v3, %v4250_v62 }
0x15a1   : > { %v5232_v59 = vpop.f32.mrf.mxu0 }
0x15a2   : > { %v4254_v51 = vadd.f32 %v4251_v6, %v4071_v47 }
0x15a4   : > { %v4255_v52 = vsel %vm1185_vm6, %v4254_v51, 0.0 }
0x15a5   : > { %4256 = vadd.xlane.f32.xlu1 %v4255_v52 }
0x162e   : > { %v4257_v5 = vpop.xlane.xlu1 %4256 }
0x162f   : > { %v4258_v50 = vmul.f32 0.03125, %v4257_v5 }
0x1631   : > { %v4259_v7 = vsub.f32 %v4254_v51, %v4258_v50 }
0x1633   : > { %v4260_v8 = vmul.f32 %v4259_v7, %v4259_v7 }
0x1635   : > { %v4261_v12 = vsel %vm1185_vm6, %v4260_v8, 0.0 }
0x1636   : > { %4262 = vadd.xlane.f32.xlu0 %v4261_v12 }
0x16bf   : > { %v4263_v19 = vpop.xlane.xlu0 %4262 }
0x16c0   : > { %v4264_v20 = vmul.f32 0.03125, %v4263_v19 }
0x16c2   : > { %v4265_v25 = vadd.f32 1e-05, %v4264_v20 }
0x16c4   : > { %5457 = vrsqrt.f32 %v4265_v25 }
0x16d1   : > { %v5458_v4 = vpop.eup %5457 }
0x16d2   : > { %v4267_v43 = vmul.f32 %v5458_v4, %v4259_v7 }
0x16d4   : > { %v4274_v29 = vmul.f32 %v4599_v30, %v4267_v43 }
0x16d6   : > { %v4281_v28 = vadd.f32 %v4600_v26, %v4274_v29 }
0x16d8   : > { %5242 = vmatmul.mubr.msk.f32.vlgmr.msra.gmra.mxu1 %vm1178_vm5, %v4281_v28 }
0x1798   : > { %v4362_v11 = vpop.f32.mrf.mxu1 }
0x1799   : > { %v4363_v27 = vadd.f32 %v4601_v63, %v4362_v11 }
0x179a   : > { %v5243_v23 = vpop.f32.mrf.mxu1 }
0x179b   : > { %v4366_v32 = vadd.f32 %v4363_v27, %v5826_v22 }
0x179d   : > { %4367 = vst.msk [vmem:[%s1005_s6] sm:$0xf] %vm1611_vm11, %v4366_v32 }
0x179e   : > { %5472 = shalt.err (!%p5469_p3)
}
0x179f   : > { %s5473_s3 = scalar_lea.hbm %s4380_s11, 64  ;;  %s5477_s5 = scalar_lea.hbm %s5746_s4, 128 }
0x17a0   : > { %p5474_p4 = scmp.ne.s32.totalorder %s4380_s11, %s5473_s3  ;;  %p5478_p9 = scmp.lt.s32.totalorder %s4380_s11, %s5746_s4 }
0x17a1   : > { %p5479_p10 = scmp.lt.s32.totalorder %s5477_s5, %s5473_s3 }
0x17a2   : > { %p5475_p7 = pnand %p5474_p4, %p5786_p5 }
0x17a3   : > { %p5480_p11 = por %p5479_p10, %p5478_p9 }
0x17a4   : > { %p5476_p8 = pneg %p5475_p7 }
0x17a6   : > { %p5481_p12 = pnand %p5480_p11, %p5476_p8 }
0x17a8   : > { %5484 = shalt.err (!%p5481_p12)
}
0x17a9   : > { %5244 = dma.vmem_to_hbm [thread:$0]  (%p5786_p5), %s4383_s8, 64, %s4380_s11, %s4369_s9  }
0x17aa PF: > { %p5250_p13 = scmp.ge.s32.totalorder %s5519_s15, 2  ;;  %s4394_s13 = sand.u32 1, %s5507_s7  }
0x17ab   : > { %s4395_s14 = scalar_lea.sflag [#allocation5], %s4394_s13 }
0x17ac   : > { %p5247_p0 = pnand %p5250_p13, %p5790_p6 }
0x17ae   : > { %p5248_p1 = pneg %p5247_p0 }
0x17b0   : > { %5502 = dma.done.wait (%p5248_p1), %s4395_s14, 64  }
0x17b1   : > { %5504 = vsyncadd (%p5248_p1), %s4395_s14, 4294967232  ;;  %s6916_s6 = sld [smem:[#allocation31_spill]]  ;;  %p77_p2 = scmp.ge.s32.totalorder %s5773_s18, 4  }
0x17b2   : > { %s6917_s11 = sld [smem:[#allocation32_spill]]  ;;  %s6918_s7 = smov %s5511_s10 }
0x17b3   : > { %s6920_s15 = smov %s5773_s18  ;;  %79 = sbr.rel (!%p77_p2) target bundleno = 62 (0x3e), region = 220 }
0x17b7   : > { %s6919_s10 = smov %s6916_s6 }
0x17b8   :  { %4400 = vsyncpa [#allocation5], 1 }
0x17b9   :  { %4402 = vsyncpa [#allocation5 + $0x1], 1 }

</bundles_post_ra>
